<compile_context>
chip_gen: v5e
topology: v5e:2x2
jax: 0.10.0
libtpu: 0.0.40
codegen_flags: <defaults>
</compile_context>

<pallas_src>
import functools

import jax
import jax.numpy as jnp
from jax.experimental import pallas as pl
from jax.experimental.pallas import tpu as pltpu


def _dwc_kernel(w_ref, b_ref, x_ref, o_ref, xp_ref, *, H, W, K, pad, G):
    # w_ref : (G*K*K, TC)      VMEM  per-tap weight lane-vectors (f32)
    # b_ref : (1, TC)          VMEM  bias lane-vector (f32)
    # x_ref : (1, G*H, W, TC)  VMEM  this batch's G input planes, channels on lanes
    # o_ref : (1, H, W, TC)    VMEM  output plane, channels on lanes
    # xp_ref: (G, H+2p, W+2p, TC) VMEM scratch: zero-padded input planes
    TC = o_ref.shape[-1]

    # Build the zero-padded halo entirely in VMEM (no HBM pad copy).
    xp_ref[...] = jnp.zeros_like(xp_ref)
    for g in range(G):
        xp_ref[g, pad:pad + H, pad:pad + W, :] = x_ref[0, g * H:(g + 1) * H, :, :]

    # Bias init hoisted: single broadcast of the bias lane-vector.
    acc = jnp.broadcast_to(b_ref[0, :].astype(jnp.float32), (H, W, TC))

    # Unrolled G*K*K taps: shifted plane (sublane/row offsets) * per-lane weight.
    for g in range(G):
        for kh in range(K):
            for kw in range(K):
                wv = w_ref[(g * K + kh) * K + kw, :]              # (TC,) lane vector
                tap = xp_ref[g, kh:kh + H, kw:kw + W, :].astype(jnp.float32)
                acc = acc + wv * tap

    o_ref[0] = acc.astype(o_ref.dtype)


def _pick_c_tile(c_out):
    """Channel-tile size: full C_out unless it can be split into 128-multiples."""
    if c_out % 128 != 0:
        return c_out
    for t in (512, 256, 128):
        if t <= c_out and c_out % t == 0:
            return t
    return c_out


def dwc_forward(x, weight, bias, kernel_size=3):
    """Equivalent of nn.Conv2d(dim, dim//2, k, 1, k//2, groups=dim//2)(x). NCHW in/out."""
    N, C, H, W = x.shape
    K = kernel_size
    assert K % 2 == 1, "even kernel_size: PyTorch padding=k//2 differs from SAME padding"
    C_out, G = weight.shape[0], weight.shape[1]          # (dim//2, 2)
    assert C_out * G == C
    pad = K // 2
    Hp, Wp = H + 2 * pad, W + 2 * pad

    # ---- layout glue (plain JAX; pure layout plumbing) ----------------------
    # x (N, C_out*G, H, W) -> (N, G*H, W, C_out): group index folded into the
    # row axis, output channels on the (lane) minor axis.
    xr = (x.reshape(N, C_out, G, H, W)
           .transpose(0, 2, 3, 4, 1)
           .reshape(N, G * H, W, C_out))
    # weight (C_out, G, K, K) -> (G*K*K, C_out): one lane vector per tap.
    wr = weight.transpose(1, 2, 3, 0).reshape(G * K * K, C_out).astype(jnp.float32)
    br = bias.reshape(1, C_out).astype(jnp.float32)

    TC = _pick_c_tile(C_out)
    n_ct = C_out // TC

    kernel = functools.partial(_dwc_kernel, H=H, W=W, K=K, pad=pad, G=G)

    out_nhwc = pl.pallas_call(
        kernel,
        out_shape=jax.ShapeDtypeStruct((N, H, W, C_out), x.dtype),
        grid=(N, n_ct),
        in_specs=[
            pl.BlockSpec((G * K * K, TC), lambda n, c: (0, c)),      # weights
            pl.BlockSpec((1, TC), lambda n, c: (0, c)),              # bias
            pl.BlockSpec((1, G * H, W, TC), lambda n, c: (n, 0, 0, c)),
        ],
        out_specs=pl.BlockSpec((1, H, W, TC), lambda n, c: (n, 0, 0, c)),
        scratch_shapes=[pltpu.VMEM((G, Hp, Wp, TC), x.dtype)],
        compiler_params=pltpu.CompilerParams(
            dimension_semantics=("parallel", "parallel"),
            # Raise v5e's 16 MiB default; still within v7x's 64 MiB physical VMEM.
            vmem_limit_bytes=32 * 1024 * 1024,
        ),
    )(wr, br, xr)

    # TODO(synk): very large H*W feature maps could additionally tile H (with an
    # in-kernel halo exchange); current version keeps the full plane per step.
    return out_nhwc.transpose(0, 3, 1, 2)                # back to NCHW


if __name__ == "__main__":
    dim = 8
    ksize = 3
    N, H, W = 2, 16, 16

    key = jax.random.PRNGKey(0)
    kx, kw, kb = jax.random.split(key, 3)
    x = jax.random.normal(kx, (N, dim, H, W), dtype=jnp.float32)
    # Conv2d(dim, dim//2, k, groups=dim//2): weight (dim//2, 2, k, k), bias (dim//2,)
    weight = 0.1 * jax.random.normal(kw, (dim // 2, 2, ksize, ksize), dtype=jnp.float32)
    bias = 0.1 * jax.random.normal(kb, (dim // 2,), dtype=jnp.float32)

    out = dwc_forward(x, weight, bias, ksize)
    out = jax.block_until_ready(out)

    # Pure-JAX reference (same grouped-conv semantics as the PyTorch module).
    ref = jax.lax.conv_general_dilated(
        x, weight, window_strides=(1, 1), padding="SAME",
        dimension_numbers=("NCHW", "OIHW", "NCHW"),
        feature_group_count=dim // 2,
    ) + bias[None, :, None, None]

    assert out.shape == (N, dim // 2, H, W), out.shape
    assert jnp.allclose(out, ref, atol=1e-4, rtol=1e-4), float(jnp.max(jnp.abs(out - ref)))
    print("KERNEL_OK")
</pallas_src>

<mosaic_0001>
module attributes {stable_mosaic.version = 11 : i64} {
  func.func @_dwc_kernel(%arg0: i32, %arg1: i32, %arg2: memref<18x4xf32, #tpu.memory_space<vmem>>, %arg3: memref<1x4xf32, #tpu.memory_space<vmem>>, %arg4: memref<1x32x16x4xf32, #tpu.memory_space<vmem>>, %arg5: memref<1x16x16x4xf32, #tpu.memory_space<vmem>>, %arg6: memref<2x18x18x4xf32, #tpu.memory_space<vmem>>) attributes {dimension_semantics = [#tpu.dimension_semantics<parallel>, #tpu.dimension_semantics<parallel>], iteration_bounds = array<i64: 2, 1>, scalar_prefetch = 0 : i64, scratch_operands = 1 : i64, tpu.core_type = #tpu.core_type<tc>, window_params = [{transform_indices = @transform_0, window_bounds = array<i64: 18, 4>}, {transform_indices = @transform_1, window_bounds = array<i64: 1, 4>}, {transform_indices = @transform_2, window_bounds = array<i64: 1, 32, 16, 4>}, {transform_indices = @transform_3, window_bounds = array<i64: 1, 16, 16, 4>}]} {
    %cst = arith.constant 0.000000e+00 : f32
    %0 = vector.broadcast %cst : f32 to vector<2x18x18x4xf32>
    %c0 = arith.constant 0 : index
    %c0_0 = arith.constant 0 : index
    %c0_1 = arith.constant 0 : index
    %c0_2 = arith.constant 0 : index
    %1 = vector.load %arg6[%c0, %c0_0, %c0_1, %c0_2] : memref<2x18x18x4xf32, #tpu.memory_space<vmem>>, vector<2x18x18x4xf32>
    tpu.vector_store %arg6[%c0, %c0_0, %c0_1, %c0_2], %0 {strides = array<i32>} : memref<2x18x18x4xf32, #tpu.memory_space<vmem>>, vector<2x18x18x4xf32>,
    %c0_3 = arith.constant 0 : index
    %c0_4 = arith.constant 0 : index
    %c0_5 = arith.constant 0 : index
    %c0_6 = arith.constant 0 : index
    %2 = vector.load %arg4[%c0_3, %c0_4, %c0_5, %c0_6] : memref<1x32x16x4xf32, #tpu.memory_space<vmem>>, vector<1x16x16x4xf32>
    %3 = vector.shape_cast %2 : vector<1x16x16x4xf32> to vector<16x16x4xf32>
    %c0_7 = arith.constant 0 : index
    %c1 = arith.constant 1 : index
    %c1_8 = arith.constant 1 : index
    %c0_9 = arith.constant 0 : index
    %4 = vector.load %arg6[%c0_7, %c1, %c1_8, %c0_9] : memref<2x18x18x4xf32, #tpu.memory_space<vmem>>, vector<1x16x16x4xf32>
    %5 = vector.shape_cast %4 : vector<1x16x16x4xf32> to vector<16x16x4xf32>
    %6 = vector.shape_cast %3 : vector<16x16x4xf32> to vector<1x16x16x4xf32>
    tpu.vector_store %arg6[%c0_7, %c1, %c1_8, %c0_9], %6 {strides = array<i32>} : memref<2x18x18x4xf32, #tpu.memory_space<vmem>>, vector<1x16x16x4xf32>,
    %c0_10 = arith.constant 0 : index
    %c16 = arith.constant 16 : index
    %c0_11 = arith.constant 0 : index
    %c0_12 = arith.constant 0 : index
    %7 = vector.load %arg4[%c0_10, %c16, %c0_11, %c0_12] : memref<1x32x16x4xf32, #tpu.memory_space<vmem>>, vector<1x16x16x4xf32>
    %8 = vector.shape_cast %7 : vector<1x16x16x4xf32> to vector<16x16x4xf32>
    %c1_13 = arith.constant 1 : index
    %c1_14 = arith.constant 1 : index
    %c1_15 = arith.constant 1 : index
    %c0_16 = arith.constant 0 : index
    %9 = vector.load %arg6[%c1_13, %c1_14, %c1_15, %c0_16] : memref<2x18x18x4xf32, #tpu.memory_space<vmem>>, vector<1x16x16x4xf32>
    %10 = vector.shape_cast %9 : vector<1x16x16x4xf32> to vector<16x16x4xf32>
    %11 = vector.shape_cast %8 : vector<16x16x4xf32> to vector<1x16x16x4xf32>
    tpu.vector_store %arg6[%c1_13, %c1_14, %c1_15, %c0_16], %11 {strides = array<i32>} : memref<2x18x18x4xf32, #tpu.memory_space<vmem>>, vector<1x16x16x4xf32>,
    %c0_17 = arith.constant 0 : index
    %c0_18 = arith.constant 0 : index
    %12 = vector.load %arg3[%c0_17, %c0_18] : memref<1x4xf32, #tpu.memory_space<vmem>>, vector<1x4xf32>
    %13 = vector.shape_cast %12 : vector<1x4xf32> to vector<4xf32>
    %14 = vector.shape_cast %13 : vector<4xf32> to vector<1x1x4xf32>
    %15 = vector.broadcast %14 : vector<1x1x4xf32> to vector<16x16x4xf32>
    %c0_19 = arith.constant 0 : index
    %c0_20 = arith.constant 0 : index
    %16 = vector.load %arg2[%c0_19, %c0_20] : memref<18x4xf32, #tpu.memory_space<vmem>>, vector<1x4xf32>
    %17 = vector.shape_cast %16 : vector<1x4xf32> to vector<4xf32>
    %c0_21 = arith.constant 0 : index
    %c0_22 = arith.constant 0 : index
    %c0_23 = arith.constant 0 : index
    %c0_24 = arith.constant 0 : index
    %18 = vector.load %arg6[%c0_21, %c0_22, %c0_23, %c0_24] : memref<2x18x18x4xf32, #tpu.memory_space<vmem>>, vector<1x16x16x4xf32>
    %19 = vector.shape_cast %18 : vector<1x16x16x4xf32> to vector<16x16x4xf32>
    %20 = vector.shape_cast %17 : vector<4xf32> to vector<1x1x4xf32>
    %21 = vector.broadcast %20 : vector<1x1x4xf32> to vector<16x16x4xf32>
    %22 = arith.mulf %21, %19 : vector<16x16x4xf32>
    %23 = arith.addf %15, %22 : vector<16x16x4xf32>
    %c1_25 = arith.constant 1 : index
    %c0_26 = arith.constant 0 : index
    %24 = vector.load %arg2[%c1_25, %c0_26] : memref<18x4xf32, #tpu.memory_space<vmem>>, vector<1x4xf32>
    %25 = vector.shape_cast %24 : vector<1x4xf32> to vector<4xf32>
    %c0_27 = arith.constant 0 : index
    %c0_28 = arith.constant 0 : index
    %c1_29 = arith.constant 1 : index
    %c0_30 = arith.constant 0 : index
    %26 = vector.load %arg6[%c0_27, %c0_28, %c1_29, %c0_30] : memref<2x18x18x4xf32, #tpu.memory_space<vmem>>, vector<1x16x16x4xf32>
    %27 = vector.shape_cast %26 : vector<1x16x16x4xf32> to vector<16x16x4xf32>
    %28 = vector.shape_cast %25 : vector<4xf32> to vector<1x1x4xf32>
    %29 = vector.broadcast %28 : vector<1x1x4xf32> to vector<16x16x4xf32>
    %30 = arith.mulf %29, %27 : vector<16x16x4xf32>
    %31 = arith.addf %23, %30 : vector<16x16x4xf32>
    %c2 = arith.constant 2 : index
    %c0_31 = arith.constant 0 : index
    %32 = vector.load %arg2[%c2, %c0_31] : memref<18x4xf32, #tpu.memory_space<vmem>>, vector<1x4xf32>
    %33 = vector.shape_cast %32 : vector<1x4xf32> to vector<4xf32>
    %c0_32 = arith.constant 0 : index
    %c0_33 = arith.constant 0 : index
    %c2_34 = arith.constant 2 : index
    %c0_35 = arith.constant 0 : index
    %34 = vector.load %arg6[%c0_32, %c0_33, %c2_34, %c0_35] : memref<2x18x18x4xf32, #tpu.memory_space<vmem>>, vector<1x16x16x4xf32>
    %35 = vector.shape_cast %34 : vector<1x16x16x4xf32> to vector<16x16x4xf32>
    %36 = vector.shape_cast %33 : vector<4xf32> to vector<1x1x4xf32>
    %37 = vector.broadcast %36 : vector<1x1x4xf32> to vector<16x16x4xf32>
    %38 = arith.mulf %37, %35 : vector<16x16x4xf32>
    %39 = arith.addf %31, %38 : vector<16x16x4xf32>
    %c3 = arith.constant 3 : index
    %c0_36 = arith.constant 0 : index
    %40 = vector.load %arg2[%c3, %c0_36] : memref<18x4xf32, #tpu.memory_space<vmem>>, vector<1x4xf32>
    %41 = vector.shape_cast %40 : vector<1x4xf32> to vector<4xf32>
    %c0_37 = arith.constant 0 : index
    %c1_38 = arith.constant 1 : index
    %c0_39 = arith.constant 0 : index
    %c0_40 = arith.constant 0 : index
    %42 = vector.load %arg6[%c0_37, %c1_38, %c0_39, %c0_40] : memref<2x18x18x4xf32, #tpu.memory_space<vmem>>, vector<1x16x16x4xf32>
    %43 = vector.shape_cast %42 : vector<1x16x16x4xf32> to vector<16x16x4xf32>
    %44 = vector.shape_cast %41 : vector<4xf32> to vector<1x1x4xf32>
    %45 = vector.broadcast %44 : vector<1x1x4xf32> to vector<16x16x4xf32>
    %46 = arith.mulf %45, %43 : vector<16x16x4xf32>
    %47 = arith.addf %39, %46 : vector<16x16x4xf32>
    %c4 = arith.constant 4 : index
    %c0_41 = arith.constant 0 : index
    %48 = vector.load %arg2[%c4, %c0_41] : memref<18x4xf32, #tpu.memory_space<vmem>>, vector<1x4xf32>
    %49 = vector.shape_cast %48 : vector<1x4xf32> to vector<4xf32>
    %c0_42 = arith.constant 0 : index
    %c1_43 = arith.constant 1 : index
    %c1_44 = arith.constant 1 : index
    %c0_45 = arith.constant 0 : index
    %50 = vector.load %arg6[%c0_42, %c1_43, %c1_44, %c0_45] : memref<2x18x18x4xf32, #tpu.memory_space<vmem>>, vector<1x16x16x4xf32>
    %51 = vector.shape_cast %50 : vector<1x16x16x4xf32> to vector<16x16x4xf32>
    %52 = vector.shape_cast %49 : vector<4xf32> to vector<1x1x4xf32>
    %53 = vector.broadcast %52 : vector<1x1x4xf32> to vector<16x16x4xf32>
    %54 = arith.mulf %53, %51 : vector<16x16x4xf32>
    %55 = arith.addf %47, %54 : vector<16x16x4xf32>
    %c5 = arith.constant 5 : index
    %c0_46 = arith.constant 0 : index
    %56 = vector.load %arg2[%c5, %c0_46] : memref<18x4xf32, #tpu.memory_space<vmem>>, vector<1x4xf32>
    %57 = vector.shape_cast %56 : vector<1x4xf32> to vector<4xf32>
    %c0_47 = arith.constant 0 : index
    %c1_48 = arith.constant 1 : index
    %c2_49 = arith.constant 2 : index
    %c0_50 = arith.constant 0 : index
    %58 = vector.load %arg6[%c0_47, %c1_48, %c2_49, %c0_50] : memref<2x18x18x4xf32, #tpu.memory_space<vmem>>, vector<1x16x16x4xf32>
    %59 = vector.shape_cast %58 : vector<1x16x16x4xf32> to vector<16x16x4xf32>
    %60 = vector.shape_cast %57 : vector<4xf32> to vector<1x1x4xf32>
    %61 = vector.broadcast %60 : vector<1x1x4xf32> to vector<16x16x4xf32>
    %62 = arith.mulf %61, %59 : vector<16x16x4xf32>
    %63 = arith.addf %55, %62 : vector<16x16x4xf32>
    %c6 = arith.constant 6 : index
    %c0_51 = arith.constant 0 : index
    %64 = vector.load %arg2[%c6, %c0_51] : memref<18x4xf32, #tpu.memory_space<vmem>>, vector<1x4xf32>
    %65 = vector.shape_cast %64 : vector<1x4xf32> to vector<4xf32>
    %c0_52 = arith.constant 0 : index
    %c2_53 = arith.constant 2 : index
    %c0_54 = arith.constant 0 : index
    %c0_55 = arith.constant 0 : index
    %66 = vector.load %arg6[%c0_52, %c2_53, %c0_54, %c0_55] : memref<2x18x18x4xf32, #tpu.memory_space<vmem>>, vector<1x16x16x4xf32>
    %67 = vector.shape_cast %66 : vector<1x16x16x4xf32> to vector<16x16x4xf32>
    %68 = vector.shape_cast %65 : vector<4xf32> to vector<1x1x4xf32>
    %69 = vector.broadcast %68 : vector<1x1x4xf32> to vector<16x16x4xf32>
    %70 = arith.mulf %69, %67 : vector<16x16x4xf32>
    %71 = arith.addf %63, %70 : vector<16x16x4xf32>
    %c7 = arith.constant 7 : index
    %c0_56 = arith.constant 0 : index
    %72 = vector.load %arg2[%c7, %c0_56] : memref<18x4xf32, #tpu.memory_space<vmem>>, vector<1x4xf32>
    %73 = vector.shape_cast %72 : vector<1x4xf32> to vector<4xf32>
    %c0_57 = arith.constant 0 : index
    %c2_58 = arith.constant 2 : index
    %c1_59 = arith.constant 1 : index
    %c0_60 = arith.constant 0 : index
    %74 = vector.load %arg6[%c0_57, %c2_58, %c1_59, %c0_60] : memref<2x18x18x4xf32, #tpu.memory_space<vmem>>, vector<1x16x16x4xf32>
    %75 = vector.shape_cast %74 : vector<1x16x16x4xf32> to vector<16x16x4xf32>
    %76 = vector.shape_cast %73 : vector<4xf32> to vector<1x1x4xf32>
    %77 = vector.broadcast %76 : vector<1x1x4xf32> to vector<16x16x4xf32>
    %78 = arith.mulf %77, %75 : vector<16x16x4xf32>
    %79 = arith.addf %71, %78 : vector<16x16x4xf32>
    %c8 = arith.constant 8 : index
    %c0_61 = arith.constant 0 : index
    %80 = vector.load %arg2[%c8, %c0_61] : memref<18x4xf32, #tpu.memory_space<vmem>>, vector<1x4xf32>
    %81 = vector.shape_cast %80 : vector<1x4xf32> to vector<4xf32>
    %c0_62 = arith.constant 0 : index
    %c2_63 = arith.constant 2 : index
    %c2_64 = arith.constant 2 : index
    %c0_65 = arith.constant 0 : index
    %82 = vector.load %arg6[%c0_62, %c2_63, %c2_64, %c0_65] : memref<2x18x18x4xf32, #tpu.memory_space<vmem>>, vector<1x16x16x4xf32>
    %83 = vector.shape_cast %82 : vector<1x16x16x4xf32> to vector<16x16x4xf32>
    %84 = vector.shape_cast %81 : vector<4xf32> to vector<1x1x4xf32>
    %85 = vector.broadcast %84 : vector<1x1x4xf32> to vector<16x16x4xf32>
    %86 = arith.mulf %85, %83 : vector<16x16x4xf32>
    %87 = arith.addf %79, %86 : vector<16x16x4xf32>
    %c9 = arith.constant 9 : index
    %c0_66 = arith.constant 0 : index
    %88 = vector.load %arg2[%c9, %c0_66] : memref<18x4xf32, #tpu.memory_space<vmem>>, vector<1x4xf32>
    %89 = vector.shape_cast %88 : vector<1x4xf32> to vector<4xf32>
    %c1_67 = arith.constant 1 : index
    %c0_68 = arith.constant 0 : index
    %c0_69 = arith.constant 0 : index
    %c0_70 = arith.constant 0 : index
    %90 = vector.load %arg6[%c1_67, %c0_68, %c0_69, %c0_70] : memref<2x18x18x4xf32, #tpu.memory_space<vmem>>, vector<1x16x16x4xf32>
    %91 = vector.shape_cast %90 : vector<1x16x16x4xf32> to vector<16x16x4xf32>
    %92 = vector.shape_cast %89 : vector<4xf32> to vector<1x1x4xf32>
    %93 = vector.broadcast %92 : vector<1x1x4xf32> to vector<16x16x4xf32>
    %94 = arith.mulf %93, %91 : vector<16x16x4xf32>
    %95 = arith.addf %87, %94 : vector<16x16x4xf32>
    %c10 = arith.constant 10 : index
    %c0_71 = arith.constant 0 : index
    %96 = vector.load %arg2[%c10, %c0_71] : memref<18x4xf32, #tpu.memory_space<vmem>>, vector<1x4xf32>
    %97 = vector.shape_cast %96 : vector<1x4xf32> to vector<4xf32>
    %c1_72 = arith.constant 1 : index
    %c0_73 = arith.constant 0 : index
    %c1_74 = arith.constant 1 : index
    %c0_75 = arith.constant 0 : index
    %98 = vector.load %arg6[%c1_72, %c0_73, %c1_74, %c0_75] : memref<2x18x18x4xf32, #tpu.memory_space<vmem>>, vector<1x16x16x4xf32>
    %99 = vector.shape_cast %98 : vector<1x16x16x4xf32> to vector<16x16x4xf32>
    %100 = vector.shape_cast %97 : vector<4xf32> to vector<1x1x4xf32>
    %101 = vector.broadcast %100 : vector<1x1x4xf32> to vector<16x16x4xf32>
    %102 = arith.mulf %101, %99 : vector<16x16x4xf32>
    %103 = arith.addf %95, %102 : vector<16x16x4xf32>
    %c11 = arith.constant 11 : index
    %c0_76 = arith.constant 0 : index
    %104 = vector.load %arg2[%c11, %c0_76] : memref<18x4xf32, #tpu.memory_space<vmem>>, vector<1x4xf32>
    %105 = vector.shape_cast %104 : vector<1x4xf32> to vector<4xf32>
    %c1_77 = arith.constant 1 : index
    %c0_78 = arith.constant 0 : index
    %c2_79 = arith.constant 2 : index
    %c0_80 = arith.constant 0 : index
    %106 = vector.load %arg6[%c1_77, %c0_78, %c2_79, %c0_80] : memref<2x18x18x4xf32, #tpu.memory_space<vmem>>, vector<1x16x16x4xf32>
    %107 = vector.shape_cast %106 : vector<1x16x16x4xf32> to vector<16x16x4xf32>
    %108 = vector.shape_cast %105 : vector<4xf32> to vector<1x1x4xf32>
    %109 = vector.broadcast %108 : vector<1x1x4xf32> to vector<16x16x4xf32>
    %110 = arith.mulf %109, %107 : vector<16x16x4xf32>
    %111 = arith.addf %103, %110 : vector<16x16x4xf32>
    %c12 = arith.constant 12 : index
    %c0_81 = arith.constant 0 : index
    %112 = vector.load %arg2[%c12, %c0_81] : memref<18x4xf32, #tpu.memory_space<vmem>>, vector<1x4xf32>
    %113 = vector.shape_cast %112 : vector<1x4xf32> to vector<4xf32>
    %c1_82 = arith.constant 1 : index
    %c1_83 = arith.constant 1 : index
    %c0_84 = arith.constant 0 : index
    %c0_85 = arith.constant 0 : index
    %114 = vector.load %arg6[%c1_82, %c1_83, %c0_84, %c0_85] : memref<2x18x18x4xf32, #tpu.memory_space<vmem>>, vector<1x16x16x4xf32>
    %115 = vector.shape_cast %114 : vector<1x16x16x4xf32> to vector<16x16x4xf32>
    %116 = vector.shape_cast %113 : vector<4xf32> to vector<1x1x4xf32>
    %117 = vector.broadcast %116 : vector<1x1x4xf32> to vector<16x16x4xf32>
    %118 = arith.mulf %117, %115 : vector<16x16x4xf32>
    %119 = arith.addf %111, %118 : vector<16x16x4xf32>
    %c13 = arith.constant 13 : index
    %c0_86 = arith.constant 0 : index
    %120 = vector.load %arg2[%c13, %c0_86] : memref<18x4xf32, #tpu.memory_space<vmem>>, vector<1x4xf32>
    %121 = vector.shape_cast %120 : vector<1x4xf32> to vector<4xf32>
    %c1_87 = arith.constant 1 : index
    %c1_88 = arith.constant 1 : index
    %c1_89 = arith.constant 1 : index
    %c0_90 = arith.constant 0 : index
    %122 = vector.load %arg6[%c1_87, %c1_88, %c1_89, %c0_90] : memref<2x18x18x4xf32, #tpu.memory_space<vmem>>, vector<1x16x16x4xf32>
    %123 = vector.shape_cast %122 : vector<1x16x16x4xf32> to vector<16x16x4xf32>
    %124 = vector.shape_cast %121 : vector<4xf32> to vector<1x1x4xf32>
    %125 = vector.broadcast %124 : vector<1x1x4xf32> to vector<16x16x4xf32>
    %126 = arith.mulf %125, %123 : vector<16x16x4xf32>
    %127 = arith.addf %119, %126 : vector<16x16x4xf32>
    %c14 = arith.constant 14 : index
    %c0_91 = arith.constant 0 : index
    %128 = vector.load %arg2[%c14, %c0_91] : memref<18x4xf32, #tpu.memory_space<vmem>>, vector<1x4xf32>
    %129 = vector.shape_cast %128 : vector<1x4xf32> to vector<4xf32>
    %c1_92 = arith.constant 1 : index
    %c1_93 = arith.constant 1 : index
    %c2_94 = arith.constant 2 : index
    %c0_95 = arith.constant 0 : index
    %130 = vector.load %arg6[%c1_92, %c1_93, %c2_94, %c0_95] : memref<2x18x18x4xf32, #tpu.memory_space<vmem>>, vector<1x16x16x4xf32>
    %131 = vector.shape_cast %130 : vector<1x16x16x4xf32> to vector<16x16x4xf32>
    %132 = vector.shape_cast %129 : vector<4xf32> to vector<1x1x4xf32>
    %133 = vector.broadcast %132 : vector<1x1x4xf32> to vector<16x16x4xf32>
    %134 = arith.mulf %133, %131 : vector<16x16x4xf32>
    %135 = arith.addf %127, %134 : vector<16x16x4xf32>
    %c15 = arith.constant 15 : index
    %c0_96 = arith.constant 0 : index
    %136 = vector.load %arg2[%c15, %c0_96] : memref<18x4xf32, #tpu.memory_space<vmem>>, vector<1x4xf32>
    %137 = vector.shape_cast %136 : vector<1x4xf32> to vector<4xf32>
    %c1_97 = arith.constant 1 : index
    %c2_98 = arith.constant 2 : index
    %c0_99 = arith.constant 0 : index
    %c0_100 = arith.constant 0 : index
    %138 = vector.load %arg6[%c1_97, %c2_98, %c0_99, %c0_100] : memref<2x18x18x4xf32, #tpu.memory_space<vmem>>, vector<1x16x16x4xf32>
    %139 = vector.shape_cast %138 : vector<1x16x16x4xf32> to vector<16x16x4xf32>
    %140 = vector.shape_cast %137 : vector<4xf32> to vector<1x1x4xf32>
    %141 = vector.broadcast %140 : vector<1x1x4xf32> to vector<16x16x4xf32>
    %142 = arith.mulf %141, %139 : vector<16x16x4xf32>
    %143 = arith.addf %135, %142 : vector<16x16x4xf32>
    %c16_101 = arith.constant 16 : index
    %c0_102 = arith.constant 0 : index
    %144 = vector.load %arg2[%c16_101, %c0_102] : memref<18x4xf32, #tpu.memory_space<vmem>>, vector<1x4xf32>
    %145 = vector.shape_cast %144 : vector<1x4xf32> to vector<4xf32>
    %c1_103 = arith.constant 1 : index
    %c2_104 = arith.constant 2 : index
    %c1_105 = arith.constant 1 : index
    %c0_106 = arith.constant 0 : index
    %146 = vector.load %arg6[%c1_103, %c2_104, %c1_105, %c0_106] : memref<2x18x18x4xf32, #tpu.memory_space<vmem>>, vector<1x16x16x4xf32>
    %147 = vector.shape_cast %146 : vector<1x16x16x4xf32> to vector<16x16x4xf32>
    %148 = vector.shape_cast %145 : vector<4xf32> to vector<1x1x4xf32>
    %149 = vector.broadcast %148 : vector<1x1x4xf32> to vector<16x16x4xf32>
    %150 = arith.mulf %149, %147 : vector<16x16x4xf32>
    %151 = arith.addf %143, %150 : vector<16x16x4xf32>
    %c17 = arith.constant 17 : index
    %c0_107 = arith.constant 0 : index
    %152 = vector.load %arg2[%c17, %c0_107] : memref<18x4xf32, #tpu.memory_space<vmem>>, vector<1x4xf32>
    %153 = vector.shape_cast %152 : vector<1x4xf32> to vector<4xf32>
    %c1_108 = arith.constant 1 : index
    %c2_109 = arith.constant 2 : index
    %c2_110 = arith.constant 2 : index
    %c0_111 = arith.constant 0 : index
    %154 = vector.load %arg6[%c1_108, %c2_109, %c2_110, %c0_111] : memref<2x18x18x4xf32, #tpu.memory_space<vmem>>, vector<1x16x16x4xf32>
    %155 = vector.shape_cast %154 : vector<1x16x16x4xf32> to vector<16x16x4xf32>
    %156 = vector.shape_cast %153 : vector<4xf32> to vector<1x1x4xf32>
    %157 = vector.broadcast %156 : vector<1x1x4xf32> to vector<16x16x4xf32>
    %158 = arith.mulf %157, %155 : vector<16x16x4xf32>
    %159 = arith.addf %151, %158 : vector<16x16x4xf32>
    %c0_112 = arith.constant 0 : index
    %c0_113 = arith.constant 0 : index
    %c0_114 = arith.constant 0 : index
    %c0_115 = arith.constant 0 : index
    %160 = vector.load %arg5[%c0_112, %c0_113, %c0_114, %c0_115] : memref<1x16x16x4xf32, #tpu.memory_space<vmem>>, vector<1x16x16x4xf32>
    %161 = vector.shape_cast %160 : vector<1x16x16x4xf32> to vector<16x16x4xf32>
    %162 = vector.shape_cast %159 : vector<16x16x4xf32> to vector<1x16x16x4xf32>
    tpu.vector_store %arg5[%c0_112, %c0_113, %c0_114, %c0_115], %162 {strides = array<i32>} : memref<1x16x16x4xf32, #tpu.memory_space<vmem>>, vector<1x16x16x4xf32>,
    return
  }
  func.func @transform_0(%arg0: i32, %arg1: i32) -> (i32, i32) {
    %c0_i32 = arith.constant 0 : i32
    %c0_i32_0 = arith.constant 0 : i32
    return %c0_i32, %arg1 : i32, i32
  }
  func.func @transform_1(%arg0: i32, %arg1: i32) -> (i32, i32) {
    %c0_i32 = arith.constant 0 : i32
    %c0_i32_0 = arith.constant 0 : i32
    return %c0_i32, %arg1 : i32, i32
  }
  func.func @transform_2(%arg0: i32, %arg1: i32) -> (i32, i32, i32, i32) {
    %c0_i32 = arith.constant 0 : i32
    %c0_i32_0 = arith.constant 0 : i32
    %c0_i32_1 = arith.constant 0 : i32
    return %arg0, %c0_i32, %c0_i32_0, %arg1 : i32, i32, i32, i32
  }
  func.func @transform_3(%arg0: i32, %arg1: i32) -> (i32, i32, i32, i32) {
    %c0_i32 = arith.constant 0 : i32
    %c0_i32_0 = arith.constant 0 : i32
    %c0_i32_1 = arith.constant 0 : i32
    return %arg0, %c0_i32, %c0_i32_0, %arg1 : i32, i32, i32, i32
  }
}

</mosaic_0001>

<bundles_post_ra>
// kernel: tpu_custom_call.1
= control target key start
LH: loop header
LB: loop body
LE: loop exit
PB: predicated region body
PF: predicated region fallthrough
CT: control target
= control target key end

     0   :  { %s2577_s12 = smov 0   ;;  %s2579_s13 = smov 0   ;;  %s4812_s0 = inlined_call_operand.vmem [shape: f32[18,4], index: 0, kind: input, shape index: {}]   ;;  %s4813_s1 = inlined_call_operand.vmem [shape: f32[1,4], index: 1, kind: input, shape index: {}]   ;;  %s4814_s2 = inlined_call_operand.vmem [shape: f32[2,32,16,4], index: 2, kind: input, shape index: {}]   ;;  %s4815_s3 = inlined_call_operand.vmem [shape: f32[2,16,16,4], index: 3, kind: output, shape index: {}]  }
   0x1   :  { %s2581_s14 = smov 0  }
   0x2 LB: > { %s25_s15 = sadd.s32 1, %s2550_s13  ;;  %p2394_p0 = scmp.ge.s32.totalorder %s2554_s14, 1  ;;  %s2554_s14 = sphi %s2581_s14, %s13_s14   ;;  %s2550_s13 = sphi %s2579_s13, %s4978_s13   ;;  %s2546_s12 = sphi %s2577_s12, %s4977_s12  }
   0x3   : > { %p27_p1 = scmp.ge.s32.totalorder %s25_s15, 2  ;;  %p173_p2 = scmp.lt.s32.totalorder %s2554_s14, 3 }
   0x5   : > { %s4980_s15 = smov (%p27_p1, %s25_s15), 0  ;;  %p174_p3 = pnand %p2394_p0, %p173_p2 }
   0x7   : > { %177 = sbr.rel (%p174_p3) target bundleno = 504 (0x1f8), region = 32 }
   0xc   : > { %vm233_vm0 = vcmask 31744   ;;  %v2556_v0 = vmov 0.0   ;;  %vm236_vm1 = vcmask 25600   ;;  %p217_p4 = scmp.lt.s32.totalorder %s2546_s12, 1  ;;  %v2831_v5 = vld [vmem:[%s4812_s0] ss:$0 sm:$0xff] }
   0xd   : > { %234 = vst.msk [vmem:[#allocation2] sm:$0xff] %vm233_vm0, %v2556_v0  ;;  %v2844_v12 = vld [vmem:[%s4813_s1] ss:$0 sm:$0xff]  ;;  %v2850_v14 = vld [vmem:[%s4812_s0 + $0x1] ss:$0 sm:$0xff] }
   0xe   : > { %235 = vst.msk [vmem:[#allocation2 + $0x8] sm:$0xff] %vm233_vm0, %v2556_v0  ;;  %s4982_s12 = smov (!%p217_p4, %s2546_s12), 1  ;;  %v2860_v19 = vld [vmem:[%s4812_s0 + $0x2] ss:$0 sm:$0xff]  ;;  %v2871_v29 = vld [vmem:[%s4812_s0 + $0x3] ss:$0 sm:$0xff] }
   0xf   : > { %238 = vst.msk [vmem:[#allocation2 + $0x18] sm:$0xff] %vm233_vm0, %v2556_v0  ;;  %s2433_s16 = sshll.u32 %s4982_s12, 9 }
  0x10   : > { %239 = vst.msk [vmem:[#allocation2 + $0x20] sm:$0xff] %vm233_vm0, %v2556_v0  ;;  %s2811_s19 = scalar_lea.vmem %s4814_s2, %s2433_s16 }
  0x11   : > { %241 = vst.msk [vmem:[#allocation2 + $0x30] sm:$0xff] %vm233_vm0, %v2556_v0  ;;  %v343_v1 = vld [vmem:[%s2811_s19] sm:$0xff]  ;;  %v344_v2 = vld [vmem:[%s2811_s19 + $0x8] sm:$0xff]  ;;  %v345_v3 = vld [vmem:[%s2811_s19 + $0x10] sm:$0xff] }
  0x12   : > { %242 = vst.msk [vmem:[#allocation2 + $0x38] sm:$0xff] %vm233_vm0, %v2556_v0  ;;  %v346_v4 = vld [vmem:[%s2811_s19 + $0x18] sm:$0xff]  ;;  %v347_v6 = vld [vmem:[%s2811_s19 + $0x20] sm:$0xff]  ;;  %v348_v8 = vld [vmem:[%s2811_s19 + $0x28] sm:$0xff] }
  0x13   : > { %244 = vst.msk [vmem:[#allocation2 + $0x48] sm:$0xff] %vm233_vm0, %v2556_v0  ;;  %v349_v10 = vld [vmem:[%s2811_s19 + $0x30] sm:$0xff]  ;;  %v350_v11 = vld [vmem:[%s2811_s19 + $0x38] sm:$0xff]  ;;  %v351_v15 = vld [vmem:[%s2811_s19 + $0x40] sm:$0xff] }
  0x14   : > { %245 = vst.msk [vmem:[#allocation2 + $0x50] sm:$0xff] %vm233_vm0, %v2556_v0  ;;  %v479_v7 = vld [vmem:[#allocation2] sm:$0xff]  ;;  %v352_v18 = vld [vmem:[%s2811_s19 + $0x48] sm:$0xff]  ;;  %v353_v22 = vld [vmem:[%s2811_s19 + $0x50] sm:$0xff] }
  0x15   : > { %247 = vst.msk [vmem:[#allocation2 + $0x60] sm:$0xff] %vm233_vm0, %v2556_v0  ;;  %v480_v9 = vld [vmem:[#allocation2 + $0x8] sm:$0xff]  ;;  %v512_v13 = vmul.f32 %v2831_v5, %v479_v7  ;;  %v354_v26 = vld [vmem:[%s2811_s19 + $0x58] sm:$0xff]  ;;  %v355_v31 = vld [vmem:[%s2811_s19 + $0x60] sm:$0xff] }
  0x16   : > { %248 = vst.msk [vmem:[#allocation2 + $0x68] sm:$0xff] %vm233_vm0, %v2556_v0  ;;  %v513_v16 = vmul.f32 %v2831_v5, %v480_v9  ;;  %v577_v17 = vld [vmem:[#allocation2 + $0x1] sm:$0xff]  ;;  %v357_v37 = vld [vmem:[%s2811_s19 + $0x70] sm:$0xff]  ;;  %v358_v40 = vld [vmem:[%s2811_s19 + $0x78] sm:$0xff] }
  0x17   : > { %250 = vst.msk [vmem:[#allocation2 + $0x78] sm:$0xff] %vm233_vm0, %v2556_v0  ;;  %v675_v23 = vld [vmem:[#allocation2 + $0x2] sm:$0xff]  ;;  %v544_v27 = vadd.f32 %v2844_v12, %v512_v13  ;;  %v610_v28 = vmul.f32 %v2850_v14, %v577_v17  ;;  %v361_v59 = vld [vmem:[%s2811_s19 + $0x90] sm:$0xff]  ;;  %v362_v9 = vld [vmem:[%s2811_s19 + $0x98] sm:$0xff] }
  0x18   : > { %251 = vst.msk [vmem:[#allocation2 + $0x80] sm:$0xff] %vm233_vm0, %v2556_v0  ;;  %v545_v32 = vadd.f32 %v2844_v12, %v513_v16  ;;  %v356_v36 = vld [vmem:[%s2811_s19 + $0x68] sm:$0xff]  ;;  %v359_v41 = vld [vmem:[%s2811_s19 + $0x80] sm:$0xff]  ;;  %v2901_v47 = vmul.f32 %v2860_v19, %v675_v23 }
  0x19   : > { %253 = vst.msk [vmem:[#allocation2 + $0x90] sm:$0xff] %vm233_vm0, %v2556_v0  ;;  %v2898_v46 = vadd.f32 %v610_v28, %v544_v27  ;;  %v360_v52 = vld [vmem:[%s2811_s19 + $0x88] sm:$0xff]  ;;  %v363_v17 = vld [vmem:[%s2811_s19 + $0xa0] sm:$0xff] }
  0x1a   : > { %254 = vst.msk [vmem:[#allocation2 + $0x98] sm:$0xff] %vm233_vm0, %v2556_v0 }
  0x1b   : > { %256 = vst.msk [vmem:[#allocation2 + $0xa8] sm:$0xff] %vm233_vm0, %v2556_v0 }
  0x1c   : > { %257 = vst.msk [vmem:[#allocation2 + $0xb0] sm:$0xff] %vm233_vm0, %v2556_v0 }
  0x1d   : > { %259 = vst.msk [vmem:[#allocation2 + $0xc0] sm:$0xff] %vm233_vm0, %v2556_v0 }
  0x1e   : > { %260 = vst.msk [vmem:[#allocation2 + $0xc8] sm:$0xff] %vm233_vm0, %v2556_v0 }
  0x1f   : > { %262 = vst.msk [vmem:[#allocation2 + $0xd8] sm:$0xff] %vm233_vm0, %v2556_v0 }
  0x20   : > { %263 = vst.msk [vmem:[#allocation2 + $0xe0] sm:$0xff] %vm233_vm0, %v2556_v0 }
  0x21   : > { %265 = vst.msk [vmem:[#allocation2 + $0xf0] sm:$0xff] %vm233_vm0, %v2556_v0 }
  0x22   : > { %266 = vst.msk [vmem:[#allocation2 + $0xf8] sm:$0xff] %vm233_vm0, %v2556_v0 }
  0x23   : > { %268 = vst.msk [vmem:[#allocation2 + $0x108] sm:$0xff] %vm233_vm0, %v2556_v0 }
  0x24   : > { %269 = vst.msk [vmem:[#allocation2 + $0x110] sm:$0xff] %vm233_vm0, %v2556_v0 }
  0x25   : > { %271 = vst.msk [vmem:[#allocation2 + $0x120] sm:$0xff] %vm233_vm0, %v2556_v0 }
  0x26   : > { %272 = vst.msk [vmem:[#allocation2 + $0x128] sm:$0xff] %vm233_vm0, %v2556_v0 }
  0x27   : > { %274 = vst.msk [vmem:[#allocation2 + $0x138] sm:$0xff] %vm233_vm0, %v2556_v0 }
  0x28   : > { %275 = vst.msk [vmem:[#allocation2 + $0x140] sm:$0xff] %vm233_vm0, %v2556_v0 }
  0x29   : > { %277 = vst.msk [vmem:[#allocation2 + $0x150] sm:$0xff] %vm233_vm0, %v2556_v0 }
  0x2a   : > { %278 = vst.msk [vmem:[#allocation2 + $0x158] sm:$0xff] %vm233_vm0, %v2556_v0 }
  0x2b   : > { %280 = vst.msk [vmem:[#allocation2 + $0x168] sm:$0xff] %vm233_vm0, %v2556_v0 }
  0x2c   : > { %281 = vst.msk [vmem:[#allocation2 + $0x170] sm:$0xff] %vm233_vm0, %v2556_v0 }
  0x2d   : > { %283 = vst.msk [vmem:[#allocation2 + $0x180] sm:$0xff] %vm233_vm0, %v2556_v0 }
  0x2e   : > { %284 = vst.msk [vmem:[#allocation2 + $0x188] sm:$0xff] %vm233_vm0, %v2556_v0 }
  0x2f   : > { %286 = vst.msk [vmem:[#allocation2 + $0x198] sm:$0xff] %vm233_vm0, %v2556_v0 }
  0x30   : > { %287 = vst.msk [vmem:[#allocation2 + $0x1a0] sm:$0xff] %vm233_vm0, %v2556_v0 }
  0x31   : > { %289 = vst.msk [vmem:[#allocation2 + $0x1b0] sm:$0xff] %vm233_vm0, %v2556_v0 }
  0x32   : > { %290 = vst.msk [vmem:[#allocation2 + $0x1b8] sm:$0xff] %vm233_vm0, %v2556_v0 }
  0x33   : > { %292 = vst.msk [vmem:[#allocation2 + $0x1c8] sm:$0xff] %vm233_vm0, %v2556_v0 }
  0x34   : > { %293 = vst.msk [vmem:[#allocation2 + $0x1d0] sm:$0xff] %vm233_vm0, %v2556_v0 }
  0x35   : > { %295 = vst.msk [vmem:[#allocation2 + $0x1e0] sm:$0xff] %vm233_vm0, %v2556_v0 }
  0x36   : > { %296 = vst.msk [vmem:[#allocation2 + $0x1e8] sm:$0xff] %vm233_vm0, %v2556_v0 }
  0x37   : > { %298 = vst.msk [vmem:[#allocation2 + $0x1f8] sm:$0xff] %vm233_vm0, %v2556_v0 }
  0x38   : > { %299 = vst.msk [vmem:[#allocation2 + $0x200] sm:$0xff] %vm233_vm0, %v2556_v0 }
  0x39   : > { %301 = vst.msk [vmem:[#allocation2 + $0x210] sm:$0xff] %vm233_vm0, %v2556_v0 }
  0x3a   : > { %302 = vst.msk [vmem:[#allocation2 + $0x218] sm:$0xff] %vm233_vm0, %v2556_v0 }
  0x3b   : > { %304 = vst.msk [vmem:[#allocation2 + $0x228] sm:$0xff] %vm233_vm0, %v2556_v0 }
  0x3c   : > { %305 = vst.msk [vmem:[#allocation2 + $0x230] sm:$0xff] %vm233_vm0, %v2556_v0 }
  0x3d   : > { %307 = vst.msk [vmem:[#allocation2 + $0x240] sm:$0xff] %vm233_vm0, %v2556_v0 }
  0x3e   : > { %308 = vst.msk [vmem:[#allocation2 + $0x248] sm:$0xff] %vm233_vm0, %v2556_v0 }
  0x3f   : > { %310 = vst.msk [vmem:[#allocation2 + $0x258] sm:$0xff] %vm233_vm0, %v2556_v0 }
  0x40   : > { %311 = vst.msk [vmem:[#allocation2 + $0x260] sm:$0xff] %vm233_vm0, %v2556_v0 }
  0x41   : > { %313 = vst.msk [vmem:[#allocation2 + $0x270] sm:$0xff] %vm233_vm0, %v2556_v0 }
  0x42   : > { %314 = vst.msk [vmem:[#allocation2 + $0x278] sm:$0xff] %vm233_vm0, %v2556_v0 }
  0x43   : > { %316 = vst.msk [vmem:[#allocation2 + $0x288] sm:$0xff] %vm233_vm0, %v2556_v0 }
  0x44   : > { %317 = vst.msk [vmem:[#allocation2 + $0x290] sm:$0xff] %vm233_vm0, %v2556_v0 }
  0x45   : > { %319 = vst.msk [vmem:[#allocation2 + $0x2a0] sm:$0xff] %vm233_vm0, %v2556_v0 }
  0x46   : > { %320 = vst.msk [vmem:[#allocation2 + $0x2a8] sm:$0xff] %vm233_vm0, %v2556_v0 }
  0x47   : > { %322 = vst.msk [vmem:[#allocation2 + $0x2b8] sm:$0xff] %vm233_vm0, %v2556_v0 }
  0x48   : > { %323 = vst.msk [vmem:[#allocation2 + $0x2c0] sm:$0xff] %vm233_vm0, %v2556_v0 }
  0x49   : > { %325 = vst.msk [vmem:[#allocation2 + $0x2d0] sm:$0xff] %vm233_vm0, %v2556_v0 }
  0x4a   : > { %326 = vst.msk [vmem:[#allocation2 + $0x2d8] sm:$0xff] %vm233_vm0, %v2556_v0 }
  0x4b   : > { %328 = vst.msk [vmem:[#allocation2 + $0x2e8] sm:$0xff] %vm233_vm0, %v2556_v0 }
  0x4c   : > { %329 = vst.msk [vmem:[#allocation2 + $0x2f0] sm:$0xff] %vm233_vm0, %v2556_v0 }
  0x4d   : > { %331 = vst.msk [vmem:[#allocation2 + $0x300] sm:$0xff] %vm233_vm0, %v2556_v0 }
  0x4e   : > { %332 = vst.msk [vmem:[#allocation2 + $0x308] sm:$0xff] %vm233_vm0, %v2556_v0 }
  0x4f   : > { %334 = vst.msk [vmem:[#allocation2 + $0x318] sm:$0xff] %vm233_vm0, %v2556_v0 }
  0x50   : > { %335 = vst.msk [vmem:[#allocation2 + $0x320] sm:$0xff] %vm233_vm0, %v2556_v0 }
  0x51   : > { %337 = vst.msk [vmem:[#allocation2 + $0x330] sm:$0xff] %vm233_vm0, %v2556_v0 }
  0x52   : > { %338 = vst.msk [vmem:[#allocation2 + $0x338] sm:$0xff] %vm233_vm0, %v2556_v0 }
  0x53   : > { %340 = vst.msk [vmem:[#allocation2 + $0x348] sm:$0xff] %vm233_vm0, %v2556_v0 }
  0x54   : > { %341 = vst.msk [vmem:[#allocation2 + $0x350] sm:$0xff] %vm233_vm0, %v2556_v0 }
  0x55   : > { %237 = vst.msk [vmem:[#allocation2 + $0x10] sm:$0x3] %vm236_vm1, %v2556_v0 }
  0x56   : > { %240 = vst.msk [vmem:[#allocation2 + $0x28] sm:$0x3] %vm236_vm1, %v2556_v0 }
  0x57   : > { %243 = vst.msk [vmem:[#allocation2 + $0x40] sm:$0x3] %vm236_vm1, %v2556_v0 }
  0x58   : > { %246 = vst.msk [vmem:[#allocation2 + $0x58] sm:$0x3] %vm236_vm1, %v2556_v0 }
  0x59   : > { %249 = vst.msk [vmem:[#allocation2 + $0x70] sm:$0x3] %vm236_vm1, %v2556_v0 }
  0x5a   : > { %252 = vst.msk [vmem:[#allocation2 + $0x88] sm:$0x3] %vm236_vm1, %v2556_v0 }
  0x5b   : > { %255 = vst.msk [vmem:[#allocation2 + $0xa0] sm:$0x3] %vm236_vm1, %v2556_v0 }
  0x5c   : > { %258 = vst.msk [vmem:[#allocation2 + $0xb8] sm:$0x3] %vm236_vm1, %v2556_v0  ;;  %v578_v20 = vld [vmem:[#allocation2 + $0x9] sm:$0xff] }
  0x5d   : > { %261 = vst.msk [vmem:[#allocation2 + $0xd0] sm:$0x3] %vm236_vm1, %v2556_v0  ;;  %v676_v24 = vld [vmem:[#allocation2 + $0xa] sm:$0xff]  ;;  %v611_v33 = vmul.f32 %v2850_v14, %v578_v20 }
  0x5e   : > { %264 = vst.msk [vmem:[#allocation2 + $0xe8] sm:$0x3] %vm236_vm1, %v2556_v0  ;;  %v2904_v48 = vmul.f32 %v2860_v19, %v676_v24 }
  0x5f   : > { %267 = vst.msk [vmem:[#allocation2 + $0x100] sm:$0x3] %vm236_vm1, %v2556_v0  ;;  %v2912_v53 = vadd.f32 %v611_v33, %v545_v32 }
  0x60   : > { %270 = vst.msk [vmem:[#allocation2 + $0x118] sm:$0x3] %vm236_vm1, %v2556_v0 }
  0x61   : > { %273 = vst.msk [vmem:[#allocation2 + $0x130] sm:$0x3] %vm236_vm1, %v2556_v0 }
  0x62   : > { %276 = vst.msk [vmem:[#allocation2 + $0x148] sm:$0x3] %vm236_vm1, %v2556_v0 }
  0x63   : > { %279 = vst.msk [vmem:[#allocation2 + $0x160] sm:$0x3] %vm236_vm1, %v2556_v0 }
  0x64   : > { %282 = vst.msk [vmem:[#allocation2 + $0x178] sm:$0x3] %vm236_vm1, %v2556_v0 }
  0x65   : > { %285 = vst.msk [vmem:[#allocation2 + $0x190] sm:$0x3] %vm236_vm1, %v2556_v0 }
  0x66   : > { %288 = vst.msk [vmem:[#allocation2 + $0x1a8] sm:$0x3] %vm236_vm1, %v2556_v0 }
  0x67   : > { %291 = vst.msk [vmem:[#allocation2 + $0x1c0] sm:$0x3] %vm236_vm1, %v2556_v0 }
  0x68   : > { %294 = vst.msk [vmem:[#allocation2 + $0x1d8] sm:$0x3] %vm236_vm1, %v2556_v0 }
  0x69   : > { %297 = vst.msk [vmem:[#allocation2 + $0x1f0] sm:$0x3] %vm236_vm1, %v2556_v0 }
  0x6a   : > { %300 = vst.msk [vmem:[#allocation2 + $0x208] sm:$0x3] %vm236_vm1, %v2556_v0 }
  0x6b   : > { %303 = vst.msk [vmem:[#allocation2 + $0x220] sm:$0x3] %vm236_vm1, %v2556_v0 }
  0x6c   : > { %306 = vst.msk [vmem:[#allocation2 + $0x238] sm:$0x3] %vm236_vm1, %v2556_v0 }
  0x6d   : > { %309 = vst.msk [vmem:[#allocation2 + $0x250] sm:$0x3] %vm236_vm1, %v2556_v0 }
  0x6e   : > { %312 = vst.msk [vmem:[#allocation2 + $0x268] sm:$0x3] %vm236_vm1, %v2556_v0 }
  0x6f   : > { %315 = vst.msk [vmem:[#allocation2 + $0x280] sm:$0x3] %vm236_vm1, %v2556_v0 }
  0x70   : > { %318 = vst.msk [vmem:[#allocation2 + $0x298] sm:$0x3] %vm236_vm1, %v2556_v0 }
  0x71   : > { %321 = vst.msk [vmem:[#allocation2 + $0x2b0] sm:$0x3] %vm236_vm1, %v2556_v0 }
  0x72   : > { %324 = vst.msk [vmem:[#allocation2 + $0x2c8] sm:$0x3] %vm236_vm1, %v2556_v0 }
  0x73   : > { %327 = vst.msk [vmem:[#allocation2 + $0x2e0] sm:$0x3] %vm236_vm1, %v2556_v0 }
  0x74   : > { %330 = vst.msk [vmem:[#allocation2 + $0x2f8] sm:$0x3] %vm236_vm1, %v2556_v0 }
  0x75   : > { %333 = vst.msk [vmem:[#allocation2 + $0x310] sm:$0x3] %vm236_vm1, %v2556_v0 }
  0x76   : > { %336 = vst.msk [vmem:[#allocation2 + $0x328] sm:$0x3] %vm236_vm1, %v2556_v0 }
  0x77   : > { %339 = vst.msk [vmem:[#allocation2 + $0x340] sm:$0x3] %vm236_vm1, %v2556_v0 }
  0x78   : > { %342 = vst.msk [vmem:[#allocation2 + $0x358] sm:$0x3] %vm236_vm1, %v2556_v0 }
  0x79   : > { %376 = vst.msk [vmem:[#allocation2 + $0x19] sm:$0xff] %vm233_vm0, %v343_v1 }
  0x7a   : > { %377 = vst.msk [vmem:[#allocation2 + $0x21] sm:$0xff] %vm233_vm0, %v344_v2 }
  0x7b   : > { %378 = vst.msk [vmem:[#allocation2 + $0x31] sm:$0xff] %vm233_vm0, %v345_v3 }
  0x7c   : > { %379 = vst.msk [vmem:[#allocation2 + $0x39] sm:$0xff] %vm233_vm0, %v346_v4 }
  0x7d   : > { %380 = vst.msk [vmem:[#allocation2 + $0x49] sm:$0xff] %vm233_vm0, %v347_v6 }
  0x7e   : > { %381 = vst.msk [vmem:[#allocation2 + $0x51] sm:$0xff] %vm233_vm0, %v348_v8 }
  0x7f   : > { %382 = vst.msk [vmem:[#allocation2 + $0x61] sm:$0xff] %vm233_vm0, %v349_v10 }
  0x80   : > { %v481_v21 = vld [vmem:[#allocation2 + $0x18] sm:$0xff]  ;;  %383 = vst.msk [vmem:[#allocation2 + $0x69] sm:$0xff] %vm233_vm0, %v350_v11 }
  0x81   : > { %v482_v25 = vld [vmem:[#allocation2 + $0x20] sm:$0xff]  ;;  %384 = vst.msk [vmem:[#allocation2 + $0x79] sm:$0xff] %vm233_vm0, %v351_v15  ;;  %v514_v34 = vmul.f32 %v2831_v5, %v481_v21  ;;  %v2918_v56 = vmul.f32 %v2871_v29, %v481_v21 }
  0x82   : > { %v2873_v30 = vld [vmem:[#allocation2 + $0x30] sm:$0xff]  ;;  %385 = vst.msk [vmem:[#allocation2 + $0x81] sm:$0xff] %vm233_vm0, %v352_v18  ;;  %v2885_v38 = vld [vmem:[#allocation2 + $0x19] sm:$0xff]  ;;  %v515_v39 = vmul.f32 %v2831_v5, %v482_v25  ;;  %v2891_v42 = vld [vmem:[#allocation2 + $0x21] sm:$0xff]  ;;  %v2943_v4 = vmul.f32 %v2871_v29, %v482_v25 }
  0x83   : > { %v2880_v35 = vld [vmem:[#allocation2 + $0x38] sm:$0xff]  ;;  %386 = vst.msk [vmem:[#allocation2 + $0x91] sm:$0xff] %vm233_vm0, %v353_v22  ;;  %v516_v44 = vmul.f32 %v2831_v5, %v2873_v30  ;;  %v678_v49 = vld [vmem:[#allocation2 + $0x22] sm:$0xff]  ;;  %v546_v54 = vadd.f32 %v2844_v12, %v514_v34  ;;  %v612_v55 = vmul.f32 %v2850_v14, %v2885_v38  ;;  %v613_v61 = vmul.f32 %v2850_v14, %v2891_v42 }
  0x84   : > { %387 = vst.msk [vmem:[#allocation2 + $0x99] sm:$0xff] %vm233_vm0, %v354_v26  ;;  %v2893_v43 = vld [vmem:[#allocation2 + $0x1a] sm:$0xff]  ;;  %v485_v45 = vld [vmem:[#allocation2 + $0x48] sm:$0xff]  ;;  %v517_v50 = vmul.f32 %v2831_v5, %v2880_v35  ;;  %v2920_v57 = vld [vmem:[#allocation2 + $0x31] sm:$0xff]  ;;  %v547_v60 = vadd.f32 %v2844_v12, %v515_v39  ;;  %v2940_v3 = vmul.f32 %v2860_v19, %v678_v49  ;;  %v2956_v11 = vmul.f32 %v2871_v29, %v2873_v30 }
  0x85   : > { %388 = vst.msk [vmem:[#allocation2 + $0xa9] sm:$0xff] %vm233_vm0, %v355_v31  ;;  %v2908_v51 = vld [vmem:[#allocation2 + $0x50] sm:$0xff]  ;;  %v2922_v58 = vld [vmem:[#allocation2 + $0x39] sm:$0xff]  ;;  %v2931_v62 = vmul.f32 %v2860_v19, %v2893_v43  ;;  %v518_v1 = vmul.f32 %v2831_v5, %v485_v45  ;;  %v548_v6 = vadd.f32 %v2844_v12, %v516_v44  ;;  %v614_v10 = vmul.f32 %v2850_v14, %v2920_v57  ;;  %v364_v18 = vld [vmem:[%s2811_s19 + $0xa8] sm:$0xff] }
  0x86   : > { %389 = vst.msk [vmem:[#allocation2 + $0xb1] sm:$0xff] %vm233_vm0, %v356_v36  ;;  %v2933_v63 = vld [vmem:[#allocation2 + $0x32] sm:$0xff]  ;;  %v2935_v0 = vld [vmem:[#allocation2 + $0x3a] sm:$0xff]  ;;  %v519_v7 = vmul.f32 %v2831_v5, %v2908_v51  ;;  %v549_v13 = vadd.f32 %v2844_v12, %v517_v50  ;;  %v615_v15 = vmul.f32 %v2850_v14, %v2922_v58  ;;  %v2961_v16 = vld [vmem:[#allocation2 + $0x49] sm:$0xff]  ;;  %v2966_v20 = vadd.f32 %v612_v55, %v546_v54 }
  0x87   : > { %390 = vst.msk [vmem:[#allocation2 + $0xc1] sm:$0xff] %vm233_vm0, %v357_v37  ;;  %v487_v2 = vld [vmem:[#allocation2 + $0x60] sm:$0xff]  ;;  %v2948_v8 = vld [vmem:[#allocation2 + $0x68] sm:$0xff]  ;;  %v2970_v21 = vmul.f32 %v2860_v19, %v2933_v63  ;;  %v2974_v22 = vmul.f32 %v2860_v19, %v2935_v0  ;;  %v2976_v23 = vld [vmem:[#allocation2 + $0x51] sm:$0xff]  ;;  %v2980_v27 = vadd.f32 %v613_v61, %v547_v60  ;;  %v2984_v28 = vmul.f32 %v2871_v29, %v2880_v35 }
  0x88   : > { %391 = vst.msk [vmem:[#allocation2 + $0xc9] sm:$0xff] %vm233_vm0, %v358_v40  ;;  %v681_v24 = vld [vmem:[#allocation2 + $0x4a] sm:$0xff]  ;;  %v520_v25 = vmul.f32 %v2831_v5, %v487_v2  ;;  %v489_v26 = vld [vmem:[#allocation2 + $0x78] sm:$0xff]  ;;  %v550_v31 = vadd.f32 %v2844_v12, %v518_v1  ;;  %v521_v33 = vmul.f32 %v2831_v5, %v2948_v8  ;;  %v2993_v37 = vadd.f32 %v614_v10, %v548_v6  ;;  %v585_v44 = vld [vmem:[#allocation2 + $0x61] sm:$0xff] }
  0x89   : > { %392 = vst.msk [vmem:[#allocation2 + $0xd9] sm:$0xff] %vm233_vm0, %v359_v41  ;;  %v682_v32 = vld [vmem:[#allocation2 + $0x52] sm:$0xff]  ;;  %v2989_v34 = vld [vmem:[#allocation2 + $0x80] sm:$0xff]  ;;  %v616_v39 = vmul.f32 %v2850_v14, %v2961_v16  ;;  %v2998_v40 = vmul.f32 %v2871_v29, %v485_v45  ;;  %v551_v41 = vadd.f32 %v2844_v12, %v519_v7  ;;  %v617_v54 = vmul.f32 %v2850_v14, %v2976_v23 }
  0x8a   : > { %393 = vst.msk [vmem:[#allocation2 + $0xe1] sm:$0xff] %vm233_vm0, %v360_v52  ;;  %v365_v36 = vld [vmem:[%s2811_s19 + $0xb0] sm:$0xff]  ;;  %v366_v49 = vld [vmem:[%s2811_s19 + $0xb8] sm:$0xff]  ;;  %v367_v50 = vld [vmem:[%s2811_s19 + $0xc0] sm:$0xff]  ;;  %v3004_v52 = vadd.f32 %v615_v15, %v549_v13  ;;  %v3009_v55 = vmul.f32 %v2860_v19, %v681_v24  ;;  %v522_v45 = vmul.f32 %v2831_v5, %v489_v26  ;;  %v3014_v1 = vmul.f32 %v2860_v19, %v682_v32 }
  0x8b   : > { %4817 = vst [vmem:[#allocation3_spill] sm:$0xff] %v2976_v23  ;;  %v683_v60 = vld [vmem:[#allocation2 + $0x62] sm:$0xff]  ;;  %v491_v61 = vld [vmem:[#allocation2 + $0x90] sm:$0xff]  ;;  %v3018_v6 = vmul.f32 %v2871_v29, %v2908_v51  ;;  %v552_v7 = vadd.f32 %v2844_v12, %v520_v25  ;;  %v523_v10 = vmul.f32 %v2831_v5, %v2989_v34  ;;  %v492_v13 = vld [vmem:[#allocation2 + $0x98] sm:$0xff]  ;;  %v3029_v24 = vmul.f32 %v2871_v29, %v487_v2 }
  0x8c   : > { %394 = vst.msk [vmem:[#allocation2 + $0xf1] sm:$0xff] %vm233_vm0, %v361_v59  ;;  %v586_v59 = vld [vmem:[#allocation2 + $0x69] sm:$0xff]  ;;  %v553_v51 = vadd.f32 %v2844_v12, %v521_v33  ;;  %v587_v32 = vld [vmem:[#allocation2 + $0x79] sm:$0xff] }
  0x8d   : > { %395 = vst.msk [vmem:[#allocation2 + $0xf9] sm:$0xff] %vm233_vm0, %v362_v9  ;;  %v684_v9 = vld [vmem:[#allocation2 + $0x6a] sm:$0xff]  ;;  %v619_v23 = vmul.f32 %v2850_v14, %v586_v59  ;;  %v525_v59 = vmul.f32 %v2831_v5, %v492_v13 }
  0x8e   : > { %396 = vst.msk [vmem:[#allocation2 + $0x109] sm:$0xff] %vm233_vm0, %v363_v17  ;;  %v368_v15 = vld [vmem:[%s2811_s19 + $0xc8] sm:$0xff]  ;;  %v3025_v17 = vadd.f32 %v616_v39, %v550_v31  ;;  %v369_v25 = vld [vmem:[%s2811_s19 + $0xd0] sm:$0xff]  ;;  %v685_v39 = vld [vmem:[#allocation2 + $0x7a] sm:$0xff]  ;;  %v3044_v33 = vmul.f32 %v2860_v19, %v684_v9  ;;  %v555_v9 = vadd.f32 %v2844_v12, %v523_v10  ;;  %v3074_v10 = vmul.f32 %v2871_v29, %v2989_v34 }
  0x8f   : > { %4818 = vst [vmem:[#allocation4_spill] sm:$0xff] %v3009_v55  ;;  %v3035_v55 = vadd.f32 %v617_v54, %v551_v41  ;;  %v588_v31 = vld [vmem:[#allocation2 + $0x81] sm:$0xff]  ;;  %v554_v41 = vadd.f32 %v2844_v12, %v522_v45 }
  0x90   : > { %397 = vst.msk [vmem:[#allocation2 + $0x111] sm:$0xff] %vm233_vm0, %v364_v18  ;;  %v618_v18 = vmul.f32 %v2850_v14, %v585_v44  ;;  %v524_v44 = vmul.f32 %v2831_v5, %v491_v61  ;;  %v493_v2 = vld [vmem:[#allocation2 + $0xa8] sm:$0xff]  ;;  %v621_v45 = vmul.f32 %v2850_v14, %v588_v31 }
  0x91   : > { %4819 = vst [vmem:[#allocation5_spill] sm:$0xff] %v3014_v1  ;;  %v370_v1 = vld [vmem:[%s2811_s19 + $0xd8] sm:$0xff]  ;;  %v686_v54 = vld [vmem:[#allocation2 + $0x82] sm:$0xff] }
  0x92   : > { %4820 = vst [vmem:[#allocation6_spill] sm:$0xff] %v3018_v6  ;;  %v496_v31 = vld [vmem:[#allocation2 + $0xc8] sm:$0xff]  ;;  %v3584_v6 = vld [vmem:[#allocation2 + $0x52] sm:$0xff] }
  0x93   : > { %398 = vst.msk [vmem:[#allocation2 + $0x121] sm:$0xff] %vm233_vm0, %v365_v36  ;;  %v3039_v36 = vmul.f32 %v2860_v19, %v683_v60  ;;  %v494_v60 = vld [vmem:[#allocation2 + $0xb0] sm:$0xff] }
  0x94   : > { %4821 = vst [vmem:[#allocation7_spill] sm:$0xff] %v3025_v17 }
  0x95   : > { %4822 = vst [vmem:[#allocation8_spill] sm:$0xff] %v3029_v24 }
  0x96   : > { %399 = vst.msk [vmem:[#allocation2 + $0x129] sm:$0xff] %vm233_vm0, %v366_v49  ;;  %v3048_v49 = vmul.f32 %v2871_v29, %v2948_v8  ;;  %v3061_v8 = vadd.f32 %v619_v23, %v553_v51  ;;  %v556_v23 = vadd.f32 %v2844_v12, %v524_v44  ;;  %v688_v51 = vld [vmem:[#allocation2 + $0x9a] sm:$0xff] }
  0x97   : > { %4823 = vst [vmem:[#allocation9_spill] sm:$0xff] %v3035_v55  ;;  %v620_v55 = vmul.f32 %v2850_v14, %v587_v32  ;;  %v495_v32 = vld [vmem:[#allocation2 + $0xc0] sm:$0xff] }
  0x98   : > { %4824 = vst [vmem:[#allocation10_spill] sm:$0xff] %v3039_v36  ;;  %v3053_v36 = vadd.f32 %v618_v18, %v552_v7  ;;  %v687_v7 = vld [vmem:[#allocation2 + $0x92] sm:$0xff]  ;;  %v526_v18 = vmul.f32 %v2831_v5, %v493_v2 }
  0x99   : > { %400 = vst.msk [vmem:[#allocation2 + $0x139] sm:$0xff] %vm233_vm0, %v367_v50  ;;  %v3057_v50 = vmul.f32 %v2871_v29, %v489_v26  ;;  %v3070_v26 = vmul.f32 %v2860_v19, %v686_v54  ;;  %v591_v54 = vld [vmem:[#allocation2 + $0xa9] sm:$0xff]  ;;  %v3089_v44 = vmul.f32 %v2860_v19, %v687_v7 }
  0x9a   : > { %4825 = vst [vmem:[#allocation11_spill] sm:$0xff] %v3044_v33  ;;  %v589_v33 = vld [vmem:[#allocation2 + $0x91] sm:$0xff]  ;;  %v624_v7 = vmul.f32 %v2850_v14, %v591_v54 }
  0x9b   : > { %4826 = vst [vmem:[#allocation12_spill] sm:$0xff] %v3048_v49  ;;  %v3065_v49 = vmul.f32 %v2860_v19, %v685_v39  ;;  %v3078_v39 = vadd.f32 %v620_v55, %v554_v41  ;;  %v528_v55 = vmul.f32 %v2831_v5, %v495_v32  ;;  %v497_v41 = vld [vmem:[#allocation2 + $0xd8] sm:$0xff]  ;;  %v499_v54 = vld [vmem:[#allocation2 + $0xf0] sm:$0xff] }
  0x9c   : > { %401 = vst.msk [vmem:[#allocation2 + $0x141] sm:$0xff] %vm233_vm0, %v368_v15  ;;  %v590_v15 = vld [vmem:[#allocation2 + $0x99] sm:$0xff] }
  0x9d   : > { %4827 = vst [vmem:[#allocation13_spill] sm:$0xff] %v3053_v36  ;;  %v623_v34 = vmul.f32 %v2850_v14, %v590_v15  ;;  %v498_v15 = vld [vmem:[#allocation2 + $0xe0] sm:$0xff] }
  0x9e   : > { %4828 = vst [vmem:[#allocation14_spill] sm:$0xff] %v3057_v50  ;;  %v689_v50 = vld [vmem:[#allocation2 + $0xaa] sm:$0xff] }
  0x9f   : > { %402 = vst.msk [vmem:[#allocation2 + $0x151] sm:$0xff] %vm233_vm0, %v369_v25  ;;  %v527_v25 = vmul.f32 %v2831_v5, %v494_v60 }
  0xa0   : > { %4829 = vst [vmem:[#allocation15_spill] sm:$0xff] %v3061_v8  ;;  %v3082_v8 = vmul.f32 %v2871_v29, %v491_v61  ;;  %v3096_v61 = vmul.f32 %v2871_v29, %v492_v13 }
  0xa1   : > { %4830 = vst [vmem:[#allocation16_spill] sm:$0xff] %v3065_v49  ;;  %v622_v49 = vmul.f32 %v2850_v14, %v589_v33  ;;  %v3093_v33 = vmul.f32 %v2860_v19, %v688_v51  ;;  %v593_v51 = vld [vmem:[#allocation2 + $0xc1] sm:$0xff] }
  0xa2   : > { %403 = vst.msk [vmem:[#allocation2 + $0x159] sm:$0xff] %vm233_vm0, %v370_v1  ;;  %v557_v1 = vadd.f32 %v2844_v12, %v525_v59  ;;  %v558_v59 = vadd.f32 %v2844_v12, %v526_v18  ;;  %v3111_v18 = vmul.f32 %v2860_v19, %v689_v50  ;;  %v596_v50 = vld [vmem:[#allocation2 + $0xe1] sm:$0xff] }
  0xa3   : > { %4831 = vst [vmem:[#allocation17_spill] sm:$0xff] %v3070_v26  ;;  %v3085_v26 = vadd.f32 %v621_v45, %v555_v9  ;;  %v690_v9 = vld [vmem:[#allocation2 + $0xb2] sm:$0xff]  ;;  %v529_v45 = vmul.f32 %v2831_v5, %v496_v31 }
  0xa4   : > { %4832 = vst [vmem:[#allocation18_spill] sm:$0xff] %v3074_v10  ;;  %v592_v10 = vld [vmem:[#allocation2 + $0xb1] sm:$0xff] }
  0xa5   : > { %4833 = vst [vmem:[#allocation19_spill] sm:$0xff] %v3078_v39  ;;  %v3107_v39 = vadd.f32 %v623_v34, %v557_v1  ;;  %v625_v13 = vmul.f32 %v2850_v14, %v592_v10  ;;  %v560_v1 = vadd.f32 %v2844_v12, %v528_v55  ;;  %v595_v34 = vld [vmem:[#allocation2 + $0xd9] sm:$0xff]  ;;  %v531_v10 = vmul.f32 %v2831_v5, %v498_v15  ;;  %v372_v55 = vld [vmem:[%s2811_s19 + $0xe8] sm:$0xff] }
  0xa6   : > { %4834 = vst [vmem:[#allocation20_spill] sm:$0xff] %v3082_v8  ;;  %v559_v8 = vadd.f32 %v2844_v12, %v527_v25  ;;  %v3118_v25 = vmul.f32 %v2871_v29, %v494_v60  ;;  %v561_v60 = vadd.f32 %v2844_v12, %v529_v45 }
  0xa7   : > { %4835 = vst [vmem:[#allocation21_spill] sm:$0xff] %v3085_v26  ;;  %v3100_v26 = vadd.f32 %v622_v49, %v556_v23  ;;  %v692_v49 = vld [vmem:[#allocation2 + $0xca] sm:$0xff]  ;;  %v530_v23 = vmul.f32 %v2831_v5, %v497_v41 }
  0xa8   : > { %4836 = vst [vmem:[#allocation22_spill] sm:$0xff] %v3089_v44  ;;  %v3104_v44 = vmul.f32 %v2871_v29, %v493_v2  ;;  %v3115_v2 = vmul.f32 %v2860_v19, %v690_v9  ;;  %v3128_v9 = vmul.f32 %v2871_v29, %v495_v32  ;;  %v373_v32 = vld [vmem:[%s2811_s19 + $0xf0] sm:$0xff]  ;;  %v3146_v45 = vmul.f32 %v2860_v19, %v692_v49 }
  0xa9   : > { %4837 = vst [vmem:[#allocation23_spill] sm:$0xff] %v3093_v33  ;;  %v594_v33 = vld [vmem:[#allocation2 + $0xc9] sm:$0xff]  ;;  %v628_v49 = vmul.f32 %v2850_v14, %v595_v34  ;;  %v503_v34 = vld [vmem:[#allocation2 + $0x120] sm:$0xff] }
  0xaa   : > { %4838 = vst [vmem:[#allocation24_spill] sm:$0xff] %v3096_v61  ;;  %v691_v61 = vld [vmem:[#allocation2 + $0xc2] sm:$0xff]  ;;  %v627_v36 = vmul.f32 %v2850_v14, %v594_v33  ;;  %v562_v33 = vadd.f32 %v2844_v12, %v530_v23  ;;  %v597_v23 = vld [vmem:[#allocation2 + $0xf1] sm:$0xff] }
  0xab   : > { %4839 = vst [vmem:[#allocation25_spill] sm:$0xff] %v3100_v26  ;;  %v3133_v26 = vadd.f32 %v625_v13, %v559_v8  ;;  %v3137_v24 = vmul.f32 %v2860_v19, %v691_v61  ;;  %v3149_v8 = vmul.f32 %v2871_v29, %v496_v31  ;;  %v694_v13 = vld [vmem:[#allocation2 + $0xe2] sm:$0xff]  ;;  %v563_v31 = vadd.f32 %v2844_v12, %v531_v10  ;;  %v2401_v10 = vld [vmem:[%s2811_s19 + $0x110] sm:$0xff] }
  0xac   : > { %4840 = vst [vmem:[#allocation26_spill] sm:$0xff] %v3104_v44  ;;  %v626_v44 = vmul.f32 %v2850_v14, %v593_v51  ;;  %v374_v51 = vld [vmem:[%s2811_s19 + $0xf8] sm:$0xff] }
  0xad   : > { %4841 = vst [vmem:[#allocation27_spill] sm:$0xff] %v3107_v39  ;;  %v3124_v39 = vadd.f32 %v624_v7, %v558_v59  ;;  %v532_v59 = vmul.f32 %v2831_v5, %v499_v54  ;;  %v3140_v7 = vld [vmem:[#allocation2 + $0x108] sm:$0xff] }
  0xae   : > { %4842 = vst [vmem:[#allocation28_spill] sm:$0xff] %v3111_v18  ;;  %v3122_v18 = vld [vmem:[#allocation2 + $0xf8] sm:$0xff] }
  0xaf   : > { %4843 = vst [vmem:[#allocation29_spill] sm:$0xff] %v3115_v2  ;;  %v693_v2 = vld [vmem:[#allocation2 + $0xda] sm:$0xff]  ;;  %v533_v61 = vmul.f32 %v2831_v5, %v3122_v18 }
  0xb0   : > { %4844 = vst [vmem:[#allocation30_spill] sm:$0xff] %v3118_v25  ;;  %v371_v25 = vld [vmem:[%s2811_s19 + $0xe0] sm:$0xff] }
  0xb1   : > { %4845 = vst [vmem:[#allocation31_spill] sm:$0xff] %v3124_v39  ;;  %v3167_v39 = vadd.f32 %v627_v36, %v561_v60  ;;  %v3181_v36 = vmul.f32 %v2871_v29, %v498_v15  ;;  %v696_v60 = vld [vmem:[#allocation2 + $0xfa] sm:$0xff]  ;;  %v565_v15 = vadd.f32 %v2844_v12, %v533_v61  ;;  %v2404_v61 = vld [vmem:[%s2811_s19 + $0x128] sm:$0xff] }
  0xb2   : > { %4846 = vst [vmem:[#allocation32_spill] sm:$0xff] %v3128_v9  ;;  %v2400_v9 = vld [vmem:[%s2811_s19 + $0x108] sm:$0xff] }
  0xb3   : > { %4847 = vst [vmem:[#allocation33_spill] sm:$0xff] %v3133_v26  ;;  %v3158_v26 = vadd.f32 %v626_v44, %v560_v1  ;;  %v3171_v44 = vmul.f32 %v2860_v19, %v693_v2  ;;  %v695_v1 = vld [vmem:[#allocation2 + $0xf2] sm:$0xff] }
  0xb4   : > { %4848 = vst [vmem:[#allocation34_spill] sm:$0xff] %v3137_v24  ;;  %v3154_v24 = vld [vmem:[#allocation2 + $0x110] sm:$0xff] }
  0xb5   : > { %404 = vst.msk [vmem:[#allocation2 + $0x169] sm:$0xff] %vm233_vm0, %v371_v25  ;;  %v2399_v25 = vld [vmem:[%s2811_s19 + $0x100] sm:$0xff]  ;;  %v535_v2 = vmul.f32 %v2831_v5, %v3154_v24 }
  0xb6   : > { %4849 = vst [vmem:[#allocation35_spill] sm:$0xff] %v3146_v45  ;;  %v3162_v45 = vmul.f32 %v2871_v29, %v497_v41  ;;  %v534_v41 = vmul.f32 %v2831_v5, %v3140_v7 }
  0xb7   : > { %4850 = vst [vmem:[#allocation36_spill] sm:$0xff] %v3149_v8  ;;  %v598_v8 = vld [vmem:[#allocation2 + $0xf9] sm:$0xff] }
  0xb8   : > { %405 = vst.msk [vmem:[#allocation2 + $0x171] sm:$0xff] %vm233_vm0, %v372_v55  ;;  %v629_v55 = vmul.f32 %v2850_v14, %v596_v50  ;;  %v564_v50 = vadd.f32 %v2844_v12, %v532_v59  ;;  %v599_v59 = vld [vmem:[#allocation2 + $0x109] sm:$0xff] }
  0xb9   : > { %4851 = vst [vmem:[#allocation37_spill] sm:$0xff] %v3158_v26 }
  0xba   : > { %4852 = vst [vmem:[#allocation38_spill] sm:$0xff] %v3162_v45  ;;  %v2403_v45 = vld [vmem:[%s2811_s19 + $0x120] sm:$0xff]  ;;  %v3201_v26 = vadd.f32 %v629_v55, %v563_v31  ;;  %v698_v31 = vld [vmem:[#allocation2 + $0x112] sm:$0xff] }
  0xbb   : > { %406 = vst.msk [vmem:[#allocation2 + $0x181] sm:$0xff] %vm233_vm0, %v373_v32  ;;  %v3178_v32 = vmul.f32 %v2860_v19, %v694_v13  ;;  %v630_v13 = vmul.f32 %v2850_v14, %v597_v23  ;;  %v697_v23 = vld [vmem:[#allocation2 + $0x10a] sm:$0xff] }
  0xbc   : > { %4853 = vst [vmem:[#allocation39_spill] sm:$0xff] %v3167_v39  ;;  %v2402_v39 = vld [vmem:[%s2811_s19 + $0x118] sm:$0xff] }
  0xbd   : > { %4854 = vst [vmem:[#allocation40_spill] sm:$0xff] %v3171_v44  ;;  %v3186_v44 = vld [vmem:[#allocation2 + $0x128] sm:$0xff] }
  0xbe   : > { %407 = vst.msk [vmem:[#allocation2 + $0x189] sm:$0xff] %vm233_vm0, %v374_v51  ;;  %v3190_v51 = vadd.f32 %v628_v49, %v562_v33  ;;  %v3205_v33 = vmul.f32 %v2860_v19, %v695_v1  ;;  %v600_v49 = vld [vmem:[#allocation2 + $0x111] sm:$0xff]  ;;  %v537_v55 = vmul.f32 %v2831_v5, %v3186_v44  ;;  %v3220_v1 = vld [vmem:[#allocation2 + $0x140] sm:$0xff] }
  0xbf   : > { %4855 = vst [vmem:[#allocation41_spill] sm:$0xff] %v3178_v32  ;;  %v3194_v32 = vmul.f32 %v2871_v29, %v499_v54  ;;  %v536_v54 = vmul.f32 %v2831_v5, %v503_v34 }
  0xc0   : > { %4856 = vst [vmem:[#allocation42_spill] sm:$0xff] %v3181_v36  ;;  %v3197_v36 = vld [vmem:[#allocation2 + $0x138] sm:$0xff] }
  0xc1   : > { %442 = vst.msk [vmem:[#allocation2 + $0x1c9] sm:$0xff] %vm233_vm0, %v2399_v25  ;;  %v631_v25 = vmul.f32 %v2850_v14, %v598_v8  ;;  %v566_v8 = vadd.f32 %v2844_v12, %v534_v41  ;;  %v538_v41 = vmul.f32 %v2831_v5, %v3197_v36 }
  0xc2   : > { %4857 = vst [vmem:[#allocation43_spill] sm:$0xff] %v3190_v51 }
  0xc3   : > { %4858 = vst [vmem:[#allocation44_spill] sm:$0xff] %v3194_v32  ;;  %v3211_v32 = vmul.f32 %v2860_v19, %v696_v60  ;;  %v632_v60 = vmul.f32 %v2850_v14, %v599_v59  ;;  %v3232_v51 = vadd.f32 %v631_v25, %v565_v15  ;;  %v507_v59 = vld [vmem:[#allocation2 + $0x150] sm:$0xff]  ;;  %v3249_v15 = vmul.f32 %v2871_v29, %v3154_v24 }
  0xc4   : > { %443 = vst.msk [vmem:[#allocation2 + $0x1d1] sm:$0xff] %vm233_vm0, %v2400_v9  ;;  %v3215_v9 = vmul.f32 %v2871_v29, %v3122_v18  ;;  %v601_v18 = vld [vmem:[#allocation2 + $0x121] sm:$0xff]  ;;  %v700_v25 = vld [vmem:[#allocation2 + $0x12a] sm:$0xff]  ;;  %v569_v24 = vadd.f32 %v2844_v12, %v537_v55 }
  0xc5   : > { %4859 = vst [vmem:[#allocation45_spill] sm:$0xff] %v3201_v26  ;;  %v2406_v26 = vld [vmem:[%s2811_s19 + $0x138] sm:$0xff] }
  0xc6   : > { %4860 = vst [vmem:[#allocation46_spill] sm:$0xff] %v3205_v33  ;;  %v3224_v33 = vadd.f32 %v630_v13, %v564_v50  ;;  %v633_v50 = vmul.f32 %v2850_v14, %v600_v49  ;;  %v3240_v13 = vmul.f32 %v2860_v19, %v697_v23  ;;  %v539_v49 = vmul.f32 %v2831_v5, %v3220_v1  ;;  %v3254_v23 = vld [vmem:[#allocation2 + $0x158] sm:$0xff] }
  0xc7   : > { %444 = vst.msk [vmem:[#allocation2 + $0x1e1] sm:$0xff] %vm233_vm0, %v2401_v10  ;;  %v2405_v10 = vld [vmem:[%s2811_s19 + $0x130] sm:$0xff] }
  0xc8   : > { %4861 = vst [vmem:[#allocation47_spill] sm:$0xff] %v3211_v32  ;;  %v567_v32 = vadd.f32 %v2844_v12, %v535_v2  ;;  %v699_v2 = vld [vmem:[#allocation2 + $0x122] sm:$0xff] }
  0xc9   : > { %4862 = vst [vmem:[#allocation48_spill] sm:$0xff] %v3215_v9  ;;  %v602_v9 = vld [vmem:[#allocation2 + $0x129] sm:$0xff]  ;;  %v3275_v55 = vmul.f32 %v2860_v19, %v699_v2 }
  0xca   : > { %445 = vst.msk [vmem:[#allocation2 + $0x1e9] sm:$0xff] %vm233_vm0, %v2402_v39  ;;  %v3236_v39 = vmul.f32 %v2871_v29, %v3140_v7  ;;  %v568_v7 = vadd.f32 %v2844_v12, %v536_v54  ;;  %v603_v54 = vld [vmem:[#allocation2 + $0x139] sm:$0xff] }
  0xcb   : > { %4863 = vst [vmem:[#allocation49_spill] sm:$0xff] %v3224_v33  ;;  %v2407_v33 = vld [vmem:[%s2811_s19 + $0x140] sm:$0xff]  ;;  %v636_v2 = vmul.f32 %v2850_v14, %v603_v54 }
  0xcc   : > { %446 = vst.msk [vmem:[#allocation2 + $0x1f9] sm:$0xff] %vm233_vm0, %v2403_v45  ;;  %v3245_v45 = vmul.f32 %v2860_v19, %v698_v31  ;;  %v634_v31 = vmul.f32 %v2850_v14, %v601_v18  ;;  %v540_v18 = vmul.f32 %v2831_v5, %v507_v59 }
  0xcd   : > { %4864 = vst [vmem:[#allocation50_spill] sm:$0xff] %v3232_v51  ;;  %v2409_v51 = vld [vmem:[%s2811_s19 + $0x150] sm:$0xff] }
  0xce   : > { %4865 = vst [vmem:[#allocation51_spill] sm:$0xff] %v3236_v39  ;;  %v3267_v39 = vadd.f32 %v633_v50, %v567_v32  ;;  %v3282_v32 = vmul.f32 %v2871_v29, %v3186_v44  ;;  %v606_v50 = vld [vmem:[#allocation2 + $0x159] sm:$0xff]  ;;  %v571_v44 = vadd.f32 %v2844_v12, %v539_v49  ;;  %v2413_v49 = vld [vmem:[%s2811_s19 + $0x170] sm:$0xff] }
  0xcf   : > { %4866 = vst [vmem:[#allocation52_spill] sm:$0xff] %v3240_v13  ;;  %v3258_v13 = vadd.f32 %v632_v60, %v566_v8  ;;  %v570_v8 = vadd.f32 %v2844_v12, %v538_v41  ;;  %v701_v60 = vld [vmem:[#allocation2 + $0x13a] sm:$0xff]  ;;  %v541_v41 = vmul.f32 %v2831_v5, %v3254_v23 }
  0xd0   : > { %447 = vst.msk [vmem:[#allocation2 + $0x201] sm:$0xff] %vm233_vm0, %v2404_v61  ;;  %v2408_v61 = vld [vmem:[%s2811_s19 + $0x148] sm:$0xff] }
  0xd1   : > { %4867 = vst [vmem:[#allocation53_spill] sm:$0xff] %v3245_v45  ;;  %v3262_v45 = vmul.f32 %v2871_v29, %v503_v34  ;;  %v2410_v34 = vld [vmem:[%s2811_s19 + $0x158] sm:$0xff] }
  0xd2   : > { %4868 = vst [vmem:[#allocation54_spill] sm:$0xff] %v3249_v15  ;;  %v604_v15 = vld [vmem:[#allocation2 + $0x141] sm:$0xff] }
  0xd3   : > { %448 = vst.msk [vmem:[#allocation2 + $0x211] sm:$0xff] %vm233_vm0, %v2405_v10  ;;  %v635_v10 = vmul.f32 %v2850_v14, %v602_v9  ;;  %v605_v9 = vld [vmem:[#allocation2 + $0x151] sm:$0xff] }
  0xd4   : > { %4869 = vst [vmem:[#allocation55_spill] sm:$0xff] %v3258_v13  ;;  %v702_v13 = vld [vmem:[#allocation2 + $0x142] sm:$0xff] }
  0xd5   : > { %4870 = vst [vmem:[#allocation56_spill] sm:$0xff] %v3262_v45  ;;  %v3305_v54 = vmul.f32 %v2860_v19, %v702_v13  ;;  %v638_v13 = vmul.f32 %v2850_v14, %v605_v9  ;;  %v740_v9 = vadd.f32 %v2901_v47, %v2898_v46  ;;  %v2417_v46 = vld [vmem:[%s2811_s19 + $0x190] sm:$0xff]  ;;  %v2418_v47 = vld [vmem:[%s2811_s19 + $0x198] sm:$0xff] }
  0xd6   : > { %449 = vst.msk [vmem:[#allocation2 + $0x219] sm:$0xff] %vm233_vm0, %v2406_v26  ;;  %v3278_v26 = vmul.f32 %v2860_v19, %v700_v25  ;;  %v3293_v25 = vmul.f32 %v2871_v29, %v3197_v36  ;;  %v704_v36 = vld [vmem:[#allocation2 + $0x15a] sm:$0xff]  ;;  %v3543_v45 = vld [vmem:[#allocation2 + $0x1d1] sm:$0xff] }
  0xd7   : > { %4871 = vst [vmem:[#allocation57_spill] sm:$0xff] %v3267_v39  ;;  %v3288_v39 = vadd.f32 %v634_v31, %v568_v7  ;;  %v637_v7 = vmul.f32 %v2850_v14, %v604_v15  ;;  %v3302_v31 = vmul.f32 %v2860_v19, %v701_v60  ;;  %v3318_v15 = vmul.f32 %v2871_v29, %v3220_v1  ;;  %v3322_v60 = vld [vmem:[#allocation2 + $0x170] sm:$0xff] }
  0xd8   : > { %450 = vst.msk [vmem:[#allocation2 + $0x229] sm:$0xff] %vm233_vm0, %v2407_v33  ;;  %v2411_v33 = vld [vmem:[%s2811_s19 + $0x160] sm:$0xff] }
  0xd9   : > { %4872 = vst [vmem:[#allocation58_spill] sm:$0xff] %v3275_v55  ;;  %v509_v55 = vld [vmem:[#allocation2 + $0x168] sm:$0xff] }
  0xda   : > { %4873 = vst [vmem:[#allocation59_spill] sm:$0xff] %v3278_v26  ;;  %v703_v26 = vld [vmem:[#allocation2 + $0x152] sm:$0xff]  ;;  %v542_v1 = vmul.f32 %v2831_v5, %v509_v55 }
  0xdb   : > { %4874 = vst [vmem:[#allocation60_spill] sm:$0xff] %v3282_v32  ;;  %v2412_v32 = vld [vmem:[%s2811_s19 + $0x168] sm:$0xff] }
  0xdc   : > { %451 = vst.msk [vmem:[#allocation2 + $0x231] sm:$0xff] %vm233_vm0, %v2408_v61  ;;  %v3298_v61 = vadd.f32 %v635_v10, %v569_v24  ;;  %v3314_v24 = vadd.f32 %v636_v2, %v570_v8  ;;  %v572_v10 = vadd.f32 %v2844_v12, %v540_v18  ;;  %v573_v8 = vadd.f32 %v2844_v12, %v541_v41  ;;  %v607_v2 = vld [vmem:[#allocation2 + $0x169] sm:$0xff] }
  0xdd   : > { %4875 = vst [vmem:[#allocation61_spill] sm:$0xff] %v3288_v39  ;;  %v2416_v18 = vld [vmem:[%s2811_s19 + $0x188] sm:$0xff]  ;;  %v3345_v41 = vmul.f32 %v2860_v19, %v703_v26  ;;  %v706_v26 = vld [vmem:[#allocation2 + $0x172] sm:$0xff] }
  0xde   : > { %4876 = vst [vmem:[#allocation62_spill] sm:$0xff] %v3293_v25  ;;  %v3535_v39 = vld [vmem:[#allocation2 + $0x1d0] sm:$0xff] }
  0xdf   : > { %452 = vst.msk [vmem:[#allocation2 + $0x241] sm:$0xff] %vm233_vm0, %v2409_v51  ;;  %v3312_v51 = vld [vmem:[%s4812_s0 + $0x4] ss:$0 sm:$0xff] }
  0xe0   : > { %4877 = vst [vmem:[#allocation63_spill] sm:$0xff] %v3298_v61 }
  0xe1   : > { %4878 = vst [vmem:[#allocation64_spill] sm:$0xff] %v3302_v31  ;;  %v3328_v31 = vmul.f32 %v2871_v29, %v507_v59  ;;  %v639_v59 = vmul.f32 %v2850_v14, %v606_v50  ;;  %v543_v50 = vmul.f32 %v2831_v5, %v3322_v60  ;;  %v3372_v5 = vmul.f32 %v2871_v29, %v509_v55 }
  0xe2   : > { %4879 = vst [vmem:[#allocation65_spill] sm:$0xff] %v3305_v54  ;;  %v2415_v54 = vld [vmem:[%s2811_s19 + $0x180] sm:$0xff] }
  0xe3   : > { %453 = vst.msk [vmem:[#allocation2 + $0x249] sm:$0xff] %vm233_vm0, %v2410_v34  ;;  %v2414_v34 = vld [vmem:[%s2811_s19 + $0x178] sm:$0xff] }
  0xe4   : > { %4880 = vst [vmem:[#allocation66_spill] sm:$0xff] %v3314_v24  ;;  %v3341_v24 = vadd.f32 %v637_v7, %v571_v44  ;;  %v705_v44 = vld [vmem:[#allocation2 + $0x16a] sm:$0xff]  ;;  %v838_v7 = vadd.f32 %v2918_v56, %v740_v9  ;;  %v3379_v9 = vadd.f32 %v639_v59, %v573_v8 }
  0xe5   : > { %4881 = vst [vmem:[#allocation67_spill] sm:$0xff] %v3318_v15  ;;  %v3355_v15 = vmul.f32 %v2871_v29, %v3254_v23  ;;  %v3368_v23 = vadd.f32 %v638_v13, %v572_v10  ;;  %v2420_v56 = vld [vmem:[%s2811_s19 + $0x1a8] sm:$0xff]  ;;  %v2421_v10 = vld [vmem:[%s2811_s19 + $0x1b0] sm:$0xff] }
  0xe6   : > { %454 = vst.msk [vmem:[#allocation2 + $0x259] sm:$0xff] %vm233_vm0, %v2411_v33  ;;  %v3339_v33 = vld [vmem:[%s4812_s0 + $0x5] ss:$0 sm:$0xff]  ;;  %v1461_v8 = vld [vmem:[#allocation2 + $0x1b1] sm:$0xff]  ;;  %v3412_v59 = vld [vmem:[%s4812_s0 + $0xa] ss:$0 sm:$0xff] }
  0xe7   : > { %4882 = vst [vmem:[#allocation68_spill] sm:$0xff] %v3328_v31  ;;  %v3348_v31 = vmul.f32 %v2860_v19, %v704_v36  ;;  %v904_v36 = vmul.f32 %v3312_v51, %v2885_v38  ;;  %v741_v38 = vadd.f32 %v2904_v48, %v2912_v53  ;;  %v1002_v55 = vmul.f32 %v3339_v33, %v2893_v43  ;;  %v3394_v48 = vld [vmem:[%s4812_s0 + $0x8] ss:$0 sm:$0xff]  ;;  %v1363_v53 = vld [vmem:[#allocation2 + $0x1b0] sm:$0xff]  ;;  %v2422_v43 = vld [vmem:[%s2811_s19 + $0x1b8] sm:$0xff] }
  0xe8   : > { %455 = vst.msk [vmem:[#allocation2 + $0x261] sm:$0xff] %vm233_vm0, %v2412_v32  ;;  %v608_v32 = vld [vmem:[#allocation2 + $0x171] sm:$0xff] }
  0xe9   : > { %4883 = vst [vmem:[#allocation69_spill] sm:$0xff] %v3341_v24  ;;  %v936_v13 = vadd.f32 %v904_v36, %v838_v7  ;;  %v3421_v7 = vmul.f32 %v2860_v19, %v706_v26  ;;  %v2423_v36 = vld [vmem:[%s2811_s19 + $0x1c0] sm:$0xff]  ;;  %v3456_v26 = vld [vmem:[%s4812_s0 + $0xe] ss:$0 sm:$0xff] }
  0xea   : > { %4884 = vst [vmem:[#allocation70_spill] sm:$0xff] %v3345_v41  ;;  %v803_v41 = vld [vmem:[#allocation2 + $0x180] sm:$0xff] }
  0xeb   : > { %4885 = vst [vmem:[#allocation71_spill] sm:$0xff] %v3348_v31  ;;  %v640_v31 = vmul.f32 %v2850_v14, %v607_v2  ;;  %v3400_v2 = vmul.f32 %v2860_v19, %v705_v44  ;;  %v970_v44 = vld [vmem:[#allocation2 + $0x22] sm:$0xff]  ;;  %v3439_v19 = vmul.f32 %v2871_v29, %v3322_v60  ;;  %v1560_v24 = vld [vmem:[#allocation2 + $0x1ba] sm:$0xff] }
  0xec   : > { %456 = vst.msk [vmem:[#allocation2 + $0x271] sm:$0xff] %vm233_vm0, %v2413_v49  ;;  %v3366_v49 = vld [vmem:[%s4812_s0 + $0x6] ss:$0 sm:$0xff] }
  0xed   : > { %4886 = vst [vmem:[#allocation72_spill] sm:$0xff] %v3355_v15  ;;  %v574_v15 = vadd.f32 %v2844_v12, %v542_v1  ;;  %v3397_v1 = vmul.f32 %v2850_v14, %v608_v32  ;;  %v839_v14 = vadd.f32 %v2943_v4, %v741_v38  ;;  %v905_v32 = vmul.f32 %v3312_v51, %v2891_v42  ;;  %v3430_v4 = vld [vmem:[%s4812_s0 + $0xb] ss:$0 sm:$0xff] }
  0xee   : > { %457 = vst.msk [vmem:[#allocation2 + $0x279] sm:$0xff] %vm233_vm0, %v2414_v34  ;;  %v2419_v34 = vld [vmem:[%s2811_s19 + $0x1a0] sm:$0xff]  ;;  %v3442_v42 = vmul.f32 %v2871_v29, %v803_v41  ;;  %v1003_v29 = vmul.f32 %v3339_v33, %v970_v44 }
  0xef   : > { %4887 = vst [vmem:[#allocation73_spill] sm:$0xff] %v3368_v23  ;;  %v937_v60 = vadd.f32 %v905_v32, %v839_v14  ;;  %v3459_v41 = vadd.f32 %v640_v31, %v574_v15  ;;  %v3473_v14 = vld [vmem:[%s4812_s0 + $0xf] ss:$0 sm:$0xff]  ;;  %v2425_v31 = vld [vmem:[%s2811_s19 + $0x1d0] sm:$0xff]  ;;  %v1102_v32 = vmul.f32 %v3366_v49, %v2880_v35  ;;  %v742_v35 = vadd.f32 %v2931_v62, %v2966_v20  ;;  %v2427_v62 = vld [vmem:[%s2811_s19 + $0x1e0] sm:$0xff] }
  0xf0   : > { %4888 = vst [vmem:[#allocation74_spill] sm:$0xff] %v3372_v5  ;;  %v1559_v5 = vld [vmem:[#allocation2 + $0x1b2] sm:$0xff] }
  0xf1   : > { %458 = vst.msk [vmem:[#allocation2 + $0x289] sm:$0xff] %vm233_vm0, %v2415_v54  ;;  %v3389_v54 = vld [vmem:[%s4812_s0 + $0x7] ss:$0 sm:$0xff]  ;;  %v1592_v44 = vmul.f32 %v3430_v4, %v1559_v5  ;;  %v1462_v23 = vld [vmem:[#allocation2 + $0x1b9] sm:$0xff]  ;;  %v840_v61 = vadd.f32 %v2956_v11, %v742_v35  ;;  %v1070_v11 = vld [vmem:[#allocation2 + $0x48] sm:$0xff] }
  0xf2   : > { %4889 = vst [vmem:[#allocation75_spill] sm:$0xff] %v3379_v9  ;;  %v1101_v9 = vmul.f32 %v3366_v49, %v2873_v30  ;;  %v2424_v30 = vld [vmem:[%s2811_s19 + $0x1c8] sm:$0xff]  ;;  %v1199_v38 = vmul.f32 %v3389_v54, %v2920_v57 }
  0xf3   : > { %459 = vst.msk [vmem:[#allocation2 + $0x291] sm:$0xff] %vm233_vm0, %v2416_v18  ;;  %v3407_v18 = vld [vmem:[%s4812_s0 + $0x9] ss:$0 sm:$0xff] }
  0xf4   : > { %4890 = vst [vmem:[#allocation76_spill] sm:$0xff] %v3397_v1  ;;  %v1396_v15 = vmul.f32 %v3407_v18, %v1363_v53 }
  0xf5   : > { %4891 = vst [vmem:[#allocation77_spill] sm:$0xff] %v3400_v2  ;;  %v1034_v2 = vadd.f32 %v1002_v55, %v936_v13  ;;  %v1297_v13 = vmul.f32 %v3394_v48, %v2933_v63  ;;  %v3466_v55 = vld [vmem:[#allocation2 + $0x1c9] sm:$0xff] }
  0xf6   : > { %460 = vst.msk [vmem:[#allocation2 + $0x2a1] sm:$0xff] %vm233_vm0, %v2417_v46  ;;  %v3418_v46 = vadd.f32 %v2844_v12, %v543_v50  ;;  %v3435_v12 = vld [vmem:[%s4812_s0 + $0xc] ss:$0 sm:$0xff]  ;;  %v3451_v50 = vld [vmem:[%s4812_s0 + $0xd] ss:$0 sm:$0xff] }
  0xf7   : > { %4893 = vst [vmem:[#allocation79_spill] sm:$0xff] %v3421_v7  ;;  %v3468_v7 = vld [vmem:[#allocation2 + $0x1ca] sm:$0xff]  ;;  %v3507_v5 = vmul.f32 %v3451_v50, %v3466_v55 }
  0xf8   : > { %4892 = vst [vmem:[#allocation78_spill] sm:$0xff] %v3418_v46  ;;  %v3484_v63 = vld [vmem:[%s4812_s0 + $0x10] ss:$0 sm:$0xff]  ;;  %v1593_v46 = vmul.f32 %v3430_v4, %v1560_v24 }
  0xf9   : > { %461 = vst.msk [vmem:[#allocation2 + $0x2a9] sm:$0xff] %vm233_vm0, %v2418_v47  ;;  %v3446_v47 = vld [vmem:[#allocation2 + $0x1c8] sm:$0xff] }
  0xfa   : > { %4894 = vst [vmem:[#allocation80_spill] sm:$0xff] %v3439_v19  ;;  %v3492_v53 = vmul.f32 %v3435_v12, %v3446_v47  ;;  %v971_v19 = vld [vmem:[#allocation2 + $0x32] sm:$0xff] }
  0xfb   : > { %4895 = vst [vmem:[#allocation81_spill] sm:$0xff] %v3442_v42  ;;  %v3499_v42 = vld [vmem:[%s4812_s0 + $0x11] ss:$0 sm:$0xff] }
  0xfc   : > { %462 = vst.msk [vmem:[#allocation2 + $0x2b9] sm:$0xff] %vm233_vm0, %v2419_v34  ;;  %v1133_v34 = vadd.f32 %v1101_v9, %v1034_v2  ;;  %v3479_v9 = vld [vmem:[#allocation2 + $0x1e0] sm:$0xff]  ;;  %v1035_v2 = vadd.f32 %v1003_v29, %v937_v60  ;;  %v1364_v60 = vld [vmem:[#allocation2 + $0x1b8] sm:$0xff]  ;;  %v3511_v29 = vmul.f32 %v3456_v26, %v3468_v7 }
  0xfd   : > { %4896 = vst [vmem:[#allocation82_spill] sm:$0xff] %v3459_v41  ;;  %v1200_v41 = vmul.f32 %v3389_v54, %v2922_v58  ;;  %v1397_v25 = vmul.f32 %v3407_v18, %v1364_v60 }
  0xfe   : > { %463 = vst.msk [vmem:[#allocation2 + $0x2c1] sm:$0xff] %vm233_vm0, %v2420_v56  ;;  %v1494_v56 = vmul.f32 %v3412_v59, %v1461_v8  ;;  %v3494_v8 = vld [vmem:[#allocation2 + $0x1e1] sm:$0xff] }
  0xff   : > { %464 = vst.msk [vmem:[#allocation2 + $0x2d1] sm:$0xff] %vm233_vm0, %v2421_v10  ;;  %v1231_v10 = vadd.f32 %v1199_v38, %v1133_v34  ;;  %v3513_v34 = vld [vmem:[#allocation2 + $0x1e2] sm:$0xff]  ;;  %v1134_v38 = vadd.f32 %v1102_v32, %v1035_v2  ;;  %v906_v2 = vmul.f32 %v3312_v51, %v2920_v57  ;;  %v2429_v57 = vld [vmem:[%s2811_s19 + $0x1f0] sm:$0xff] }
 0x100   : > { %465 = vst.msk [vmem:[#allocation2 + $0x2d9] sm:$0xff] %vm233_vm0, %v2422_v43  ;;  %v2426_v43 = vld [vmem:[%s2811_s19 + $0x1d8] sm:$0xff]  ;;  %v2428_v32 = vld [vmem:[%s2811_s19 + $0x1e8] sm:$0xff] }
 0x101   : > { %466 = vst.msk [vmem:[#allocation2 + $0x2e9] sm:$0xff] %vm233_vm0, %v2423_v36  ;;  %v1329_v20 = vadd.f32 %v1297_v13, %v1231_v10  ;;  %v3521_v36 = vmul.f32 %v3473_v14, %v3479_v9  ;;  %v1232_v13 = vadd.f32 %v1200_v41, %v1134_v38  ;;  %v1298_v10 = vmul.f32 %v3394_v48, %v2935_v0  ;;  %v2430_v0 = vld [vmem:[%s2811_s19 + $0x1f8] sm:$0xff]  ;;  %s2434_s19 = sshll.u32 %s4982_s12, 8 }
 0x102   : > { %467 = vst.msk [vmem:[#allocation2 + $0x2f1] sm:$0xff] %vm233_vm0, %v2424_v30  ;;  %v3530_v30 = vmul.f32 %v3484_v63, %v3494_v8  ;;  %v938_v1 = vadd.f32 %v906_v2, %v840_v61  ;;  %v1004_v41 = vmul.f32 %v3339_v33, %v971_v19  ;;  %v1495_v38 = vmul.f32 %v3412_v59, %v1462_v23  ;;  %v3557_v19 = vld [vmem:[#allocation2 + $0x1e8] sm:$0xff]  ;;  %v972_v23 = vld [vmem:[#allocation2 + $0x3a] sm:$0xff]  ;;  %s3617_s10 = scalar_lea.vmem %s4815_s3, %s2434_s19 }
 0x103   : > { %468 = vst.msk [vmem:[#allocation2 + $0x301] sm:$0xff] %vm233_vm0, %v2425_v31  ;;  %v1428_v35 = vadd.f32 %v1396_v15, %v1329_v20  ;;  %v3541_v31 = vmul.f32 %v3499_v42, %v3513_v34  ;;  %v1330_v60 = vadd.f32 %v1298_v10, %v1232_v13  ;;  %v1168_v15 = vld [vmem:[#allocation2 + $0x49] sm:$0xff]  ;;  %v743_v20 = vadd.f32 %v2940_v3, %v2980_v27 }
 0x104   : > { %469 = vst.msk [vmem:[#allocation2 + $0x309] sm:$0xff] %vm233_vm0, %v2426_v43  ;;  %v3550_v43 = vld [vmem:[#allocation2 + $0x1d2] sm:$0xff]  ;;  %v1691_v61 = vmul.f32 %v3435_v12, %v3535_v39  ;;  %v1103_v2 = vmul.f32 %v3366_v49, %v1070_v11  ;;  %v1789_v13 = vmul.f32 %v3451_v50, %v3543_v45  ;;  %v1266_v10 = vld [vmem:[#allocation2 + $0x4a] sm:$0xff]  ;;  %v907_v27 = vmul.f32 %v3312_v51, %v2922_v58 }
 0x105   : > { %470 = vst.msk [vmem:[#allocation2 + $0x319] sm:$0xff] %vm233_vm0, %v2427_v62  ;;  %v1526_v17 = vadd.f32 %v1494_v56, %v1428_v35  ;;  %v1036_v62 = vadd.f32 %v1004_v41, %v938_v1  ;;  %v1429_v24 = vadd.f32 %v1397_v25, %v1330_v60  ;;  %v841_v3 = vadd.f32 %v2984_v28, %v743_v20  ;;  %v3574_v28 = vld [vmem:[#allocation2 + $0x1ea] sm:$0xff] }
 0x106   : > { %471 = vst.msk [vmem:[#allocation2 + $0x321] sm:$0xff] %vm233_vm0, %v2428_v32  ;;  %v1887_v1 = vmul.f32 %v3456_v26, %v3550_v43  ;;  %v3569_v32 = vld [vmem:[#allocation2 + $0x1e9] sm:$0xff]  ;;  %v1201_v25 = vmul.f32 %v3389_v54, %v1168_v15  ;;  %v1986_v41 = vmul.f32 %v3473_v14, %v3557_v19  ;;  %v1005_v58 = vmul.f32 %v3339_v33, %v972_v23 }
 0x107   : > { %472 = vst.msk [vmem:[#allocation2 + $0x331] sm:$0xff] %vm233_vm0, %v2429_v57  ;;  %v1624_v56 = vadd.f32 %v1592_v44, %v1526_v17  ;;  %v1135_v11 = vadd.f32 %v1103_v2, %v1036_v62  ;;  %v1071_v57 = vld [vmem:[#allocation2 + $0x50] sm:$0xff]  ;;  %v1527_v35 = vadd.f32 %v1495_v38, %v1429_v24  ;;  %v939_v60 = vadd.f32 %v907_v27, %v841_v3 }
 0x108   : > { %473 = vst.msk [vmem:[#allocation2 + $0x339] sm:$0xff] %vm233_vm0, %v2430_v0  ;;  %v1299_v0 = vmul.f32 %v3394_v48, %v1266_v10  ;;  %v1398_v20 = vmul.f32 %v3407_v18, %v3446_v47  ;;  %v1169_v62 = vld [vmem:[#allocation2 + $0x51] sm:$0xff]  ;;  %v2084_v38 = vmul.f32 %v3484_v63, %v3569_v32  ;;  %v1104_v24 = vmul.f32 %v3366_v49, %v1071_v57 }
 0x109   : > { %v1722_v17 = vadd.f32 %v3492_v53, %v1624_v56  ;;  %v1233_v44 = vadd.f32 %v1201_v25, %v1135_v11  ;;  %v1625_v15 = vadd.f32 %v1593_v46, %v1527_v35  ;;  %v1037_v2 = vadd.f32 %v1005_v58, %v939_v60 }
 0x10a   : > { %v2182_v53 = vmul.f32 %v3499_v42, %v3574_v28  ;;  %v1496_v47 = vmul.f32 %v3412_v59, %v3466_v55  ;;  %v1202_v56 = vmul.f32 %v3389_v54, %v1169_v62  ;;  %v744_v11 = vadd.f32 %v2970_v21, %v2993_v37 }
 0x10b   : > { %v1820_v23 = vadd.f32 %v3507_v5, %v1722_v17  ;;  %v1331_v3 = vadd.f32 %v1299_v0, %v1233_v44  ;;  %v1723_v27 = vadd.f32 %v1691_v61, %v1625_v15  ;;  %v1136_v46 = vadd.f32 %v1104_v24, %v1037_v2  ;;  %v1072_v44 = vld [vmem:[#allocation2 + $0x60] sm:$0xff] }
 0x10c   : > { %v1300_v5 = vmul.f32 %v3394_v48, %v3584_v6  ;;  %v1399_v35 = vmul.f32 %v3407_v18, %v3535_v39  ;;  %v842_v55 = vadd.f32 %v2998_v40, %v744_v11  ;;  %v908_v61 = vmul.f32 %v3312_v51, %v2961_v16  ;;  %v1170_v15 = vld [vmem:[#allocation2 + $0x61] sm:$0xff] }
 0x10d   : > { %v1918_v25 = vadd.f32 %v3511_v29, %v1820_v23  ;;  %v1430_v57 = vadd.f32 %v1398_v20, %v1331_v3  ;;  %v1821_v60 = vadd.f32 %v1789_v13, %v1723_v27  ;;  %v1234_v58 = vadd.f32 %v1202_v56, %v1136_v46  ;;  %v3627_v27 = vld [vmem:[#allocation2 + $0x1f8] sm:$0xff] }
 0x10e   : > { %v1594_v37 = vmul.f32 %v3430_v4, %v3468_v7  ;;  %v1692_v29 = vmul.f32 %v3435_v12, %v3479_v9  ;;  %v940_v13 = vadd.f32 %v908_v61, %v842_v55  ;;  %v1006_v20 = vmul.f32 %v3339_v33, %v1266_v10 }
 0x10f   : > { %v2017_v17 = vadd.f32 %v3521_v36, %v1918_v25  ;;  %v1528_v21 = vadd.f32 %v1496_v47, %v1430_v57  ;;  %v1919_v0 = vadd.f32 %v1887_v1, %v1821_v60  ;;  %v1332_v39 = vadd.f32 %v1300_v5, %v1234_v58  ;;  %v3632_v25 = vld [vmem:[#allocation2 + $0x1f9] sm:$0xff] }
 0x110   : > { %v1790_v16 = vmul.f32 %v3451_v50, %v3494_v8  ;;  %v1497_v36 = vmul.f32 %v3412_v59, %v3543_v45  ;;  %v1038_v2 = vadd.f32 %v1006_v20, %v940_v13  ;;  %v1105_v10 = vmul.f32 %v3366_v49, %v1072_v44  ;;  %v3640_v5 = vld [vmem:[#allocation2 + $0x1fa] sm:$0xff] }
 0x111   : > { %v2115_v40 = vadd.f32 %v3530_v30, %v2017_v17  ;;  %v1626_v62 = vadd.f32 %v1594_v37, %v1528_v21  ;;  %v2018_v7 = vadd.f32 %v1986_v41, %v1919_v0  ;;  %v1431_v1 = vadd.f32 %v1399_v35, %v1332_v39  ;;  %v3620_v30 = vld [vmem:[#allocation2 + $0x62] sm:$0xff]  ;;  %v4897_v17 = vld [vmem:[#allocation6_spill] sm:$0xff] }
 0x112   : > { %v1888_v45 = vmul.f32 %v3456_v26, %v3513_v34  ;;  %v1595_v3 = vmul.f32 %v3430_v4, %v3550_v43  ;;  %v1137_v41 = vadd.f32 %v1105_v10, %v1038_v2  ;;  %v1203_v56 = vmul.f32 %v3389_v54, %v1170_v15  ;;  %v4898_v37 = vld [vmem:[#allocation3_spill] sm:$0xff]  ;;  %v1073_v0 = vld [vmem:[#allocation2 + $0x68] sm:$0xff] }
 0x113   : > { %v2213_v24 = vadd.f32 %v3541_v31, %v2115_v40  ;;  %v1724_v23 = vadd.f32 %v1692_v29, %v1626_v62  ;;  %v2116_v47 = vadd.f32 %v2084_v38, %v2018_v7  ;;  %v1529_v46 = vadd.f32 %v1497_v36, %v1431_v1  ;;  %v3655_v44 = vld [vmem:[#allocation2 + $0x200] sm:$0xff]  ;;  %v1171_v1 = vld [vmem:[#allocation2 + $0x69] sm:$0xff] }
 0x114   : > { %v1693_v31 = vmul.f32 %v3435_v12, %v3557_v19  ;;  %v1301_v57 = vmul.f32 %v3394_v48, %v3620_v30  ;;  %v745_v43 = vadd.f32 %v2974_v22, %v3004_v52  ;;  %v1235_v60 = vadd.f32 %v1203_v56, %v1137_v41  ;;  %v3659_v20 = vld [vmem:[#allocation2 + $0x201] sm:$0xff] }
 0x115   : > { %2245 = vst.msk [vmem:[%s3617_s10] sm:$0xff] %vm233_vm0, %v2213_v24  ;;  %v1822_v11 = vadd.f32 %v1790_v16, %v1724_v23  ;;  %v2214_v38 = vadd.f32 %v2182_v53, %v2116_v47  ;;  %v1627_v35 = vadd.f32 %v1595_v3, %v1529_v46  ;;  %v1400_v58 = vmul.f32 %v3407_v18, %v3479_v9  ;;  %v3676_v41 = vld [vmem:[#allocation2 + $0x202] sm:$0xff] }
 0x116   : > { %v1987_v61 = vmul.f32 %v3473_v14, %v3627_v27  ;;  %v843_v21 = vadd.f32 %v4897_v17, %v745_v43  ;;  %v909_v29 = vmul.f32 %v3312_v51, %v4898_v37  ;;  %v2085_v22 = vmul.f32 %v3484_v63, %v3632_v25 }
 0x117   : > { %v1920_v55 = vadd.f32 %v1888_v45, %v1822_v11  ;;  %2246 = vst.msk [vmem:[%s3617_s10 + $0x8] sm:$0xff] %vm233_vm0, %v2214_v38  ;;  %v1725_v52 = vadd.f32 %v1693_v31, %v1627_v35  ;;  %v1791_v53 = vmul.f32 %v3451_v50, %v3569_v32  ;;  %v1333_v9 = vadd.f32 %v1301_v57, %v1235_v60  ;;  %v3670_v45 = vld [vmem:[#allocation2 + $0x6a] sm:$0xff]  ;;  %v4899_v31 = vld [vmem:[#allocation7_spill] sm:$0xff] }
 0x118   : > { %v2183_v13 = vmul.f32 %v3499_v42, %v3640_v5  ;;  %v941_v40 = vadd.f32 %v909_v29, %v843_v21  ;;  %v1007_v62 = vmul.f32 %v3339_v33, %v3584_v6  ;;  %v1889_v36 = vmul.f32 %v3456_v26, %v3574_v28  ;;  %v4900_v57 = vld [vmem:[#allocation4_spill] sm:$0xff] }
 0x119   : > { %v2019_v39 = vadd.f32 %v1987_v61, %v1920_v55  ;;  %v1823_v16 = vadd.f32 %v1791_v53, %v1725_v52  ;;  %v1432_v15 = vadd.f32 %v1400_v58, %v1333_v9  ;;  %v1498_v7 = vmul.f32 %v3412_v59, %v3494_v8  ;;  %v3689_v55 = vld [vmem:[#allocation2 + $0x211] sm:$0xff]  ;;  %v4901_v21 = vld [vmem:[#allocation8_spill] sm:$0xff] }
 0x11a   : > { %v1988_v10 = vmul.f32 %v3473_v14, %v3655_v44  ;;  %v1039_v24 = vadd.f32 %v1007_v62, %v941_v40  ;;  %v1106_v23 = vmul.f32 %v3366_v49, %v1073_v0  ;;  %v2086_v3 = vmul.f32 %v3484_v63, %v3659_v20  ;;  %v2479_v29 = vld [vmem:[#allocation2 + $0x61] sm:$0xff]  ;;  %v3701_v40 = vld [vmem:[#allocation2 + $0x212] sm:$0xff] }
 0x11b   : > { %v2117_v2 = vadd.f32 %v2085_v22, %v2019_v39  ;;  %v1921_v6 = vadd.f32 %v1889_v36, %v1823_v16  ;;  %v1530_v47 = vadd.f32 %v1498_v7, %v1432_v15  ;;  %v1596_v46 = vmul.f32 %v3430_v4, %v3513_v34  ;;  %v3687_v34 = vld [vmem:[#allocation2 + $0x210] sm:$0xff]  ;;  %v1074_v39 = vld [vmem:[#allocation2 + $0x78] sm:$0xff] }
 0x11c   : > { %v1138_v56 = vadd.f32 %v1106_v23, %v1039_v24  ;;  %v1204_v11 = vmul.f32 %v3389_v54, %v1171_v1  ;;  %v746_v43 = vadd.f32 %v4900_v57, %v4899_v31  ;;  %v1694_v60 = vmul.f32 %v3435_v12, %v3627_v27 }
 0x11d   : > { %v2215_v8 = vadd.f32 %v2183_v13, %v2117_v2  ;;  %v2020_v38 = vadd.f32 %v1988_v10, %v1921_v6  ;;  %v1628_v35 = vadd.f32 %v1596_v46, %v1530_v47  ;;  %v1302_v58 = vmul.f32 %v3394_v48, %v3670_v45  ;;  %v1172_v2 = vld [vmem:[#allocation2 + $0x79] sm:$0xff] }
 0x11e   : > { %v1236_v61 = vadd.f32 %v1204_v11, %v1138_v56  ;;  %v1401_v17 = vmul.f32 %v3407_v18, %v3557_v19  ;;  %v844_v37 = vadd.f32 %v4901_v21, %v746_v43  ;;  %v910_v22 = vmul.f32 %v2479_v29, %v3312_v51  ;;  %v1270_v46 = vld [vmem:[#allocation2 + $0x7a] sm:$0xff]  ;;  %v4903_v56 = vld [vmem:[#allocation5_spill] sm:$0xff] }
 0x11f   : > { %2247 = vst.msk [vmem:[%s3617_s10 + $0x10] sm:$0xff] %vm233_vm0, %v2215_v8  ;;  %v2118_v52 = vadd.f32 %v2086_v3, %v2020_v38  ;;  %v2184_v53 = vmul.f32 %v3499_v42, %v3676_v41  ;;  %v1726_v9 = vadd.f32 %v1694_v60, %v1628_v35  ;;  %v1792_v0 = vmul.f32 %v3451_v50, %v3632_v25  ;;  %v4902_v8 = vld [vmem:[#allocation9_spill] sm:$0xff]  ;;  %v3725_v60 = vld [vmem:[#allocation2 + $0x218] sm:$0xff] }
 0x120   : > { %v1890_v13 = vmul.f32 %v3456_v26, %v3640_v5  ;;  %v1334_v19 = vadd.f32 %v1302_v58, %v1236_v61  ;;  %v942_v62 = vadd.f32 %v910_v22, %v844_v37  ;;  %v1008_v16 = vmul.f32 %v3339_v33, %v3620_v30  ;;  %v3727_v58 = vld [vmem:[#allocation2 + $0x219] sm:$0xff] }
 0x121   : > { %v2216_v36 = vadd.f32 %v2184_v53, %v2118_v52  ;;  %v1824_v15 = vadd.f32 %v1792_v0, %v1726_v9  ;;  %v1989_v7 = vmul.f32 %v3473_v14, %v3687_v34  ;;  %v2087_v1 = vmul.f32 %v3484_v63, %v3689_v55  ;;  %v3731_v29 = vld [vmem:[#allocation2 + $0x21a] sm:$0xff] }
 0x122   : > { %v1433_v10 = vadd.f32 %v1401_v17, %v1334_v19  ;;  %v1499_v24 = vmul.f32 %v3412_v59, %v3569_v32  ;;  %v1040_v23 = vadd.f32 %v1008_v16, %v942_v62  ;;  %v1107_v6 = vmul.f32 %v3366_v49, %v1074_v39  ;;  %v2480_v17 = vld [vmem:[#allocation2 + $0x69] sm:$0xff]  ;;  %v1075_v9 = vld [vmem:[#allocation2 + $0x80] sm:$0xff] }
 0x123   : > { %2248 = vst.msk [vmem:[%s3617_s10 + $0x18] sm:$0xff] %vm233_vm0, %v2216_v36  ;;  %v1922_v3 = vadd.f32 %v1890_v13, %v1824_v15  ;;  %v2185_v30 = vmul.f32 %v3499_v42, %v3701_v40  ;;  %v1597_v47 = vmul.f32 %v3430_v4, %v3574_v28  ;;  %v747_v11 = vadd.f32 %v4903_v56, %v4902_v8  ;;  %v4904_v28 = vld [vmem:[#allocation12_spill] sm:$0xff] }
 0x124   : > { %v1531_v31 = vadd.f32 %v1499_v24, %v1433_v10  ;;  %v1695_v32 = vmul.f32 %v3435_v12, %v3655_v44  ;;  %v1139_v57 = vadd.f32 %v1107_v6, %v1040_v23  ;;  %v1205_v43 = vmul.f32 %v3389_v54, %v1172_v2  ;;  %v1271_v6 = vld [vmem:[#allocation2 + $0x82] sm:$0xff] }
 0x125   : > { %v2021_v38 = vadd.f32 %v1989_v7, %v1922_v3  ;;  %v1793_v35 = vmul.f32 %v3451_v50, %v3659_v20  ;;  %v845_v61 = vadd.f32 %v4904_v28, %v747_v11  ;;  %v911_v21 = vmul.f32 %v2480_v17, %v3312_v51  ;;  %v1173_v7 = vld [vmem:[#allocation2 + $0x81] sm:$0xff]  ;;  %v4905_v3 = vld [vmem:[#allocation13_spill] sm:$0xff]  ;;  %v2481_v28 = vld [vmem:[#allocation2 + $0x79] sm:$0xff] }
 0x126   : > { %v1629_v37 = vadd.f32 %v1597_v47, %v1531_v31  ;;  %v1237_v22 = vadd.f32 %v1205_v43, %v1139_v57  ;;  %v1303_v52 = vmul.f32 %v3394_v48, %v1270_v46  ;;  %v1402_v53 = vmul.f32 %v3407_v18, %v3627_v27  ;;  %v4906_v47 = vld [vmem:[#allocation10_spill] sm:$0xff]  ;;  %v3758_v43 = vld [vmem:[#allocation2 + $0x228] sm:$0xff] }
 0x127   : > { %v2119_v0 = vadd.f32 %v2087_v1, %v2021_v38  ;;  %v1891_v39 = vmul.f32 %v3456_v26, %v3676_v41  ;;  %v943_v13 = vadd.f32 %v911_v21, %v845_v61  ;;  %v1009_v19 = vmul.f32 %v3339_v33, %v3670_v45  ;;  %v4907_v38 = vld [vmem:[#allocation14_spill] sm:$0xff] }
 0x128   : > { %v1727_v62 = vadd.f32 %v1695_v32, %v1629_v37  ;;  %v1990_v16 = vmul.f32 %v3473_v14, %v3725_v60  ;;  %v2088_v36 = vmul.f32 %v3484_v63, %v3727_v58  ;;  %v1335_v15 = vadd.f32 %v1303_v52, %v1237_v22  ;;  %v1076_v22 = vld [vmem:[#allocation2 + $0x90] sm:$0xff] }
 0x129   : > { %v2217_v27 = vadd.f32 %v2185_v30, %v2119_v0  ;;  %v2186_v1 = vmul.f32 %v3499_v42, %v3731_v29  ;;  %v1041_v2 = vadd.f32 %v1009_v19, %v943_v13  ;;  %v1108_v10 = vmul.f32 %v3366_v49, %v1075_v9  ;;  %v3769_v9 = vld [vmem:[#allocation2 + $0x22a] sm:$0xff] }
 0x12a   : > { %v1825_v24 = vadd.f32 %v1793_v35, %v1727_v62  ;;  %v1434_v23 = vadd.f32 %v1402_v53, %v1335_v15  ;;  %v1500_v45 = vmul.f32 %v3412_v59, %v3632_v25  ;;  %v748_v8 = vadd.f32 %v4906_v47, %v4905_v3  ;;  %v3760_v25 = vld [vmem:[#allocation2 + $0x229] sm:$0xff]  ;;  %v4909_v3 = vld [vmem:[#allocation11_spill] sm:$0xff] }
 0x12b   : > { %2249 = vst.msk [vmem:[%s3617_s10 + $0x20] sm:$0xff] %vm233_vm0, %v2217_v27  ;;  %v1598_v30 = vmul.f32 %v3430_v4, %v3640_v5  ;;  %v1696_v56 = vmul.f32 %v3435_v12, %v3687_v34  ;;  %v1140_v11 = vadd.f32 %v1108_v10, %v1041_v2  ;;  %v1206_v31 = vmul.f32 %v3389_v54, %v1173_v7  ;;  %v1174_v7 = vld [vmem:[#allocation2 + $0x91] sm:$0xff] }
 0x12c   : > { %v1923_v32 = vadd.f32 %v1891_v39, %v1825_v24  ;;  %v1532_v57 = vadd.f32 %v1500_v45, %v1434_v23  ;;  %v846_v35 = vadd.f32 %v4907_v38, %v748_v8  ;;  %v912_v61 = vmul.f32 %v2481_v28, %v3312_v51  ;;  %v1272_v23 = vld [vmem:[#allocation2 + $0x92] sm:$0xff]  ;;  %v4908_v45 = vld [vmem:[#allocation15_spill] sm:$0xff] }
 0x12d   : > { %v1794_v5 = vmul.f32 %v3451_v50, %v3689_v55  ;;  %v1238_v17 = vadd.f32 %v1206_v31, %v1140_v11  ;;  %v1304_v21 = vmul.f32 %v3394_v48, %v1271_v6  ;;  %v1403_v37 = vmul.f32 %v3407_v18, %v3655_v44  ;;  %v2482_v38 = vld [vmem:[#allocation2 + $0x81] sm:$0xff]  ;;  %v3792_v28 = vld [vmem:[#allocation2 + $0x230] sm:$0xff] }
 0x12e   : > { %v2022_v52 = vadd.f32 %v1990_v16, %v1923_v32  ;;  %v1630_v53 = vadd.f32 %v1598_v30, %v1532_v57  ;;  %v944_v0 = vadd.f32 %v912_v61, %v846_v35  ;;  %v1010_v39 = vmul.f32 %v3339_v33, %v1270_v46  ;;  %v4910_v32 = vld [vmem:[#allocation18_spill] sm:$0xff] }
 0x12f   : > { %v1892_v13 = vmul.f32 %v3456_v26, %v3701_v40  ;;  %v1991_v19 = vmul.f32 %v3473_v14, %v3758_v43  ;;  %v2089_v62 = vmul.f32 %v3484_v63, %v3760_v25  ;;  %v1336_v15 = vadd.f32 %v1304_v21, %v1238_v17  ;;  %v1077_v17 = vld [vmem:[#allocation2 + $0x98] sm:$0xff] }
 0x130   : > { %v2120_v44 = vadd.f32 %v2088_v36, %v2022_v52  ;;  %v1728_v27 = vadd.f32 %v1696_v56, %v1630_v53  ;;  %v1042_v16 = vadd.f32 %v1010_v39, %v944_v0  ;;  %v1109_v2 = vmul.f32 %v3366_v49, %v1076_v22 }
 0x131   : > { %v2187_v46 = vmul.f32 %v3499_v42, %v3769_v9  ;;  %v1435_v10 = vadd.f32 %v1403_v37, %v1336_v15  ;;  %v1501_v24 = vmul.f32 %v3412_v59, %v3659_v20  ;;  %v749_v47 = vadd.f32 %v4909_v3, %v4908_v45  ;;  %v3815_v45 = vld [vmem:[#allocation2 + $0x232] sm:$0xff] }
 0x132   : > { %v2218_v8 = vadd.f32 %v2186_v1, %v2120_v44  ;;  %v1826_v30 = vadd.f32 %v1794_v5, %v1728_v27  ;;  %v1141_v11 = vadd.f32 %v1109_v2, %v1042_v16  ;;  %v1207_v36 = vmul.f32 %v3389_v54, %v1174_v7  ;;  %v3807_v27 = vld [vmem:[#allocation2 + $0x9a] sm:$0xff] }
 0x133   : > { %v1533_v56 = vadd.f32 %v1501_v24, %v1435_v10  ;;  %v1599_v31 = vmul.f32 %v3430_v4, %v3676_v41  ;;  %v847_v57 = vadd.f32 %v4910_v32, %v749_v47  ;;  %v913_v35 = vmul.f32 %v2482_v38, %v3312_v51  ;;  %v3813_v24 = vld [vmem:[#allocation2 + $0x231] sm:$0xff]  ;;  %v4913_v32 = vld [vmem:[#allocation20_spill] sm:$0xff] }
 0x134   : > { %2250 = vst.msk [vmem:[%s3617_s10 + $0x28] sm:$0xff] %vm233_vm0, %v2218_v8  ;;  %v1924_v20 = vadd.f32 %v1892_v13, %v1826_v30  ;;  %v1239_v61 = vadd.f32 %v1207_v36, %v1141_v11  ;;  %v1305_v1 = vmul.f32 %v3394_v48, %v1272_v23  ;;  %v1404_v5 = vmul.f32 %v3407_v18, %v3687_v34  ;;  %v1175_v13 = vld [vmem:[#allocation2 + $0x99] sm:$0xff]  ;;  %v4912_v30 = vld [vmem:[#allocation16_spill] sm:$0xff]  ;;  %v2483_v38 = vld [vmem:[#allocation2 + $0x91] sm:$0xff] }
 0x135   : > { %v1631_v21 = vadd.f32 %v1599_v31, %v1533_v56  ;;  %v1697_v41 = vmul.f32 %v3435_v12, %v3725_v60  ;;  %v945_v37 = vadd.f32 %v913_v35, %v847_v57  ;;  %v1011_v22 = vmul.f32 %v3339_v33, %v1271_v6  ;;  %v4911_v8 = vld [vmem:[#allocation19_spill] sm:$0xff] }
 0x136   : > { %v2023_v52 = vadd.f32 %v1991_v19, %v1924_v20  ;;  %v1795_v53 = vmul.f32 %v3451_v50, %v3727_v58  ;;  %v1893_v0 = vmul.f32 %v3456_v26, %v3731_v29  ;;  %v1337_v39 = vadd.f32 %v1305_v1, %v1239_v61 }
 0x137   : > { %v1729_v15 = vadd.f32 %v1697_v41, %v1631_v21  ;;  %v1992_v34 = vmul.f32 %v3473_v14, %v3792_v28  ;;  %v1043_v7 = vadd.f32 %v1011_v22, %v945_v37  ;;  %v1110_v44 = vmul.f32 %v3366_v49, %v1077_v17  ;;  %v3834_v17 = vld [vmem:[#allocation2 + $0x240] sm:$0xff]  ;;  %v1176_v22 = vld [vmem:[#allocation2 + $0xa9] sm:$0xff] }
 0x138   : > { %v2121_v16 = vadd.f32 %v2089_v62, %v2023_v52  ;;  %v1436_v6 = vadd.f32 %v1404_v5, %v1337_v39  ;;  %v1502_v19 = vmul.f32 %v3412_v59, %v3689_v55  ;;  %v1600_v2 = vmul.f32 %v3430_v4, %v3701_v40 }
 0x139   : > { %v1827_v10 = vadd.f32 %v1795_v53, %v1729_v15  ;;  %v1142_v3 = vadd.f32 %v1110_v44, %v1043_v7  ;;  %v1208_v47 = vmul.f32 %v3389_v54, %v1175_v13  ;;  %v750_v11 = vadd.f32 %v4912_v30, %v4911_v8  ;;  %v3844_v44 = vld [vmem:[#allocation2 + $0xaa] sm:$0xff] }
 0x13a   : > { %v2219_v62 = vadd.f32 %v2187_v46, %v2121_v16  ;;  %v1534_v36 = vadd.f32 %v1502_v19, %v1436_v6  ;;  %v1306_v55 = vmul.f32 %v3394_v48, %v3807_v27  ;;  %v1405_v40 = vmul.f32 %v3407_v18, %v3725_v60  ;;  %v1078_v60 = vld [vmem:[#allocation2 + $0xa8] sm:$0xff]  ;;  %v4914_v8 = vld [vmem:[#allocation21_spill] sm:$0xff] }
 0x13b   : > { %v1925_v56 = vadd.f32 %v1893_v0, %v1827_v10  ;;  %v1240_v31 = vadd.f32 %v1208_v47, %v1142_v3  ;;  %v848_v57 = vadd.f32 %v4913_v32, %v750_v11  ;;  %v914_v35 = vmul.f32 %v2483_v38, %v3312_v51  ;;  %v3851_v10 = vld [vmem:[#allocation2 + $0x241] sm:$0xff]  ;;  %v4915_v30 = vld [vmem:[#allocation17_spill] sm:$0xff]  ;;  %v2484_v38 = vld [vmem:[#allocation2 + $0x99] sm:$0xff] }
 0x13c   : > { %2251 = vst.msk [vmem:[%s3617_s10 + $0x30] sm:$0xff] %vm233_vm0, %v2219_v62  ;;  %v2090_v20 = vmul.f32 %v3484_v63, %v3813_v24  ;;  %v2188_v46 = vmul.f32 %v3499_v42, %v3815_v45  ;;  %v1632_v61 = vadd.f32 %v1600_v2, %v1534_v36  ;;  %v1698_v1 = vmul.f32 %v3435_v12, %v3758_v43  ;;  %v4916_v32 = vld [vmem:[#allocation24_spill] sm:$0xff] }
 0x13d   : > { %v2024_v5 = vadd.f32 %v1992_v34, %v1925_v56  ;;  %v1338_v21 = vadd.f32 %v1306_v55, %v1240_v31  ;;  %v946_v41 = vadd.f32 %v914_v35, %v848_v57  ;;  %v1012_v37 = vmul.f32 %v3339_v33, %v1272_v23  ;;  %v3865_v56 = vld [vmem:[#allocation2 + $0x248] sm:$0xff] }
 0x13e   : > { %v1730_v52 = vadd.f32 %v1698_v1, %v1632_v61  ;;  %v1796_v53 = vmul.f32 %v3451_v50, %v3760_v25  ;;  %v1894_v0 = vmul.f32 %v3456_v26, %v3769_v9  ;;  %v1503_v39 = vmul.f32 %v3412_v59, %v3727_v58  ;;  %v3853_v58 = vld [vmem:[#allocation2 + $0x242] sm:$0xff]  ;;  %v1079_v1 = vld [vmem:[#allocation2 + $0xb0] sm:$0xff] }
 0x13f   : > { %v2122_v13 = vadd.f32 %v2090_v20, %v2024_v5  ;;  %v1437_v15 = vadd.f32 %v1405_v40, %v1338_v21  ;;  %v1044_v34 = vadd.f32 %v1012_v37, %v946_v41  ;;  %v1111_v7 = vmul.f32 %v3366_v49, %v1078_v60  ;;  %v3875_v5 = vld [vmem:[#allocation2 + $0x249] sm:$0xff] }
 0x140   : > { %v1828_v23 = vadd.f32 %v1796_v53, %v1730_v52  ;;  %v1993_v16 = vmul.f32 %v3473_v14, %v3834_v17  ;;  %v1601_v6 = vmul.f32 %v3430_v4, %v3731_v29  ;;  %v1209_v19 = vmul.f32 %v3389_v54, %v1176_v22 }
 0x141   : > { %v2220_v2 = vadd.f32 %v2188_v46, %v2122_v13  ;;  %v1535_v3 = vadd.f32 %v1503_v39, %v1437_v15  ;;  %v1143_v47 = vadd.f32 %v1111_v7, %v1044_v34  ;;  %v751_v11 = vadd.f32 %v4915_v30, %v4914_v8  ;;  %v1177_v39 = vld [vmem:[#allocation2 + $0xb1] sm:$0xff] }
 0x142   : > { %v1926_v62 = vadd.f32 %v1894_v0, %v1828_v23  ;;  %v1699_v36 = vmul.f32 %v3435_v12, %v3792_v28  ;;  %v1307_v55 = vmul.f32 %v3394_v48, %v3844_v44  ;;  %v1406_v29 = vmul.f32 %v3407_v18, %v3758_v43  ;;  %v3886_v23 = vld [vmem:[#allocation2 + $0xb2] sm:$0xff] }
 0x143   : > { %2252 = vst.msk [vmem:[%s3617_s10 + $0x38] sm:$0xff] %vm233_vm0, %v2220_v2  ;;  %v1633_v40 = vadd.f32 %v1601_v6, %v1535_v3  ;;  %v1241_v31 = vadd.f32 %v1209_v19, %v1143_v47  ;;  %v849_v57 = vadd.f32 %v4916_v32, %v751_v11  ;;  %v915_v35 = vmul.f32 %v2484_v38, %v3312_v51  ;;  %v4917_v19 = vld [vmem:[#allocation25_spill] sm:$0xff]  ;;  %v4918_v2 = vld [vmem:[#allocation22_spill] sm:$0xff] }
 0x144   : > { %v2025_v20 = vadd.f32 %v1993_v16, %v1926_v62  ;;  %v2091_v46 = vmul.f32 %v3484_v63, %v3851_v10  ;;  %v2189_v61 = vmul.f32 %v3499_v42, %v3853_v58  ;;  %v1797_v43 = vmul.f32 %v3451_v50, %v3813_v24  ;;  %v3894_v47 = vld [vmem:[#allocation2 + $0x24a] sm:$0xff] }
 0x145   : > { %v1731_v60 = vadd.f32 %v1699_v36, %v1633_v40  ;;  %v1339_v21 = vadd.f32 %v1307_v55, %v1241_v31  ;;  %v947_v41 = vadd.f32 %v915_v35, %v849_v57  ;;  %v1013_v37 = vmul.f32 %v3339_v33, %v3807_v27  ;;  %v4919_v55 = vld [vmem:[#allocation26_spill] sm:$0xff] }
 0x146   : > { %v2123_v22 = vadd.f32 %v2091_v46, %v2025_v20  ;;  %v1895_v52 = vmul.f32 %v3456_v26, %v3815_v45  ;;  %v1994_v53 = vmul.f32 %v3473_v14, %v3865_v56  ;;  %v1504_v0 = vmul.f32 %v3412_v59, %v3760_v25  ;;  %v3905_v57 = vld [vmem:[#allocation2 + $0x258] sm:$0xff]  ;;  %v1080_v20 = vld [vmem:[#allocation2 + $0xc0] sm:$0xff] }
 0x147   : > { %v1829_v13 = vadd.f32 %v1797_v43, %v1731_v60  ;;  %v1438_v15 = vadd.f32 %v1406_v29, %v1339_v21  ;;  %v1045_v34 = vadd.f32 %v1013_v37, %v947_v41  ;;  %v1112_v7 = vmul.f32 %v3366_v49, %v1079_v1  ;;  %v2485_v29 = vld [vmem:[#allocation2 + $0xa9] sm:$0xff]  ;;  %v4920_v46 = vld [vmem:[#allocation78_spill] sm:$0xff] }
 0x148   : > { %v2221_v27 = vadd.f32 %v2189_v61, %v2123_v22  ;;  %v2092_v16 = vmul.f32 %v3484_v63, %v3875_v5  ;;  %v1602_v6 = vmul.f32 %v3430_v4, %v3769_v9  ;;  %v752_v3 = vadd.f32 %v4918_v2, %v4917_v19  ;;  %v4921_v61 = vld [vmem:[#allocation76_spill] sm:$0xff]  ;;  %v3919_v22 = vld [vmem:[#allocation2 + $0x259] sm:$0xff] }
 0x149   : > { %v1927_v25 = vadd.f32 %v1895_v52, %v1829_v13  ;;  %v1536_v8 = vadd.f32 %v1504_v0, %v1438_v15  ;;  %v1144_v30 = vadd.f32 %v1112_v7, %v1045_v34  ;;  %v1210_v11 = vmul.f32 %v3389_v54, %v1177_v39  ;;  %v1178_v52 = vld [vmem:[#allocation2 + $0xc1] sm:$0xff] }
 0x14a   : > { %2253 = vst.msk [vmem:[%s3617_s10 + $0x40] sm:$0xff] %vm233_vm0, %v2221_v27  ;;  %v1700_v62 = vmul.f32 %v3435_v12, %v3834_v17  ;;  %v1308_v36 = vmul.f32 %v3394_v48, %v3886_v23  ;;  %v850_v9 = vadd.f32 %v4919_v55, %v752_v3  ;;  %v916_v40 = vmul.f32 %v2485_v29, %v3312_v51  ;;  %v4922_v2 = vld [vmem:[#allocation27_spill] sm:$0xff] }
 0x14b   : > { %v2026_v31 = vadd.f32 %v1994_v53, %v1927_v25  ;;  %v1634_v32 = vadd.f32 %v1602_v6, %v1536_v8  ;;  %v1242_v38 = vadd.f32 %v1210_v11, %v1144_v30  ;;  %v1407_v35 = vmul.f32 %v3407_v18, %v3792_v28  ;;  %v4923_v3 = vld [vmem:[#allocation23_spill] sm:$0xff] }
 0x14c   : > { %v3911_v43 = vadd.f32 %v4921_v61, %v4920_v46  ;;  %v2190_v1 = vmul.f32 %v3499_v42, %v3894_v47  ;;  %v948_v60 = vadd.f32 %v916_v40, %v850_v9  ;;  %v1014_v51 = vmul.f32 %v3339_v33, %v3844_v44  ;;  %v3926_v33 = vld [vmem:[#allocation2 + $0xc2] sm:$0xff]  ;;  %v2486_v9 = vld [vmem:[#allocation2 + $0xb1] sm:$0xff] }
 0x14d   : > { %v2124_v21 = vadd.f32 %v2092_v16, %v2026_v31  ;;  %v1732_v41 = vadd.f32 %v1700_v62, %v1634_v32  ;;  %v1798_v37 = vmul.f32 %v3451_v50, %v3851_v10  ;;  %v1340_v28 = vadd.f32 %v1308_v36, %v1242_v38  ;;  %v3932_v16 = vld [vmem:[#allocation2 + $0x25a] sm:$0xff]  ;;  %v3951_v29 = vld [vmem:[%s4812_s0 + $0x4] ss:$0 sm:$0xff]  ;;  %v1081_v38 = vld [vmem:[#allocation2 + $0xc8] sm:$0xff] }
 0x14e   : > { %v1896_v53 = vmul.f32 %v3456_v26, %v3853_v58  ;;  %v1995_v0 = vmul.f32 %v3473_v14, %v3905_v57  ;;  %v1046_v39 = vadd.f32 %v1014_v51, %v948_v60  ;;  %v1113_v13 = vmul.f32 %v3366_v49, %v1080_v20  ;;  %v3943_v11 = vld [vmem:[#allocation2 + $0x260] sm:$0xff] }
 0x14f   : > { %v2222_v44 = vadd.f32 %v2190_v1, %v2124_v21  ;;  %v1830_v15 = vadd.f32 %v1798_v37, %v1732_v41  ;;  %v1439_v34 = vadd.f32 %v1407_v35, %v1340_v28  ;;  %v1505_v7 = vmul.f32 %v3412_v59, %v3813_v24  ;;  %v3965_v46 = vld [vmem:[%s4812_s0 + $0x5] ss:$0 sm:$0xff]  ;;  %v1179_v41 = vld [vmem:[#allocation2 + $0xc9] sm:$0xff] }
 0x150   : > { %v2093_v27 = vmul.f32 %v3484_v63, %v3919_v22  ;;  %v1145_v6 = vadd.f32 %v1113_v13, %v1046_v39  ;;  %v1211_v19 = vmul.f32 %v3389_v54, %v1178_v52  ;;  %v753_v25 = vadd.f32 %v4923_v3, %v4922_v2  ;;  %v4924_v54 = vld [vmem:[#allocation30_spill] sm:$0xff] }
 0x151   : > { %2254 = vst.msk [vmem:[%s3617_s10 + $0x48] sm:$0xff] %vm233_vm0, %v2222_v44  ;;  %v1928_v49 = vadd.f32 %v1896_v53, %v1830_v15  ;;  %v1537_v8 = vadd.f32 %v1505_v7, %v1439_v34  ;;  %v1603_v30 = vmul.f32 %v3430_v4, %v3815_v45  ;;  %v1309_v24 = vmul.f32 %v3394_v48, %v3926_v33  ;;  %v3978_v53 = vld [vmem:[%s4812_s0 + $0x6] ss:$0 sm:$0xff]  ;;  %v3983_v44 = vld [vmem:[#allocation2 + $0xca] sm:$0xff] }
 0x152   : > { %v1243_v62 = vadd.f32 %v1211_v19, %v1145_v6  ;;  %v1408_v36 = vmul.f32 %v3407_v18, %v3834_v17  ;;  %v851_v55 = vadd.f32 %v4924_v54, %v753_v25  ;;  %v917_v40 = vmul.f32 %v3951_v29, %v2486_v9  ;;  %v3960_v17 = vld [vmem:[#allocation2 + $0x261] sm:$0xff]  ;;  %v1082_v9 = vld [vmem:[#allocation2 + $0xd8] sm:$0xff] }
 0x153   : > { %v2027_v45 = vadd.f32 %v1995_v0, %v1928_v49  ;;  %v2191_v48 = vmul.f32 %v3499_v42, %v3932_v16  ;;  %v1635_v31 = vadd.f32 %v1603_v30, %v1537_v8  ;;  %v1701_v32 = vmul.f32 %v3435_v12, %v3865_v56  ;;  %v4925_v15 = vld [vmem:[#allocation31_spill] sm:$0xff]  ;;  %v4926_v34 = vld [vmem:[#allocation28_spill] sm:$0xff] }
 0x154   : > { %v1799_v18 = vmul.f32 %v3451_v50, %v3875_v5  ;;  %v1341_v35 = vadd.f32 %v1309_v24, %v1243_v62  ;;  %v949_v20 = vadd.f32 %v917_v40, %v851_v55  ;;  %v1015_v61 = vmul.f32 %v3965_v46, %v3886_v23  ;;  %v3994_v19 = vld [vmem:[%s4812_s0 + $0x7] ss:$0 sm:$0xff]  ;;  %v4927_v49 = vld [vmem:[#allocation32_spill] sm:$0xff] }
 0x155   : > { %v2125_v1 = vadd.f32 %v2093_v27, %v2027_v45  ;;  %v1733_v60 = vadd.f32 %v1701_v32, %v1635_v31  ;;  %v1897_v51 = vmul.f32 %v3456_v26, %v3894_v47  ;;  %v1996_v21 = vmul.f32 %v3473_v14, %v3943_v11  ;;  %v3987_v27 = vld [vmem:[#allocation2 + $0x262] sm:$0xff] }
 0x156   : > { %v1440_v37 = vadd.f32 %v1408_v36, %v1341_v35  ;;  %v1506_v28 = vmul.f32 %v3412_v59, %v3851_v10  ;;  %v1047_v52 = vadd.f32 %v1015_v61, %v949_v20  ;;  %v1114_v23 = vmul.f32 %v3978_v53, %v1081_v38  ;;  %v2491_v30 = vld [vmem:[#allocation2 + $0xc1] sm:$0xff] }
 0x157   : > { %v2223_v0 = vadd.f32 %v2191_v48, %v2125_v1  ;;  %v1831_v39 = vadd.f32 %v1799_v18, %v1733_v60  ;;  %v2094_v13 = vmul.f32 %v3484_v63, %v3960_v17  ;;  %v754_v7 = vadd.f32 %v4926_v34, %v4925_v15  ;;  %v4008_v36 = vld [vmem:[%s4812_s0 + $0x8] ss:$0 sm:$0xff]  ;;  %v4021_v48 = vld [vmem:[#allocation2 + $0x271] sm:$0xff]  ;;  %v4051_v34 = vld [vmem:[%s4812_s0 + $0xb] ss:$0 sm:$0xff] }
 0x158   : > { %v1538_v59 = vadd.f32 %v1506_v28, %v1440_v37  ;;  %v1604_v10 = vmul.f32 %v3430_v4, %v3853_v58  ;;  %v1146_v6 = vadd.f32 %v1114_v23, %v1047_v52  ;;  %v1212_v2 = vmul.f32 %v3994_v19, %v1179_v41  ;;  %v4003_v58 = vld [vmem:[#allocation2 + $0x270] sm:$0xff] }
 0x159   : > { %2255 = vst.msk [vmem:[%s3617_s10 + $0x50] sm:$0xff] %vm233_vm0, %v2223_v0  ;;  %v1929_v3 = vadd.f32 %v1897_v51, %v1831_v39  ;;  %v1702_v25 = vmul.f32 %v3435_v12, %v3905_v57  ;;  %v852_v8 = vadd.f32 %v4927_v49, %v754_v7  ;;  %v918_v24 = vmul.f32 %v2491_v30, %v3951_v29  ;;  %v4015_v12 = vld [vmem:[%s4812_s0 + $0x9] ss:$0 sm:$0xff]  ;;  %v4043_v28 = vld [vmem:[#allocation2 + $0x272] sm:$0xff] }
 0x15a   : > { %v1636_v4 = vadd.f32 %v1604_v10, %v1538_v59  ;;  %v1244_v62 = vadd.f32 %v1212_v2, %v1146_v6  ;;  %v1310_v54 = vmul.f32 %v4008_v36, %v3983_v44  ;;  %v1409_v55 = vmul.f32 %v4015_v12, %v3865_v56  ;;  %v1180_v56 = vld [vmem:[#allocation2 + $0xd9] sm:$0xff]  ;;  %v4928_v0 = vld [vmem:[#allocation33_spill] sm:$0xff]  ;;  %v4930_v2 = vld [vmem:[#allocation36_spill] sm:$0xff] }
 0x15b   : > { %v2028_v40 = vadd.f32 %v1996_v21, %v1929_v3  ;;  %v2192_v45 = vmul.f32 %v3499_v42, %v3987_v27  ;;  %v950_v31 = vadd.f32 %v918_v24, %v852_v8  ;;  %v1016_v32 = vmul.f32 %v3965_v46, %v3926_v33  ;;  %v4032_v21 = vld [vmem:[#allocation2 + $0xda] sm:$0xff]  ;;  %v4929_v39 = vld [vmem:[#allocation29_spill] sm:$0xff]  ;;  %v4070_v24 = vld [vmem:[%s4812_s0 + $0xc] ss:$0 sm:$0xff] }
 0x15c   : > { %v1734_v38 = vadd.f32 %v1702_v25, %v1636_v4  ;;  %v1800_v18 = vmul.f32 %v3451_v50, %v3919_v22  ;;  %v1898_v35 = vmul.f32 %v3456_v26, %v3932_v16  ;;  %v1342_v20 = vadd.f32 %v1310_v54, %v1244_v62  ;;  %v4039_v26 = vld [vmem:[%s4812_s0 + $0xa] ss:$0 sm:$0xff]  ;;  %v4059_v59 = vld [vmem:[#allocation2 + $0x278] sm:$0xff]  ;;  %v1083_v62 = vld [vmem:[#allocation2 + $0xe0] sm:$0xff] }
 0x15d   : > { %v2126_v61 = vadd.f32 %v2094_v13, %v2028_v40  ;;  %v1997_v1 = vmul.f32 %v3473_v14, %v4003_v58  ;;  %v1048_v60 = vadd.f32 %v1016_v32, %v950_v31  ;;  %v1115_v51 = vmul.f32 %v3978_v53, %v1082_v9  ;;  %v2496_v25 = vld [vmem:[#allocation2 + $0xc9] sm:$0xff] }
 0x15e   : > { %v1832_v33 = vadd.f32 %v1800_v18, %v1734_v38  ;;  %v2095_v41 = vmul.f32 %v3484_v63, %v4021_v48  ;;  %v1441_v50 = vadd.f32 %v1409_v55, %v1342_v20  ;;  %v1507_v37 = vmul.f32 %v4039_v26, %v3875_v5  ;;  %v4081_v55 = vld [vmem:[#allocation2 + $0x279] sm:$0xff]  ;;  %v4088_v32 = vld [vmem:[%s4812_s0 + $0xe] ss:$0 sm:$0xff]  ;;  %v4095_v18 = vld [vmem:[%s4812_s0 + $0xf] ss:$0 sm:$0xff] }
 0x15f   : > { %v2224_v14 = vadd.f32 %v2192_v45, %v2126_v61  ;;  %v1147_v52 = vadd.f32 %v1115_v51, %v1048_v60  ;;  %v1213_v23 = vmul.f32 %v3994_v19, %v1180_v56  ;;  %v755_v13 = vadd.f32 %v4929_v39, %v4928_v0  ;;  %v1181_v20 = vld [vmem:[#allocation2 + $0xe1] sm:$0xff] }
 0x160   : > { %v1930_v15 = vadd.f32 %v1898_v35, %v1832_v33  ;;  %v1539_v63 = vadd.f32 %v1507_v37, %v1441_v50  ;;  %v1605_v7 = vmul.f32 %v4051_v34, %v3894_v47  ;;  %v1311_v5 = vmul.f32 %v4008_v36, %v4032_v21  ;;  %v4105_v33 = vld [vmem:[%s4812_s0 + $0x10] ss:$0 sm:$0xff]  ;;  %v4109_v50 = vld [vmem:[#allocation2 + $0xe2] sm:$0xff] }
 0x161   : > { %2256 = vst.msk [vmem:[%s3617_s10 + $0x58] sm:$0xff] %vm233_vm0, %v2224_v14  ;;  %v1245_v10 = vadd.f32 %v1213_v23, %v1147_v52  ;;  %v1410_v6 = vmul.f32 %v4015_v12, %v3905_v57  ;;  %v853_v3 = vadd.f32 %v4930_v2, %v755_v13  ;;  %v919_v49 = vmul.f32 %v2496_v25, %v3951_v29  ;;  %v4077_v57 = vld [vmem:[%s4812_s0 + $0xd] ss:$0 sm:$0xff]  ;;  %v4931_v37 = vld [vmem:[#allocation37_spill] sm:$0xff]  ;;  %v4932_v14 = vld [vmem:[#allocation34_spill] sm:$0xff] }
 0x162   : > { %v2029_v8 = vadd.f32 %v1997_v1, %v1930_v15  ;;  %v2193_v47 = vmul.f32 %v3499_v42, %v4043_v28  ;;  %v1637_v30 = vadd.f32 %v1605_v7, %v1539_v63  ;;  %v1703_v4 = vmul.f32 %v4070_v24, %v3943_v11  ;;  %v4113_v23 = vld [vmem:[#allocation2 + $0x27a] sm:$0xff] }
 0x163   : > { %v1801_v54 = vmul.f32 %v4077_v57, %v3960_v17  ;;  %v1343_v42 = vadd.f32 %v1311_v5, %v1245_v10  ;;  %v951_v9 = vadd.f32 %v919_v49, %v853_v3  ;;  %v1017_v40 = vmul.f32 %v3965_v46, %v3983_v44  ;;  %v4933_v7 = vld [vmem:[#allocation38_spill] sm:$0xff]  ;;  %v4124_v3 = vld [vmem:[#allocation2 + $0x288] sm:$0xff] }
 0x164   : > { %v2127_v45 = vadd.f32 %v2095_v41, %v2029_v8  ;;  %v1735_v31 = vadd.f32 %v1703_v4, %v1637_v30  ;;  %v1899_v38 = vmul.f32 %v4088_v32, %v3987_v27  ;;  %v1998_v35 = vmul.f32 %v4095_v18, %v4059_v59  ;;  %v2502_v10 = vld [vmem:[#allocation2 + $0xd9] sm:$0xff]  ;;  %v1084_v8 = vld [vmem:[#allocation2 + $0xf0] sm:$0xff] }
 0x165   : > { %v1442_v44 = vadd.f32 %v1410_v6, %v1343_v42  ;;  %v1508_v56 = vmul.f32 %v4039_v26, %v3919_v22  ;;  %v1049_v61 = vadd.f32 %v1017_v40, %v951_v9  ;;  %v1116_v1 = vmul.f32 %v3978_v53, %v1083_v62  ;;  %v4133_v30 = vld [vmem:[%s4812_s0 + $0x11] ss:$0 sm:$0xff]  ;;  %v4137_v62 = vld [vmem:[#allocation2 + $0x289] sm:$0xff] }
 0x166   : > { %v2225_v60 = vadd.f32 %v2193_v47, %v2127_v45  ;;  %v1833_v51 = vadd.f32 %v1801_v54, %v1735_v31  ;;  %v2096_v41 = vmul.f32 %v4105_v33, %v4081_v55  ;;  %v756_v52 = vadd.f32 %v4932_v14, %v4931_v37  ;;  %v1182_v31 = vld [vmem:[#allocation2 + $0xf1] sm:$0xff] }
 0x167   : > { %v1540_v22 = vadd.f32 %v1508_v56, %v1442_v44  ;;  %v1606_v0 = vmul.f32 %v4051_v34, %v3932_v16  ;;  %v1148_v39 = vadd.f32 %v1116_v1, %v1049_v61  ;;  %v1214_v13 = vmul.f32 %v3994_v19, %v1181_v20  ;;  %v4148_v56 = vld [vmem:[#allocation2 + $0xf2] sm:$0xff]  ;;  %v4154_v37 = vld [vmem:[#allocation2 + $0x28a] sm:$0xff] }
 0x168   : > { %2257 = vst.msk [vmem:[%s3617_s10 + $0x60] sm:$0xff] %vm233_vm0, %v2225_v60  ;;  %v1931_v15 = vadd.f32 %v1899_v38, %v1833_v51  ;;  %v1704_v63 = vmul.f32 %v4070_v24, %v4003_v58  ;;  %v854_v5 = vadd.f32 %v4933_v7, %v756_v52  ;;  %v920_v6 = vmul.f32 %v2502_v10, %v3951_v29  ;;  %v4934_v52 = vld [vmem:[#allocation39_spill] sm:$0xff]  ;;  %v4936_v10 = vld [vmem:[#allocation42_spill] sm:$0xff] }
 0x169   : > { %v1638_v2 = vadd.f32 %v1606_v0, %v1540_v22  ;;  %v1246_v25 = vadd.f32 %v1214_v13, %v1148_v39  ;;  %v1312_v16 = vmul.f32 %v4008_v36, %v4109_v50  ;;  %v1411_v49 = vmul.f32 %v4015_v12, %v3943_v11  ;;  %v4935_v22 = vld [vmem:[#allocation35_spill] sm:$0xff] }
 0x16a   : > { %v2030_v47 = vadd.f32 %v1998_v35, %v1931_v15  ;;  %v2194_v4 = vmul.f32 %v4133_v30, %v4113_v23  ;;  %v952_v54 = vadd.f32 %v920_v6, %v854_v5  ;;  %v1018_v42 = vmul.f32 %v3965_v46, %v4032_v21 }
 0x16b   : > { %v1736_v9 = vadd.f32 %v1704_v63, %v1638_v2  ;;  %v1802_v11 = vmul.f32 %v4077_v57, %v4021_v48  ;;  %v1900_v40 = vmul.f32 %v4088_v32, %v4043_v28  ;;  %v1344_v45 = vadd.f32 %v1312_v16, %v1246_v25  ;;  %v2504_v2 = vld [vmem:[#allocation2 + $0xe1] sm:$0xff] }
 0x16c   : > { %v2128_v38 = vadd.f32 %v2096_v41, %v2030_v47  ;;  %v1999_v35 = vmul.f32 %v4095_v18, %v4124_v3  ;;  %v1050_v20 = vadd.f32 %v1018_v42, %v952_v54  ;;  %v1117_v44 = vmul.f32 %v3978_v53, %v1084_v8  ;;  %v1085_v47 = vld [vmem:[#allocation2 + $0xf8] sm:$0xff] }
 0x16d   : > { %v1834_v21 = vadd.f32 %v1802_v11, %v1736_v9  ;;  %v2097_v61 = vmul.f32 %v4105_v33, %v4137_v62  ;;  %v1443_v1 = vadd.f32 %v1411_v49, %v1344_v45  ;;  %v1509_v60 = vmul.f32 %v4039_v26, %v3960_v17  ;;  %v4165_v17 = vld [vmem:[#allocation2 + $0x290] sm:$0xff] }
 0x16e   : > { %v2226_v51 = vadd.f32 %v2194_v4, %v2128_v38  ;;  %v1149_v41 = vadd.f32 %v1117_v44, %v1050_v20  ;;  %v1215_v14 = vmul.f32 %v3994_v19, %v1182_v31  ;;  %v757_v0 = vadd.f32 %v4935_v22, %v4934_v52  ;;  %v4177_v54 = vld [vmem:[#allocation2 + $0x291] sm:$0xff]  ;;  %v1183_v38 = vld [vmem:[#allocation2 + $0xf9] sm:$0xff] }
 0x16f   : > { %v1932_v39 = vadd.f32 %v1900_v40, %v1834_v21  ;;  %v1541_v13 = vadd.f32 %v1509_v60, %v1443_v1  ;;  %v1607_v15 = vmul.f32 %v4051_v34, %v3987_v27  ;;  %v1313_v63 = vmul.f32 %v4008_v36, %v4148_v56  ;;  %v4194_v52 = vld [vmem:[#allocation2 + $0x292] sm:$0xff] }
 0x170   : > { %2258 = vst.msk [vmem:[%s3617_s10 + $0x68] sm:$0xff] %vm233_vm0, %v2226_v51  ;;  %v1247_v7 = vadd.f32 %v1215_v14, %v1149_v41  ;;  %v1412_v5 = vmul.f32 %v4015_v12, %v4003_v58  ;;  %v855_v6 = vadd.f32 %v4936_v10, %v757_v0  ;;  %v921_v25 = vmul.f32 %v2504_v2, %v3951_v29  ;;  %v4937_v51 = vld [vmem:[#allocation43_spill] sm:$0xff]  ;;  %v4938_v41 = vld [vmem:[#allocation40_spill] sm:$0xff] }
 0x171   : > { %v2031_v16 = vadd.f32 %v1999_v35, %v1932_v39  ;;  %v2195_v27 = vmul.f32 %v4133_v30, %v4154_v37  ;;  %v1639_v49 = vadd.f32 %v1607_v15, %v1541_v13  ;;  %v1705_v8 = vmul.f32 %v4070_v24, %v4059_v59  ;;  %v4205_v2 = vld [vmem:[#allocation2 + $0x2a0] sm:$0xff] }
 0x172   : > { %v1803_v4 = vmul.f32 %v4077_v57, %v4081_v55  ;;  %v1345_v58 = vadd.f32 %v1313_v63, %v1247_v7  ;;  %v953_v42 = vadd.f32 %v921_v25, %v855_v6  ;;  %v1019_v9 = vmul.f32 %v3965_v46, %v4109_v50  ;;  %v4939_v63 = vld [vmem:[#allocation44_spill] sm:$0xff] }
 0x173   : > { %v2129_v11 = vadd.f32 %v2097_v61, %v2031_v16  ;;  %v1737_v40 = vadd.f32 %v1705_v8, %v1639_v49  ;;  %v1901_v45 = vmul.f32 %v4088_v32, %v4113_v23  ;;  %v2000_v31 = vmul.f32 %v4095_v18, %v4165_v17  ;;  %v4190_v61 = vld [vmem:[#allocation2 + $0xfa] sm:$0xff] }
 0x174   : > { %v1444_v35 = vadd.f32 %v1412_v5, %v1345_v58  ;;  %v1510_v20 = vmul.f32 %v4039_v26, %v4021_v48  ;;  %v1051_v44 = vadd.f32 %v1019_v9, %v953_v42  ;;  %v1118_v21 = vmul.f32 %v3978_v53, %v1085_v47  ;;  %v2505_v5 = vld [vmem:[#allocation2 + $0xf1] sm:$0xff]  ;;  %v4213_v47 = vld [vmem:[#allocation2 + $0x2a1] sm:$0xff] }
 0x175   : > { %v2227_v1 = vadd.f32 %v2195_v27, %v2129_v11  ;;  %v1835_v60 = vadd.f32 %v1803_v4, %v1737_v40  ;;  %v2098_v50 = vmul.f32 %v4105_v33, %v4177_v54  ;;  %v758_v14 = vadd.f32 %v4938_v41, %v4937_v51  ;;  %v1086_v27 = vld [vmem:[#allocation2 + $0x108] sm:$0xff] }
 0x176   : > { %v1542_v22 = vadd.f32 %v1510_v20, %v1444_v35  ;;  %v1608_v0 = vmul.f32 %v4051_v34, %v4043_v28  ;;  %v1150_v48 = vadd.f32 %v1118_v21, %v1051_v44  ;;  %v1216_v39 = vmul.f32 %v3994_v19, %v1183_v38  ;;  %v4224_v20 = vld [vmem:[#allocation2 + $0x10a] sm:$0xff]  ;;  %v4230_v51 = vld [vmem:[#allocation2 + $0x2a2] sm:$0xff] }
 0x177   : > { %2259 = vst.msk [vmem:[%s3617_s10 + $0x70] sm:$0xff] %vm233_vm0, %v2227_v1  ;;  %v1933_v13 = vadd.f32 %v1901_v45, %v1835_v60  ;;  %v1706_v15 = vmul.f32 %v4070_v24, %v4124_v3  ;;  %v856_v7 = vadd.f32 %v4939_v63, %v758_v14  ;;  %v922_v10 = vmul.f32 %v2505_v5, %v3951_v29  ;;  %v4940_v14 = vld [vmem:[#allocation45_spill] sm:$0xff]  ;;  %v4942_v5 = vld [vmem:[#allocation48_spill] sm:$0xff] }
 0x178   : > { %v1640_v6 = vadd.f32 %v1608_v0, %v1542_v22  ;;  %v1248_v25 = vadd.f32 %v1216_v39, %v1150_v48  ;;  %v1314_v28 = vmul.f32 %v4008_v36, %v4190_v61  ;;  %v1413_v16 = vmul.f32 %v4015_v12, %v4059_v59  ;;  %v1184_v59 = vld [vmem:[#allocation2 + $0x109] sm:$0xff] }
 0x179   : > { %v2032_v49 = vadd.f32 %v2000_v31, %v1933_v13  ;;  %v2196_v8 = vmul.f32 %v4133_v30, %v4194_v52  ;;  %v954_v4 = vadd.f32 %v922_v10, %v856_v7  ;;  %v1020_v58 = vmul.f32 %v3965_v46, %v4148_v56  ;;  %v4941_v22 = vld [vmem:[#allocation41_spill] sm:$0xff] }
 0x17a   : > { %v1738_v42 = vadd.f32 %v1706_v15, %v1640_v6  ;;  %v1804_v9 = vmul.f32 %v4077_v57, %v4137_v62  ;;  %v1902_v11 = vmul.f32 %v4088_v32, %v4154_v37  ;;  %v1346_v40 = vadd.f32 %v1314_v28, %v1248_v25  ;;  %v2506_v6 = vld [vmem:[#allocation2 + $0xf9] sm:$0xff] }
 0x17b   : > { %v2130_v45 = vadd.f32 %v2098_v50, %v2032_v49  ;;  %v2001_v31 = vmul.f32 %v4095_v18, %v4205_v2  ;;  %v1052_v38 = vadd.f32 %v1020_v58, %v954_v4  ;;  %v1119_v35 = vmul.f32 %v3978_v53, %v1086_v27  ;;  %v1087_v49 = vld [vmem:[#allocation2 + $0x110] sm:$0xff] }
 0x17c   : > { %v1836_v56 = vadd.f32 %v1804_v9, %v1738_v42  ;;  %v2099_v44 = vmul.f32 %v4105_v33, %v4213_v47  ;;  %v1445_v21 = vadd.f32 %v1413_v16, %v1346_v40  ;;  %v1511_v1 = vmul.f32 %v4039_v26, %v4081_v55  ;;  %v4241_v55 = vld [vmem:[#allocation2 + $0x2a8] sm:$0xff] }
 0x17d   : > { %v2228_v60 = vadd.f32 %v2196_v8, %v2130_v45  ;;  %v1151_v50 = vadd.f32 %v1119_v35, %v1052_v38  ;;  %v1217_v41 = vmul.f32 %v3994_v19, %v1184_v59  ;;  %v759_v0 = vadd.f32 %v4941_v22, %v4940_v14  ;;  %v4253_v4 = vld [vmem:[#allocation2 + $0x2a9] sm:$0xff]  ;;  %v1185_v45 = vld [vmem:[#allocation2 + $0x111] sm:$0xff] }
 0x17e   : > { %v1934_v48 = vadd.f32 %v1902_v11, %v1836_v56  ;;  %v1543_v39 = vadd.f32 %v1511_v1, %v1445_v21  ;;  %v1609_v13 = vmul.f32 %v4051_v34, %v4113_v23  ;;  %v1315_v15 = vmul.f32 %v4008_v36, %v4224_v20  ;;  %v4270_v14 = vld [vmem:[#allocation2 + $0x2aa] sm:$0xff] }
 0x17f   : > { %2260 = vst.msk [vmem:[%s3617_s10 + $0x78] sm:$0xff] %vm233_vm0, %v2228_v60  ;;  %v1249_v63 = vadd.f32 %v1217_v41, %v1151_v50  ;;  %v1414_v7 = vmul.f32 %v4015_v12, %v4124_v3  ;;  %v857_v10 = vadd.f32 %v4942_v5, %v759_v0  ;;  %v923_v25 = vmul.f32 %v2506_v6, %v3951_v29  ;;  %v4943_v60 = vld [vmem:[#allocation49_spill] sm:$0xff]  ;;  %v4944_v50 = vld [vmem:[#allocation46_spill] sm:$0xff] }
 0x180   : > { %v2033_v28 = vadd.f32 %v2001_v31, %v1934_v48  ;;  %v2197_v23 = vmul.f32 %v4133_v30, %v4230_v51  ;;  %v1641_v16 = vadd.f32 %v1609_v13, %v1543_v39  ;;  %v1707_v27 = vmul.f32 %v4070_v24, %v4165_v17  ;;  %v4281_v6 = vld [vmem:[#allocation2 + $0x2b8] sm:$0xff] }
 0x181   : > { %v1805_v8 = vmul.f32 %v4077_v57, %v4177_v54  ;;  %v1347_v3 = vadd.f32 %v1315_v15, %v1249_v63  ;;  %v955_v58 = vadd.f32 %v923_v25, %v857_v10  ;;  %v1021_v42 = vmul.f32 %v3965_v46, %v4190_v61  ;;  %v4945_v15 = vld [vmem:[#allocation51_spill] sm:$0xff] }
 0x182   : > { %v2131_v9 = vadd.f32 %v2099_v44, %v2033_v28  ;;  %v1739_v11 = vadd.f32 %v1707_v27, %v1641_v16  ;;  %v1903_v40 = vmul.f32 %v4088_v32, %v4194_v52  ;;  %v2002_v59 = vmul.f32 %v4095_v18, %v4241_v55  ;;  %v4266_v44 = vld [vmem:[#allocation2 + $0x112] sm:$0xff] }
 0x183   : > { %v1446_v31 = vadd.f32 %v1414_v7, %v1347_v3  ;;  %v1512_v38 = vmul.f32 %v4039_v26, %v4137_v62  ;;  %v1053_v35 = vadd.f32 %v1021_v42, %v955_v58  ;;  %v1120_v56 = vmul.f32 %v3978_v53, %v1087_v49  ;;  %v2507_v7 = vld [vmem:[#allocation2 + $0x109] sm:$0xff]  ;;  %v4289_v49 = vld [vmem:[#allocation2 + $0x2b9] sm:$0xff] }
 0x184   : > { %v2229_v21 = vadd.f32 %v2197_v23, %v2131_v9  ;;  %v1837_v1 = vadd.f32 %v1805_v8, %v1739_v11  ;;  %v2100_v61 = vmul.f32 %v4105_v33, %v4253_v4  ;;  %v760_v41 = vadd.f32 %v4944_v50, %v4943_v60  ;;  %v1088_v23 = vld [vmem:[#allocation2 + $0x120] sm:$0xff] }
 0x185   : > { %v1544_v22 = vadd.f32 %v1512_v38, %v1446_v31  ;;  %v1610_v0 = vmul.f32 %v4051_v34, %v4154_v37  ;;  %v1152_v62 = vadd.f32 %v1120_v56, %v1053_v35  ;;  %v1218_v48 = vmul.f32 %v3994_v19, %v1185_v45  ;;  %v4300_v38 = vld [vmem:[#allocation2 + $0x122] sm:$0xff]  ;;  %v4306_v60 = vld [vmem:[#allocation2 + $0x2ba] sm:$0xff] }
 0x186   : > { %2261 = vst.msk [vmem:[%s3617_s10 + $0x80] sm:$0xff] %vm233_vm0, %v2229_v21  ;;  %v1935_v39 = vadd.f32 %v1903_v40, %v1837_v1  ;;  %v1708_v13 = vmul.f32 %v4070_v24, %v4205_v2  ;;  %v858_v63 = vadd.f32 %v4945_v15, %v760_v41  ;;  %v924_v5 = vmul.f32 %v2507_v7, %v3951_v29  ;;  %v4946_v41 = vld [vmem:[#allocation50_spill] sm:$0xff] }
 0x187   : > { %v1642_v10 = vadd.f32 %v1610_v0, %v1544_v22  ;;  %v1250_v25 = vadd.f32 %v1218_v48, %v1152_v62  ;;  %v1316_v37 = vmul.f32 %v4008_v36, %v4266_v44  ;;  %v1415_v28 = vmul.f32 %v4015_v12, %v4165_v17  ;;  %v1186_v17 = vld [vmem:[#allocation2 + $0x121] sm:$0xff]  ;;  %v4948_v7 = vld [vmem:[#allocation54_spill] sm:$0xff] }
 0x188   : > { %v2034_v16 = vadd.f32 %v2002_v59, %v1935_v39  ;;  %v2198_v27 = vmul.f32 %v4133_v30, %v4270_v14  ;;  %v956_v8 = vadd.f32 %v924_v5, %v858_v63  ;;  %v1022_v3 = vmul.f32 %v3965_v46, %v4224_v20  ;;  %v4947_v22 = vld [vmem:[#allocation47_spill] sm:$0xff] }
 0x189   : > { %v1740_v58 = vadd.f32 %v1708_v13, %v1642_v10  ;;  %v1806_v42 = vmul.f32 %v4077_v57, %v4213_v47  ;;  %v1904_v9 = vmul.f32 %v4088_v32, %v4230_v51  ;;  %v1348_v11 = vadd.f32 %v1316_v37, %v1250_v25  ;;  %v2508_v10 = vld [vmem:[#allocation2 + $0x111] sm:$0xff] }
 0x18a   : > { %v2132_v40 = vadd.f32 %v2100_v61, %v2034_v16  ;;  %v2003_v59 = vmul.f32 %v4095_v18, %v4281_v6  ;;  %v1054_v45 = vadd.f32 %v1022_v3, %v956_v8  ;;  %v1121_v31 = vmul.f32 %v3978_v53, %v1088_v23  ;;  %v1089_v16 = vld [vmem:[#allocation2 + $0x128] sm:$0xff] }
 0x18b   : > { %v1838_v20 = vadd.f32 %v1806_v42, %v1740_v58  ;;  %v2101_v35 = vmul.f32 %v4105_v33, %v4289_v49  ;;  %v1447_v56 = vadd.f32 %v1415_v28, %v1348_v11  ;;  %v1513_v21 = vmul.f32 %v4039_v26, %v4177_v54  ;;  %v4317_v54 = vld [vmem:[#allocation2 + $0x2c0] sm:$0xff] }
 0x18c   : > { %v2230_v1 = vadd.f32 %v2198_v27, %v2132_v40  ;;  %v1153_v61 = vadd.f32 %v1121_v31, %v1054_v45  ;;  %v1219_v50 = vmul.f32 %v3994_v19, %v1186_v17  ;;  %v761_v0 = vadd.f32 %v4947_v22, %v4946_v41  ;;  %v4329_v8 = vld [vmem:[#allocation2 + $0x2c1] sm:$0xff]  ;;  %v1187_v40 = vld [vmem:[#allocation2 + $0x129] sm:$0xff] }
 0x18d   : > { %v1936_v62 = vadd.f32 %v1904_v9, %v1838_v20  ;;  %v1545_v48 = vadd.f32 %v1513_v21, %v1447_v56  ;;  %v1611_v39 = vmul.f32 %v4051_v34, %v4194_v52  ;;  %v1317_v13 = vmul.f32 %v4008_v36, %v4300_v38  ;;  %v4346_v41 = vld [vmem:[#allocation2 + $0x2c2] sm:$0xff] }
 0x18e   : > { %2262 = vst.msk [vmem:[%s3617_s10 + $0x88] sm:$0xff] %vm233_vm0, %v2230_v1  ;;  %v1251_v15 = vadd.f32 %v1219_v50, %v1153_v61  ;;  %v1416_v63 = vmul.f32 %v4015_v12, %v4205_v2  ;;  %v859_v5 = vadd.f32 %v4948_v7, %v761_v0  ;;  %v925_v25 = vmul.f32 %v2508_v10, %v3951_v29  ;;  %v4949_v1 = vld [vmem:[#allocation55_spill] sm:$0xff]  ;;  %v4950_v61 = vld [vmem:[#allocation52_spill] sm:$0xff]  ;;  %v4357_v10 = vld [vmem:[#allocation2 + $0x2d0] sm:$0xff] }
 0x18f   : > { %v2035_v37 = vadd.f32 %v2003_v59, %v1936_v62  ;;  %v2199_v52 = vmul.f32 %v4133_v30, %v4306_v60  ;;  %v1643_v28 = vadd.f32 %v1611_v39, %v1545_v48  ;;  %v1709_v23 = vmul.f32 %v4070_v24, %v4241_v55 }
 0x190   : > { %v1807_v27 = vmul.f32 %v4077_v57, %v4253_v4  ;;  %v1349_v2 = vadd.f32 %v1317_v13, %v1251_v15  ;;  %v957_v3 = vadd.f32 %v925_v25, %v859_v5  ;;  %v1023_v58 = vmul.f32 %v3965_v46, %v4266_v44  ;;  %v4951_v13 = vld [vmem:[#allocation56_spill] sm:$0xff] }
 0x191   : > { %v2133_v42 = vadd.f32 %v2101_v35, %v2035_v37  ;;  %v1741_v9 = vadd.f32 %v1709_v23, %v1643_v28  ;;  %v1905_v11 = vmul.f32 %v4088_v32, %v4270_v14  ;;  %v2004_v17 = vmul.f32 %v4095_v18, %v4317_v54  ;;  %v4342_v35 = vld [vmem:[#allocation2 + $0x12a] sm:$0xff] }
 0x192   : > { %v1448_v59 = vadd.f32 %v1416_v63, %v1349_v2  ;;  %v1514_v45 = vmul.f32 %v4039_v26, %v4213_v47  ;;  %v1055_v31 = vadd.f32 %v1023_v58, %v957_v3  ;;  %v1122_v20 = vmul.f32 %v3978_v53, %v1089_v16  ;;  %v2509_v63 = vld [vmem:[#allocation2 + $0x121] sm:$0xff]  ;;  %v4365_v16 = vld [vmem:[#allocation2 + $0x2d1] sm:$0xff] }
 0x193   : > { %v2231_v56 = vadd.f32 %v2199_v52, %v2133_v42  ;;  %v1839_v21 = vadd.f32 %v1807_v27, %v1741_v9  ;;  %v2102_v44 = vmul.f32 %v4105_v33, %v4329_v8  ;;  %v762_v50 = vadd.f32 %v4950_v61, %v4949_v1  ;;  %v1090_v52 = vld [vmem:[#allocation2 + $0x138] sm:$0xff] }
 0x194   : > { %v1546_v22 = vadd.f32 %v1514_v45, %v1448_v59  ;;  %v1612_v0 = vmul.f32 %v4051_v34, %v4230_v51  ;;  %v1154_v47 = vadd.f32 %v1122_v20, %v1055_v31  ;;  %v1220_v62 = vmul.f32 %v3994_v19, %v1187_v40  ;;  %v4376_v45 = vld [vmem:[#allocation2 + $0x13a] sm:$0xff]  ;;  %v4382_v1 = vld [vmem:[#allocation2 + $0x2d2] sm:$0xff] }
 0x195   : > { %2263 = vst.msk [vmem:[%s3617_s10 + $0x90] sm:$0xff] %vm233_vm0, %v2231_v56  ;;  %v1937_v48 = vadd.f32 %v1905_v11, %v1839_v21  ;;  %v1710_v39 = vmul.f32 %v4070_v24, %v4281_v6  ;;  %v860_v15 = vadd.f32 %v4951_v13, %v762_v50  ;;  %v926_v7 = vmul.f32 %v2509_v63, %v3951_v29  ;;  %v4952_v50 = vld [vmem:[#allocation57_spill] sm:$0xff]  ;;  %v4954_v63 = vld [vmem:[#allocation60_spill] sm:$0xff] }
 0x196   : > { %v1644_v5 = vadd.f32 %v1612_v0, %v1546_v22  ;;  %v1252_v25 = vadd.f32 %v1220_v62, %v1154_v47  ;;  %v1318_v51 = vmul.f32 %v4008_v36, %v4342_v35  ;;  %v1417_v37 = vmul.f32 %v4015_v12, %v4241_v55  ;;  %v1188_v55 = vld [vmem:[#allocation2 + $0x139] sm:$0xff]  ;;  %v4953_v22 = vld [vmem:[#allocation53_spill] sm:$0xff] }
 0x197   : > { %v2036_v28 = vadd.f32 %v2004_v17, %v1937_v48  ;;  %v2200_v23 = vmul.f32 %v4133_v30, %v4346_v41  ;;  %v958_v27 = vadd.f32 %v926_v7, %v860_v15  ;;  %v1024_v2 = vmul.f32 %v3965_v46, %v4300_v38 }
 0x198   : > { %v1742_v3 = vadd.f32 %v1710_v39, %v1644_v5  ;;  %v1808_v58 = vmul.f32 %v4077_v57, %v4289_v49  ;;  %v1906_v42 = vmul.f32 %v4088_v32, %v4306_v60  ;;  %v1350_v9 = vadd.f32 %v1318_v51, %v1252_v25  ;;  %v2510_v5 = vld [vmem:[#allocation2 + $0x129] sm:$0xff] }
 0x199   : > { %v2134_v11 = vadd.f32 %v2102_v44, %v2036_v28  ;;  %v2005_v17 = vmul.f32 %v4095_v18, %v4357_v10  ;;  %v1056_v40 = vadd.f32 %v1024_v2, %v958_v27  ;;  %v1123_v59 = vmul.f32 %v3978_v53, %v1090_v52  ;;  %v1091_v28 = vld [vmem:[#allocation2 + $0x140] sm:$0xff] }
 0x19a   : > { %v1840_v38 = vadd.f32 %v1808_v58, %v1742_v3  ;;  %v2103_v31 = vmul.f32 %v4105_v33, %v4365_v16  ;;  %v1449_v20 = vadd.f32 %v1417_v37, %v1350_v9  ;;  %v1515_v56 = vmul.f32 %v4039_v26, %v4253_v4  ;;  %v4393_v4 = vld [vmem:[#allocation2 + $0x2d8] sm:$0xff] }
 0x19b   : > { %v2232_v21 = vadd.f32 %v2200_v23, %v2134_v11  ;;  %v1155_v44 = vadd.f32 %v1123_v59, %v1056_v40  ;;  %v1221_v61 = vmul.f32 %v3994_v19, %v1188_v55  ;;  %v763_v0 = vadd.f32 %v4953_v22, %v4952_v50  ;;  %v4405_v27 = vld [vmem:[#allocation2 + $0x2d9] sm:$0xff]  ;;  %v1189_v11 = vld [vmem:[#allocation2 + $0x141] sm:$0xff] }
 0x19c   : > { %v1938_v47 = vadd.f32 %v1906_v42, %v1840_v38  ;;  %v1547_v62 = vadd.f32 %v1515_v56, %v1449_v20  ;;  %v1613_v48 = vmul.f32 %v4051_v34, %v4270_v14  ;;  %v1319_v39 = vmul.f32 %v4008_v36, %v4376_v45  ;;  %v4422_v50 = vld [vmem:[#allocation2 + $0x2da] sm:$0xff] }
 0x19d   : > { %2264 = vst.msk [vmem:[%s3617_s10 + $0x98] sm:$0xff] %vm233_vm0, %v2232_v21  ;;  %v1253_v13 = vadd.f32 %v1221_v61, %v1155_v44  ;;  %v1418_v15 = vmul.f32 %v4015_v12, %v4281_v6  ;;  %v861_v7 = vadd.f32 %v4954_v63, %v763_v0  ;;  %v927_v25 = vmul.f32 %v2510_v5, %v3951_v29  ;;  %v4955_v21 = vld [vmem:[#allocation61_spill] sm:$0xff]  ;;  %v4956_v44 = vld [vmem:[#allocation58_spill] sm:$0xff]  ;;  %v4433_v5 = vld [vmem:[#allocation2 + $0x2e8] sm:$0xff] }
 0x19e   : > { %v2037_v51 = vadd.f32 %v2005_v17, %v1938_v47  ;;  %v2201_v14 = vmul.f32 %v4133_v30, %v4382_v1  ;;  %v1645_v37 = vadd.f32 %v1613_v48, %v1547_v62  ;;  %v1711_v52 = vmul.f32 %v4070_v24, %v4317_v54 }
 0x19f   : > { %v1809_v23 = vmul.f32 %v4077_v57, %v4329_v8  ;;  %v1351_v6 = vadd.f32 %v1319_v39, %v1253_v13  ;;  %v959_v2 = vadd.f32 %v927_v25, %v861_v7  ;;  %v1025_v3 = vmul.f32 %v3965_v46, %v4342_v35  ;;  %v4957_v39 = vld [vmem:[#allocation62_spill] sm:$0xff] }
 0x1a0   : > { %v2135_v58 = vadd.f32 %v2103_v31, %v2037_v51  ;;  %v1743_v42 = vadd.f32 %v1711_v52, %v1645_v37  ;;  %v1907_v9 = vmul.f32 %v4088_v32, %v4346_v41  ;;  %v2006_v55 = vmul.f32 %v4095_v18, %v4393_v4  ;;  %v4418_v31 = vld [vmem:[#allocation2 + $0x142] sm:$0xff] }
 0x1a1   : > { %v1450_v17 = vadd.f32 %v1418_v15, %v1351_v6  ;;  %v1516_v40 = vmul.f32 %v4039_v26, %v4289_v49  ;;  %v1057_v59 = vadd.f32 %v1025_v3, %v959_v2  ;;  %v1124_v38 = vmul.f32 %v3978_v53, %v1091_v28  ;;  %v2511_v15 = vld [vmem:[#allocation2 + $0x139] sm:$0xff]  ;;  %v4441_v28 = vld [vmem:[#allocation2 + $0x2e9] sm:$0xff] }
 0x1a2   : > { %v2233_v20 = vadd.f32 %v2201_v14, %v2135_v58  ;;  %v1841_v56 = vadd.f32 %v1809_v23, %v1743_v42  ;;  %v2104_v35 = vmul.f32 %v4105_v33, %v4405_v27  ;;  %v764_v61 = vadd.f32 %v4956_v44, %v4955_v21  ;;  %v1092_v14 = vld [vmem:[#allocation2 + $0x150] sm:$0xff] }
 0x1a3   : > { %v1548_v22 = vadd.f32 %v1516_v40, %v1450_v17  ;;  %v1614_v0 = vmul.f32 %v4051_v34, %v4306_v60  ;;  %v1156_v49 = vadd.f32 %v1124_v38, %v1057_v59  ;;  %v1222_v47 = vmul.f32 %v3994_v19, %v1189_v11  ;;  %v4452_v40 = vld [vmem:[#allocation2 + $0x152] sm:$0xff]  ;;  %v4458_v21 = vld [vmem:[#allocation2 + $0x2ea] sm:$0xff] }
 0x1a4   : > { %2265 = vst.msk [vmem:[%s3617_s10 + $0xa0] sm:$0xff] %vm233_vm0, %v2233_v20  ;;  %v1939_v62 = vadd.f32 %v1907_v9, %v1841_v56  ;;  %v1712_v48 = vmul.f32 %v4070_v24, %v4357_v10  ;;  %v862_v13 = vadd.f32 %v4957_v39, %v764_v61  ;;  %v928_v63 = vmul.f32 %v2511_v15, %v3951_v29  ;;  %v4958_v61 = vld [vmem:[#allocation63_spill] sm:$0xff] }
 0x1a5   : > { %v1646_v7 = vadd.f32 %v1614_v0, %v1548_v22  ;;  %v1254_v25 = vadd.f32 %v1222_v47, %v1156_v49  ;;  %v1320_v60 = vmul.f32 %v4008_v36, %v4418_v31  ;;  %v1419_v51 = vmul.f32 %v4015_v12, %v4317_v54  ;;  %v1190_v54 = vld [vmem:[#allocation2 + $0x151] sm:$0xff]  ;;  %v4959_v22 = vld [vmem:[#allocation59_spill] sm:$0xff] }
 0x1a6   : > { %v2038_v37 = vadd.f32 %v2006_v55, %v1939_v62  ;;  %v2202_v52 = vmul.f32 %v4133_v30, %v4422_v50  ;;  %v960_v23 = vadd.f32 %v928_v63, %v862_v13  ;;  %v1026_v6 = vmul.f32 %v3965_v46, %v4376_v45  ;;  %v4960_v15 = vld [vmem:[#allocation67_spill] sm:$0xff] }
 0x1a7   : > { %v1744_v2 = vadd.f32 %v1712_v48, %v1646_v7  ;;  %v1810_v3 = vmul.f32 %v4077_v57, %v4365_v16  ;;  %v1908_v58 = vmul.f32 %v4088_v32, %v4382_v1  ;;  %v1352_v42 = vadd.f32 %v1320_v60, %v1254_v25  ;;  %v2512_v7 = vld [vmem:[#allocation2 + $0x141] sm:$0xff] }
 0x1a8   : > { %v2136_v9 = vadd.f32 %v2104_v35, %v2038_v37  ;;  %v2007_v55 = vmul.f32 %v4095_v18, %v4433_v5  ;;  %v1058_v11 = vadd.f32 %v1026_v6, %v960_v23  ;;  %v1125_v17 = vmul.f32 %v3978_v53, %v1092_v14  ;;  %v1093_v37 = vld [vmem:[#allocation2 + $0x158] sm:$0xff] }
 0x1a9   : > { %v1842_v45 = vadd.f32 %v1810_v3, %v1744_v2  ;;  %v2105_v59 = vmul.f32 %v4105_v33, %v4441_v28  ;;  %v1451_v38 = vadd.f32 %v1419_v51, %v1352_v42  ;;  %v1517_v20 = vmul.f32 %v4039_v26, %v4329_v8  ;;  %v4469_v8 = vld [vmem:[#allocation2 + $0x2f0] sm:$0xff] }
 0x1aa   : > { %v2234_v56 = vadd.f32 %v2202_v52, %v2136_v9  ;;  %v1157_v35 = vadd.f32 %v1125_v17, %v1058_v11  ;;  %v1223_v44 = vmul.f32 %v3994_v19, %v1190_v54  ;;  %v765_v0 = vadd.f32 %v4959_v22, %v4958_v61  ;;  %v4481_v23 = vld [vmem:[#allocation2 + $0x2f1] sm:$0xff]  ;;  %v1191_v9 = vld [vmem:[#allocation2 + $0x159] sm:$0xff] }
 0x1ab   : > { %v1940_v49 = vadd.f32 %v1908_v58, %v1842_v45  ;;  %v1549_v47 = vadd.f32 %v1517_v20, %v1451_v38  ;;  %v1615_v62 = vmul.f32 %v4051_v34, %v4346_v41  ;;  %v1321_v48 = vmul.f32 %v4008_v36, %v4452_v40  ;;  %v4498_v61 = vld [vmem:[#allocation2 + $0x2f2] sm:$0xff] }
 0x1ac   : > { %2266 = vst.msk [vmem:[%s3617_s10 + $0xa8] sm:$0xff] %vm233_vm0, %v2234_v56  ;;  %v1255_v39 = vadd.f32 %v1223_v44, %v1157_v35  ;;  %v1420_v13 = vmul.f32 %v4015_v12, %v4357_v10  ;;  %v863_v63 = vadd.f32 %v4960_v15, %v765_v0  ;;  %v929_v25 = vmul.f32 %v2512_v7, %v3951_v29  ;;  %v4961_v56 = vld [vmem:[#allocation66_spill] sm:$0xff]  ;;  %v4962_v35 = vld [vmem:[#allocation64_spill] sm:$0xff]  ;;  %v4509_v7 = vld [vmem:[#allocation2 + $0x300] sm:$0xff] }
 0x1ad   : > { %v2039_v60 = vadd.f32 %v2007_v55, %v1940_v49  ;;  %v2203_v41 = vmul.f32 %v4133_v30, %v4458_v21  ;;  %v1647_v51 = vadd.f32 %v1615_v62, %v1549_v47  ;;  %v1713_v14 = vmul.f32 %v4070_v24, %v4393_v4 }
 0x1ae   : > { %v1811_v52 = vmul.f32 %v4077_v57, %v4405_v27  ;;  %v1353_v10 = vadd.f32 %v1321_v48, %v1255_v39  ;;  %v961_v6 = vadd.f32 %v929_v25, %v863_v63  ;;  %v1027_v2 = vmul.f32 %v3965_v46, %v4418_v31  ;;  %v4963_v48 = vld [vmem:[#allocation68_spill] sm:$0xff] }
 0x1af   : > { %v2137_v3 = vadd.f32 %v2105_v59, %v2039_v60  ;;  %v1745_v58 = vadd.f32 %v1713_v14, %v1647_v51  ;;  %v1909_v42 = vmul.f32 %v4088_v32, %v4422_v50  ;;  %v2008_v54 = vmul.f32 %v4095_v18, %v4469_v8  ;;  %v4494_v59 = vld [vmem:[#allocation2 + $0x15a] sm:$0xff] }
 0x1b0   : > { %v1452_v55 = vadd.f32 %v1420_v13, %v1353_v10  ;;  %v1518_v11 = vmul.f32 %v4039_v26, %v4365_v16  ;;  %v1059_v17 = vadd.f32 %v1027_v2, %v961_v6  ;;  %v1126_v45 = vmul.f32 %v3978_v53, %v1093_v37  ;;  %v2513_v13 = vld [vmem:[#allocation2 + $0x151] sm:$0xff]  ;;  %v4517_v37 = vld [vmem:[#allocation2 + $0x301] sm:$0xff] }
 0x1b1   : > { %v2235_v38 = vadd.f32 %v2203_v41, %v2137_v3  ;;  %v1843_v20 = vadd.f32 %v1811_v52, %v1745_v58  ;;  %v2106_v31 = vmul.f32 %v4105_v33, %v4481_v23  ;;  %v766_v44 = vadd.f32 %v4962_v35, %v4961_v56  ;;  %v1094_v41 = vld [vmem:[#allocation2 + $0x168] sm:$0xff]  ;;  %v4964_v56 = vld [vmem:[#allocation69_spill] sm:$0xff] }
 0x1b2   : > { %v1550_v22 = vadd.f32 %v1518_v11, %v1452_v55  ;;  %v1616_v0 = vmul.f32 %v4051_v34, %v4382_v1  ;;  %v1158_v16 = vadd.f32 %v1126_v45, %v1059_v17  ;;  %v1224_v49 = vmul.f32 %v3994_v19, %v1191_v9  ;;  %v4528_v55 = vld [vmem:[#allocation2 + $0x16a] sm:$0xff] }
 0x1b3   : > { %2267 = vst.msk [vmem:[%s3617_s10 + $0xb0] sm:$0xff] %vm233_vm0, %v2235_v38  ;;  %v1941_v47 = vadd.f32 %v1909_v42, %v1843_v20  ;;  %v1714_v62 = vmul.f32 %v4070_v24, %v4433_v5  ;;  %v864_v39 = vadd.f32 %v4963_v48, %v766_v44  ;;  %v930_v15 = vmul.f32 %v2513_v13, %v3951_v29  ;;  %v4534_v38 = vld [vmem:[#allocation2 + $0x302] sm:$0xff]  ;;  %v4965_v35 = vld [vmem:[#allocation65_spill] sm:$0xff]  ;;  %v2514_v48 = vld [vmem:[#allocation2 + $0x159] sm:$0xff] }
 0x1b4   : > { %v1648_v63 = vadd.f32 %v1616_v0, %v1550_v22  ;;  %v1256_v25 = vadd.f32 %v1224_v49, %v1158_v16  ;;  %v1322_v1 = vmul.f32 %v4008_v36, %v4494_v59  ;;  %v1421_v60 = vmul.f32 %v4015_v12, %v4393_v4  ;;  %v1192_v4 = vld [vmem:[#allocation2 + $0x169] sm:$0xff] }
 0x1b5   : > { %v2040_v51 = vadd.f32 %v2008_v54, %v1941_v47  ;;  %v2204_v14 = vmul.f32 %v4133_v30, %v4498_v61  ;;  %v962_v52 = vadd.f32 %v930_v15, %v864_v39  ;;  %v1028_v29 = vmul.f32 %v3965_v46, %v4452_v40  ;;  %v4553_v39 = vld [vmem:[%s4812_s0 + $0x4] ss:$0 sm:$0xff] }
 0x1b6   : > { %v1746_v10 = vadd.f32 %v1714_v62, %v1648_v63  ;;  %v1812_v6 = vmul.f32 %v4077_v57, %v4441_v28  ;;  %v1910_v2 = vmul.f32 %v4088_v32, %v4458_v21  ;;  %v1354_v3 = vadd.f32 %v1322_v1, %v1256_v25  ;;  %v1095_v25 = vld [vmem:[#allocation2 + $0x170] sm:$0xff] }
 0x1b7   : > { %v2138_v58 = vadd.f32 %v2106_v31, %v2040_v51  ;;  %v2009_v42 = vmul.f32 %v4095_v18, %v4509_v7  ;;  %v1060_v54 = vadd.f32 %v1028_v29, %v962_v52  ;;  %v1127_v9 = vmul.f32 %v3978_v53, %v1094_v41  ;;  %v4567_v41 = vld [vmem:[%s4812_s0 + $0x5] ss:$0 sm:$0xff] }
 0x1b8   : > { %v1844_v46 = vadd.f32 %v1812_v6, %v1746_v10  ;;  %v2107_v40 = vmul.f32 %v4105_v33, %v4517_v37  ;;  %v1453_v11 = vadd.f32 %v1421_v60, %v1354_v3  ;;  %v1519_v17 = vmul.f32 %v4039_v26, %v4405_v27  ;;  %v4545_v27 = vld [vmem:[#allocation2 + $0x308] sm:$0xff]  ;;  %v1193_v6 = vld [vmem:[#allocation2 + $0x171] sm:$0xff] }
 0x1b9   : > { %v2236_v45 = vadd.f32 %v2204_v14, %v2138_v58  ;;  %v1159_v20 = vadd.f32 %v1127_v9, %v1060_v54  ;;  %v1225_v31 = vmul.f32 %v3994_v19, %v1192_v4  ;;  %v767_v44 = vadd.f32 %v4965_v35, %v4964_v56  ;;  %v4966_v19 = vld [vmem:[#allocation72_spill] sm:$0xff]  ;;  %v4580_v58 = vld [vmem:[%s4812_s0 + $0x6] ss:$0 sm:$0xff] }
 0x1ba   : > { %v1942_v53 = vadd.f32 %v1910_v2, %v1844_v46  ;;  %v1551_v22 = vadd.f32 %v1519_v17, %v1453_v11  ;;  %v1617_v0 = vmul.f32 %v4051_v34, %v4422_v50  ;;  %v1323_v16 = vmul.f32 %v4008_v36, %v4528_v55  ;;  %v4585_v46 = vld [vmem:[#allocation2 + $0x172] sm:$0xff] }
 0x1bb   : > { %2268 = vst.msk [vmem:[%s3617_s10 + $0xb8] sm:$0xff] %vm233_vm0, %v2236_v45  ;;  %v1257_v49 = vadd.f32 %v1225_v31, %v1159_v20  ;;  %v1422_v47 = vmul.f32 %v4015_v12, %v4433_v5  ;;  %v865_v62 = vadd.f32 %v4966_v19, %v767_v44  ;;  %v931_v50 = vmul.f32 %v4553_v39, %v2514_v48  ;;  %v4562_v5 = vld [vmem:[#allocation2 + $0x309] sm:$0xff]  ;;  %v4968_v11 = vld [vmem:[#allocation70_spill] sm:$0xff]  ;;  %v4596_v31 = vld [vmem:[%s4812_s0 + $0x7] ss:$0 sm:$0xff] }
 0x1bc   : > { %v2041_v13 = vadd.f32 %v2009_v42, %v1942_v53  ;;  %v2205_v36 = vmul.f32 %v4133_v30, %v4534_v38  ;;  %v1649_v15 = vadd.f32 %v1617_v0, %v1551_v22  ;;  %v1715_v63 = vmul.f32 %v4070_v24, %v4469_v8  ;;  %v4589_v45 = vld [vmem:[#allocation2 + $0x30a] sm:$0xff]  ;;  %v4969_v53 = vld [vmem:[#allocation74_spill] sm:$0xff]  ;;  %v1096_v48 = vld [vmem:[#allocation2 + $0x180] sm:$0xff] }
 0x1bd   : > { %v1813_v12 = vmul.f32 %v4077_v57, %v4481_v23  ;;  %v1355_v1 = vadd.f32 %v1323_v16, %v1257_v49  ;;  %v963_v60 = vadd.f32 %v931_v50, %v865_v62  ;;  %v1029_v51 = vmul.f32 %v4567_v41, %v4494_v59  ;;  %v2519_v0 = vld [vmem:[#allocation2 + $0x169] sm:$0xff] }
 0x1be   : > { %v2139_v14 = vadd.f32 %v2107_v40, %v2041_v13  ;;  %v1747_v52 = vadd.f32 %v1715_v63, %v1649_v15  ;;  %v1911_v29 = vmul.f32 %v4088_v32, %v4498_v61  ;;  %v2010_v10 = vmul.f32 %v4095_v18, %v4545_v27  ;;  %v4967_v40 = vld [vmem:[#allocation73_spill] sm:$0xff] }
 0x1bf   : > { %v1454_v2 = vadd.f32 %v1422_v47, %v1355_v1  ;;  %v1520_v3 = vmul.f32 %v4039_v26, %v4441_v28  ;;  %v1061_v4 = vadd.f32 %v1029_v51, %v963_v60  ;;  %v1128_v59 = vmul.f32 %v4580_v58, %v1095_v25  ;;  %v4610_v47 = vld [vmem:[%s4812_s0 + $0x8] ss:$0 sm:$0xff] }
 0x1c0   : > { %v2237_v42 = vadd.f32 %v2205_v36, %v2139_v14  ;;  %v1845_v54 = vadd.f32 %v1813_v12, %v1747_v52  ;;  %v2108_v9 = vmul.f32 %v4105_v33, %v4562_v5  ;;  %v768_v17 = vadd.f32 %v4968_v11, %v4967_v40  ;;  %v4623_v36 = vld [vmem:[#allocation2 + $0x319] sm:$0xff]  ;;  %v4653_v11 = vld [vmem:[%s4812_s0 + $0xb] ss:$0 sm:$0xff] }
 0x1c1   : > { %v1552_v26 = vadd.f32 %v1520_v3, %v1454_v2  ;;  %v1618_v28 = vmul.f32 %v4051_v34, %v4458_v21  ;;  %v1160_v20 = vadd.f32 %v1128_v59, %v1061_v4  ;;  %v1226_v56 = vmul.f32 %v4596_v31, %v1193_v6  ;;  %v4605_v21 = vld [vmem:[#allocation2 + $0x318] sm:$0xff] }
 0x1c2   : > { %2269 = vst.msk [vmem:[%s3617_s10 + $0xc0] sm:$0xff] %vm233_vm0, %v2237_v42  ;;  %v1943_v35 = vadd.f32 %v1911_v29, %v1845_v54  ;;  %v1716_v44 = vmul.f32 %v4070_v24, %v4509_v7  ;;  %v866_v22 = vadd.f32 %v4969_v53, %v768_v17  ;;  %v932_v16 = vmul.f32 %v2519_v0, %v4553_v39  ;;  %v4617_v24 = vld [vmem:[%s4812_s0 + $0x9] ss:$0 sm:$0xff]  ;;  %v4645_v3 = vld [vmem:[#allocation2 + $0x31a] sm:$0xff] }
 0x1c3   : > { %v1650_v34 = vadd.f32 %v1618_v28, %v1552_v26  ;;  %v1258_v49 = vadd.f32 %v1226_v56, %v1160_v20  ;;  %v1324_v19 = vmul.f32 %v4610_v47, %v4585_v46  ;;  %v1423_v62 = vmul.f32 %v4617_v24, %v4469_v8  ;;  %v1194_v8 = vld [vmem:[#allocation2 + $0x181] sm:$0xff] }
 0x1c4   : > { %v2042_v50 = vadd.f32 %v2010_v10, %v1943_v35  ;;  %v2206_v13 = vmul.f32 %v4133_v30, %v4589_v45  ;;  %v964_v15 = vadd.f32 %v932_v16, %v866_v22  ;;  %v1030_v63 = vmul.f32 %v4567_v41, %v4528_v55  ;;  %v4634_v10 = vld [vmem:[#allocation2 + $0x182] sm:$0xff]  ;;  %v4672_v16 = vld [vmem:[%s4812_s0 + $0xc] ss:$0 sm:$0xff] }
 0x1c5   : > { %v1748_v25 = vadd.f32 %v1716_v44, %v1650_v34  ;;  %v1814_v12 = vmul.f32 %v4077_v57, %v4517_v37  ;;  %v1912_v1 = vmul.f32 %v4088_v32, %v4534_v38  ;;  %v1356_v60 = vadd.f32 %v1324_v19, %v1258_v49  ;;  %v4641_v32 = vld [vmem:[%s4812_s0 + $0xa] ss:$0 sm:$0xff]  ;;  %v4970_v42 = vld [vmem:[#allocation75_spill] sm:$0xff]  ;;  %v2524_v44 = vld [vmem:[#allocation2 + $0x171] sm:$0xff] }
 0x1c6   : > { %v2140_v51 = vadd.f32 %v2108_v9, %v2042_v50  ;;  %v2011_v14 = vmul.f32 %v4095_v18, %v4605_v21  ;;  %v1062_v52 = vadd.f32 %v1030_v63, %v964_v15  ;;  %v1129_v29 = vmul.f32 %v4580_v58, %v1096_v48  ;;  %v4971_v54 = vld [vmem:[#allocation71_spill] sm:$0xff]  ;;  %v4972_v56 = vld [vmem:[#allocation80_spill] sm:$0xff] }
 0x1c7   : > { %v1846_v55 = vadd.f32 %v1814_v12, %v1748_v25  ;;  %v2109_v6 = vmul.f32 %v4105_v33, %v4623_v36  ;;  %v1455_v57 = vadd.f32 %v1423_v62, %v1356_v60  ;;  %v1521_v2 = vmul.f32 %v4641_v32, %v4481_v23  ;;  %v4661_v26 = vld [vmem:[#allocation2 + $0x320] sm:$0xff]  ;;  %v1097_v49 = vld [vmem:[#allocation2 + $0x188] sm:$0xff] }
 0x1c8   : > { %v2238_v18 = vadd.f32 %v2206_v13, %v2140_v51  ;;  %v1161_v4 = vadd.f32 %v1129_v29, %v1062_v52  ;;  %v1227_v59 = vmul.f32 %v4596_v31, %v1194_v8  ;;  %v769_v9 = vadd.f32 %v4971_v54, %v4970_v42  ;;  %v4683_v62 = vld [vmem:[#allocation2 + $0x321] sm:$0xff]  ;;  %v4690_v63 = vld [vmem:[%s4812_s0 + $0xe] ss:$0 sm:$0xff]  ;;  %v4697_v12 = vld [vmem:[%s4812_s0 + $0xf] ss:$0 sm:$0xff] }
 0x1c9   : > { %v1944_v40 = vadd.f32 %v1912_v1, %v1846_v55  ;;  %v1553_v33 = vadd.f32 %v1521_v2, %v1455_v57  ;;  %v1619_v17 = vmul.f32 %v4653_v11, %v4498_v61  ;;  %v1325_v23 = vmul.f32 %v4610_v47, %v4634_v10  ;;  %v1195_v60 = vld [vmem:[#allocation2 + $0x189] sm:$0xff] }
 0x1ca   : > { %2270 = vst.msk [vmem:[%s3617_s10 + $0xc8] sm:$0xff] %vm233_vm0, %v2238_v18  ;;  %v1259_v28 = vadd.f32 %v1227_v59, %v1161_v4  ;;  %v1424_v20 = vmul.f32 %v4617_v24, %v4509_v7  ;;  %v867_v35 = vadd.f32 %v4972_v56, %v769_v9  ;;  %v933_v53 = vmul.f32 %v2524_v44, %v4553_v39  ;;  %v4679_v7 = vld [vmem:[%s4812_s0 + $0xd] ss:$0 sm:$0xff]  ;;  %v4973_v18 = vld [vmem:[#allocation82_spill] sm:$0xff]  ;;  %v4974_v4 = vld [vmem:[#allocation77_spill] sm:$0xff] }
 0x1cb   : > { %v2043_v22 = vadd.f32 %v2011_v14, %v1944_v40  ;;  %v2207_v61 = vmul.f32 %v4133_v30, %v4645_v3  ;;  %v1651_v0 = vadd.f32 %v1619_v17, %v1553_v33  ;;  %v1717_v34 = vmul.f32 %v4672_v16, %v4545_v27  ;;  %v1293_v2 = vld [vmem:[#allocation2 + $0x18a] sm:$0xff]  ;;  %v1098_v40 = vld [vmem:[#allocation2 + $0x198] sm:$0xff] }
 0x1cc   : > { %v1815_v19 = vmul.f32 %v4679_v7, %v4562_v5  ;;  %v1357_v30 = vadd.f32 %v1325_v23, %v1259_v28  ;;  %v965_v48 = vadd.f32 %v933_v53, %v867_v35  ;;  %v1031_v50 = vmul.f32 %v4567_v41, %v4585_v46  ;;  %v901_v46 = vld [vmem:[#allocation2 + $0x181] sm:$0xff]  ;;  %v4975_v28 = vld [vmem:[#allocation81_spill] sm:$0xff] }
 0x1cd   : > { %v2141_v13 = vadd.f32 %v2109_v6, %v2043_v22  ;;  %v1749_v15 = vadd.f32 %v1717_v34, %v1651_v0  ;;  %v1913_v25 = vmul.f32 %v4690_v63, %v4589_v45  ;;  %v2012_v1 = vmul.f32 %v4697_v12, %v4661_v26  ;;  %v4707_v6 = vld [vmem:[%s4812_s0 + $0x10] ss:$0 sm:$0xff]  ;;  %v804_v33 = vld [vmem:[#allocation2 + $0x188] sm:$0xff] }
 0x1ce   : > { %v1456_v8 = vadd.f32 %v1424_v20, %v1357_v30  ;;  %v1522_v51 = vmul.f32 %v4641_v32, %v4517_v37  ;;  %v1063_v14 = vadd.f32 %v1031_v50, %v965_v48  ;;  %v1130_v52 = vmul.f32 %v4580_v58, %v1097_v49  ;;  %v4722_v35 = vld [vmem:[#allocation2 + $0x322] sm:$0xff]  ;;  %v1980_v0 = vld [vmem:[#allocation2 + $0x330] sm:$0xff] }
 0x1cf   : > { %v2239_v29 = vadd.f32 %v2207_v61, %v2141_v13  ;;  %v1847_v55 = vadd.f32 %v1815_v19, %v1749_v15  ;;  %v2110_v57 = vmul.f32 %v4707_v6, %v4683_v62  ;;  %v770_v59 = vadd.f32 %v4974_v4, %v4973_v18  ;;  %v2530_v30 = vld [vmem:[%s4812_s0 + $0x3] ss:$0 sm:$0xff]  ;;  %v2078_v18 = vld [vmem:[#allocation2 + $0x331] sm:$0xff] }
 0x1d0   : > { %v1554_v42 = vadd.f32 %v1522_v51, %v1456_v8  ;;  %v1620_v37 = vmul.f32 %v4653_v11, %v4534_v38  ;;  %v1162_v54 = vadd.f32 %v1130_v52, %v1063_v14  ;;  %v1228_v9 = vmul.f32 %v4596_v31, %v1195_v60  ;;  %v1294_v8 = vld [vmem:[#allocation2 + $0x19a] sm:$0xff]  ;;  %v902_v51 = vld [vmem:[#allocation2 + $0x189] sm:$0xff] }
 0x1d1   : > { %2271 = vst.msk [vmem:[%s3617_s10 + $0xd0] sm:$0xff] %vm233_vm0, %v2239_v29  ;;  %v1945_v17 = vadd.f32 %v1913_v25, %v1847_v55  ;;  %v1718_v23 = vmul.f32 %v4672_v16, %v4605_v21  ;;  %v868_v20 = vadd.f32 %v4975_v28, %v770_v59  ;;  %v934_v56 = vmul.f32 %v4553_v39, %v901_v46  ;;  %v1196_v25 = vld [vmem:[#allocation2 + $0x199] sm:$0xff] }
 0x1d2   : > { %v1652_v44 = vadd.f32 %v1620_v37, %v1554_v42  ;;  %v1260_v53 = vadd.f32 %v1228_v9, %v1162_v54  ;;  %v1326_v38 = vmul.f32 %v4610_v47, %v1293_v2  ;;  %v1425_v22 = vmul.f32 %v4617_v24, %v4545_v27  ;;  %v4976_v42 = vld [vmem:[#allocation79_spill] sm:$0xff] }
 0x1d3   : > { %v2044_v61 = vadd.f32 %v2012_v1, %v1945_v17  ;;  %v966_v34 = vadd.f32 %v934_v56, %v868_v20  ;;  %v1032_v49 = vmul.f32 %v4567_v41, %v4634_v10  ;;  %v1131_v19 = vmul.f32 %v4580_v58, %v1098_v40  ;;  %v4738_v1 = vld [vmem:[%s4812_s0 + $0x11] ss:$0 sm:$0xff]  ;;  %v1099_v17 = vld [vmem:[#allocation2 + $0x1a0] sm:$0xff] }
 0x1d4   : > { %v837_v48 = vmul.f32 %v2530_v30, %v804_v33  ;;  %v1750_v50 = vadd.f32 %v1718_v23, %v1652_v44  ;;  %v1816_v13 = vmul.f32 %v4679_v7, %v4623_v36  ;;  %v1358_v15 = vadd.f32 %v1326_v38, %v1260_v53  ;;  %v2176_v23 = vld [vmem:[#allocation2 + $0x332] sm:$0xff]  ;;  %v1197_v30 = vld [vmem:[#allocation2 + $0x1a1] sm:$0xff] }
 0x1d5   : > { %v2142_v27 = vadd.f32 %v2110_v57, %v2044_v61  ;;  %v2208_v10 = vmul.f32 %v4738_v1, %v4722_v35  ;;  %v1914_v60 = vmul.f32 %v4690_v63, %v4645_v3  ;;  %v1064_v46 = vadd.f32 %v1032_v49, %v966_v34 }
 0x1d6   : > { %v1848_v14 = vadd.f32 %v1816_v13, %v1750_v50  ;;  %v2013_v52 = vmul.f32 %v4697_v12, %v1980_v0  ;;  %v1457_v29 = vadd.f32 %v1425_v22, %v1358_v15  ;;  %v1523_v55 = vmul.f32 %v4641_v32, %v4562_v5 }
 0x1d7   : > { %v2240_v57 = vadd.f32 %v2208_v10, %v2142_v27  ;;  %v1163_v4 = vadd.f32 %v1131_v19, %v1064_v46  ;;  %v1229_v59 = vmul.f32 %v4596_v31, %v1196_v25  ;;  %v771_v37 = vadd.f32 %v4976_v42, %v3911_v43  ;;  %v2079_v10 = vld [vmem:[#allocation2 + $0x339] sm:$0xff] }
 0x1d8   : > { %v1946_v54 = vadd.f32 %v1914_v60, %v1848_v14  ;;  %v1555_v9 = vadd.f32 %v1523_v55, %v1457_v29  ;;  %v1621_v40 = vmul.f32 %v4653_v11, %v4589_v45  ;;  %v1327_v33 = vmul.f32 %v4610_v47, %v1294_v8 }
 0x1d9   : > { %2272 = vst.msk [vmem:[%s3617_s10 + $0xd8] sm:$0xff] %vm233_vm0, %v2240_v57  ;;  %v1261_v5 = vadd.f32 %v1229_v59, %v1163_v4  ;;  %v1426_v28 = vmul.f32 %v4617_v24, %v4605_v21  ;;  %v869_v20 = vadd.f32 %v837_v48, %v771_v37  ;;  %v935_v56 = vmul.f32 %v4553_v39, %v902_v51  ;;  %v1981_v48 = vld [vmem:[#allocation2 + $0x338] sm:$0xff] }
 0x1da   : > { %v2045_v44 = vadd.f32 %v2013_v52, %v1946_v54  ;;  %v2111_v43 = vmul.f32 %v4707_v6, %v2078_v18  ;;  %v1653_v53 = vadd.f32 %v1621_v40, %v1555_v9  ;;  %v1719_v45 = vmul.f32 %v4672_v16, %v4661_v26  ;;  %v2177_v52 = vld [vmem:[#allocation2 + $0x33a] sm:$0xff] }
 0x1db   : > { %v1359_v38 = vadd.f32 %v1327_v33, %v1261_v5  ;;  %v967_v22 = vadd.f32 %v935_v56, %v869_v20  ;;  %v1033_v61 = vmul.f32 %v4567_v41, %v1293_v2  ;;  %v1132_v34 = vmul.f32 %v4580_v58, %v1099_v17  ;;  %v1295_v2 = vld [vmem:[#allocation2 + $0x1a2] sm:$0xff] }
 0x1dc   : > { %v2143_v49 = vadd.f32 %v2111_v43, %v2045_v44  ;;  %v2209_v19 = vmul.f32 %v4738_v1, %v2176_v23  ;;  %v1751_v21 = vadd.f32 %v1719_v45, %v1653_v53  ;;  %v1817_v39 = vmul.f32 %v4679_v7, %v4683_v62  ;;  %v2080_v5 = vld [vmem:[#allocation2 + $0x349] sm:$0xff] }
 0x1dd   : > { %v1458_v50 = vadd.f32 %v1426_v28, %v1359_v38  ;;  %v1524_v13 = vmul.f32 %v4641_v32, %v4623_v36  ;;  %v1065_v15 = vadd.f32 %v1033_v61, %v967_v22  ;;  %v1915_v41 = vmul.f32 %v4690_v63, %v4722_v35  ;;  %v1983_v45 = vld [vmem:[#allocation2 + $0x350] sm:$0xff] }
 0x1de   : > { %v2241_v25 = vadd.f32 %v2209_v19, %v2143_v49  ;;  %v1849_v27 = vadd.f32 %v1817_v39, %v1751_v21  ;;  %v1622_v58 = vmul.f32 %v4653_v11, %v4645_v3  ;;  %v1720_v46 = vmul.f32 %v4672_v16, %v1980_v0  ;;  %v1982_v0 = vld [vmem:[#allocation2 + $0x348] sm:$0xff]  ;;  %v2179_v19 = vld [vmem:[#allocation2 + $0x352] sm:$0xff] }
 0x1df   : > { %v1556_v60 = vadd.f32 %v1524_v13, %v1458_v50  ;;  %v1164_v8 = vadd.f32 %v1132_v34, %v1065_v15  ;;  %v1230_v51 = vmul.f32 %v4596_v31, %v1197_v30  ;;  %v2014_v14 = vmul.f32 %v4697_v12, %v1981_v48  ;;  %v2081_v34 = vld [vmem:[#allocation2 + $0x351] sm:$0xff] }
 0x1e0   : > { %2273 = vst.msk [vmem:[%s3617_s10 + $0xe0] sm:$0xff] %vm233_vm0, %v2241_v25  ;;  %v1947_v36 = vadd.f32 %v1915_v41, %v1849_v27  ;;  %v1328_v57 = vmul.f32 %v4610_v47, %v1295_v2  ;;  %v1427_v3 = vmul.f32 %v4617_v24, %v4661_v26  ;;  %v2112_v59 = vmul.f32 %v4707_v6, %v2079_v10 }
 0x1e1   : > { %v1654_v29 = vadd.f32 %v1622_v58, %v1556_v60  ;;  %v1262_v55 = vadd.f32 %v1230_v51, %v1164_v8  ;;  %v1818_v31 = vmul.f32 %v4679_v7, %v2078_v18  ;;  %v2210_v9 = vmul.f32 %v4738_v1, %v2177_v52 }
 0x1e2   : > { %v2046_v4 = vadd.f32 %v2014_v14, %v1947_v36  ;;  %v1916_v40 = vmul.f32 %v4690_v63, %v2176_v23  ;;  %v2015_v47 = vmul.f32 %v4697_v12, %v1982_v0  ;;  %v1525_v24 = vmul.f32 %v4641_v32, %v4683_v62  ;;  %v2178_v23 = vld [vmem:[#allocation2 + $0x34a] sm:$0xff] }
 0x1e3   : > { %v1752_v42 = vadd.f32 %v1720_v46, %v1654_v29  ;;  %v1360_v37 = vadd.f32 %v1328_v57, %v1262_v55  ;;  %v1623_v18 = vmul.f32 %v4653_v11, %v4722_v35  ;;  %v1721_v56 = vmul.f32 %v4672_v16, %v1981_v48 }
 0x1e4   : > { %v2144_v54 = vadd.f32 %v2112_v59, %v2046_v4  ;;  %v2113_v43 = vmul.f32 %v4707_v6, %v2080_v5  ;;  %v2211_v32 = vmul.f32 %v4738_v1, %v2178_v23  ;;  %v1819_v22 = vmul.f32 %v4679_v7, %v2079_v10 }
 0x1e5   : > { %v1850_v33 = vadd.f32 %v1818_v31, %v1752_v42  ;;  %v1459_v17 = vadd.f32 %v1427_v3, %v1360_v37  ;;  %v1917_v16 = vmul.f32 %v4690_v63, %v2177_v52  ;;  %v2016_v35 = vmul.f32 %v4697_v12, %v1983_v45 }
 0x1e6   : > { %v2242_v26 = vadd.f32 %v2210_v9, %v2144_v54  ;;  %v2114_v39 = vmul.f32 %v4707_v6, %v2081_v34  ;;  %v2212_v48 = vmul.f32 %v4738_v1, %v2179_v19 }
 0x1e7   : > { %v1948_v28 = vadd.f32 %v1916_v40, %v1850_v33  ;;  %v1557_v20 = vadd.f32 %v1525_v24, %v1459_v17 }
 0x1e8   : > { %2274 = vst.msk [vmem:[%s3617_s10 + $0xe8] sm:$0xff] %vm233_vm0, %v2242_v26 }
 0x1e9   : > { %v2047_v44 = vadd.f32 %v2015_v47, %v1948_v28  ;;  %v1655_v53 = vadd.f32 %v1623_v18, %v1557_v20 }
 0x1eb   : > { %v2145_v38 = vadd.f32 %v2113_v43, %v2047_v44  ;;  %v1753_v62 = vadd.f32 %v1721_v56, %v1655_v53 }
 0x1ed   : > { %v2243_v61 = vadd.f32 %v2211_v32, %v2145_v38  ;;  %v1851_v11 = vadd.f32 %v1819_v22, %v1753_v62 }
 0x1ef   : > { %2275 = vst.msk [vmem:[%s3617_s10 + $0xf0] sm:$0xff] %vm233_vm0, %v2243_v61  ;;  %v1949_v49 = vadd.f32 %v1917_v16, %v1851_v11 }
 0x1f1   : > { %v2048_v21 = vadd.f32 %v2016_v35, %v1949_v49 }
 0x1f3   : > { %v2146_v30 = vadd.f32 %v2114_v39, %v2048_v21 }
 0x1f5   : > { %v2244_v50 = vadd.f32 %v2212_v48, %v2146_v30 }
 0x1f7   : > { %2276 = vst.msk [vmem:[%s3617_s10 + $0xf8] sm:$0xff] %vm233_vm0, %v2244_v50 }
 0x1f8 PF: > { %s13_s14 = sadd.s32 1, %s2554_s14   ;;  %s4977_s12 = smov %s2550_s13 }
 0x1f9   : > { %p10_p5 = scmp.ge.s32.totalorder %s13_s14, 4   ;;  %s4978_s13 = smov %s4980_s15 }
 0x1fb   :  { %12 = sbr.rel (!%p10_p5) target bundleno = 2 (0x2), region = 74 }

</bundles_post_ra>
